<compile_context>
chip_gen: v5e
topology: v5e:2x2
jax: 0.10.0
libtpu: 0.0.40
codegen_flags: <defaults>
</compile_context>

<pallas_src>
import functools

import jax
import jax.numpy as jnp
from jax.experimental import pallas as pl
from jax.experimental.pallas import tpu as pltpu

LANE = 128  # TPU lane width; channel dims are padded up to a multiple of this.


def _round_up(x, m):
    return (x + m - 1) // m * m


def _vmem_limit_bytes():
    # ~100 MiB on v5e/v6e (128 MiB physical), ~51 MiB on v7x (64 MiB physical).
    try:
        cap = int(pltpu.get_tpu_info().vmem_capacity_bytes)
    except Exception:
        cap = 64 * 1024 * 1024
    return min(int(cap * 0.8), 100 * 1024 * 1024)


def _compiler_params(vmem_limit):
    cls = getattr(pltpu, "CompilerParams", None) or getattr(pltpu, "TPUCompilerParams")
    return cls(dimension_semantics=("parallel",), vmem_limit_bytes=vmem_limit)


# ---------------------------------------------------------------------------
# Fused BasicBlock kernel (nb images per grid step)
# ---------------------------------------------------------------------------
def _basic_block_kernel(*refs, stride, has_proj):
    if has_proj:
        (x_ref, w1_ref, s1_ref, b1_ref, w2_ref, s2_ref, b2_ref,
         ws_ref, ss_ref, bs_ref, out_ref, mid_ref) = refs
    else:
        (x_ref, w1_ref, s1_ref, b1_ref, w2_ref, s2_ref, b2_ref,
         out_ref, mid_ref) = refs
        ws_ref = ss_ref = bs_ref = None

    nb, Ho, Wo, Pp = out_ref.shape
    Cp = x_ref.shape[-1]
    M = nb * Ho * Wo

    def load_tap(kh, kw):
        # All taps are contiguous, unit-stride ref slices: the wrapper supplies
        # the input already zero-ring-padded (stride 1) or padded + regrouped
        # into 2x2 parity planes (stride 2), so no strided loads and no
        # in-kernel staging copy of x are needed.
        if stride == 1:
            t = x_ref[:, kh:kh + Ho, kw:kw + Wo, :]
        else:  # stride == 2: x_ref is (nb, 4, Hh, Wh, Cp), plane = (kh%2)*2+kw%2
            ph, qh = kh % 2, kh // 2
            pw, qw = kw % 2, kw // 2
            t = x_ref[:, ph * 2 + pw, qh:qh + Ho, qw:qw + Wo, :]
        return t.reshape(M, Cp)

    # --- conv1 + bn1 + relu: nine accumulated MXU matmuls (no im2col concat) --
    acc1 = jnp.zeros((M, Pp), jnp.float32)
    center = None
    for kh in range(3):
        for kw in range(3):
            t = kh * 3 + kw
            tap = load_tap(kh, kw)
            if t == 4:
                center = tap                      # == x[::stride, ::stride, :]
            acc1 = acc1 + jnp.dot(tap, w1_ref[t * Cp:(t + 1) * Cp, :],
                                  preferred_element_type=jnp.float32)
    out1 = jnp.maximum(acc1 * s1_ref[...] + b1_ref[...], 0.0)   # f32 epilogue

    # --- stage conv1 output in VMEM with a zero halo for conv2 ---------------
    # Only the 1-wide border is zeroed; the interior is fully rewritten.
    zr = jnp.zeros((nb, 1, Wo + 2, Pp), mid_ref.dtype)
    zc = jnp.zeros((nb, Ho + 2, 1, Pp), mid_ref.dtype)
    mid_ref[:, 0:1, :, :] = zr
    mid_ref[:, Ho + 1:Ho + 2, :, :] = zr
    mid_ref[:, :, 0:1, :] = zc
    mid_ref[:, :, Wo + 1:Wo + 2, :] = zc
    mid_ref[:, 1:Ho + 1, 1:Wo + 1, :] = (
        out1.reshape(nb, Ho, Wo, Pp).astype(mid_ref.dtype))

    # --- conv2 + bn2 (stride 1): nine more accumulated matmuls ---------------
    acc2 = jnp.zeros((M, Pp), jnp.float32)
    for kh in range(3):
        for kw in range(3):
            t = kh * 3 + kw
            tap = mid_ref[:, kh:kh + Ho, kw:kw + Wo, :].reshape(M, Pp)
            acc2 = acc2 + jnp.dot(tap, w2_ref[t * Pp:(t + 1) * Pp, :],
                                  preferred_element_type=jnp.float32)
    out2 = acc2 * s2_ref[...] + b2_ref[...]

    # --- shortcut -------------------------------------------------------------
    if has_proj:
        res = jnp.dot(center, ws_ref[...], preferred_element_type=jnp.float32)
        res = res * ss_ref[...] + bs_ref[...]
    else:
        # identity: stride == 1 and Cp == Pp (asserted in the wrapper).
        # TODO(synk): keep the identity residual in f32 when stacking many blocks.
        res = center.astype(jnp.float32)

    out = jnp.maximum(out2 + res, 0.0)
    out_ref[...] = out.reshape(nb, Ho, Wo, Pp).astype(out_ref.dtype)


# ---------------------------------------------------------------------------
# Parameter preparation (folded BN, tap-flattened bf16 weights, lane pad)
# ---------------------------------------------------------------------------
def _bn_fold(gamma, beta, mean, var, width, eps=1e-5):
    scale = gamma / jnp.sqrt(var + eps)
    bias = beta - mean * scale
    pad = width - scale.shape[0]
    scale = jnp.pad(scale, (0, pad)).reshape(1, width).astype(jnp.float32)
    bias = jnp.pad(bias, (0, pad)).reshape(1, width).astype(jnp.float32)
    return scale, bias


def _prep_w3x3(w_hwio, cp, pp):
    _, _, cin, cout = w_hwio.shape
    w = jnp.pad(w_hwio, ((0, 0), (0, 0), (0, cp - cin), (0, pp - cout)))
    return w.reshape(9 * cp, pp).astype(jnp.bfloat16)   # tap order = kh*3+kw


def _prep_w1x1(w_hwio, cp, pp):
    _, _, cin, cout = w_hwio.shape
    w = jnp.pad(w_hwio, ((0, 0), (0, 0), (0, cp - cin), (0, pp - cout)))
    return w.reshape(cp, pp).astype(jnp.bfloat16)


# ---------------------------------------------------------------------------
# BasicBlock forward (NCHW in / NCHW out, like PyTorch)
# ---------------------------------------------------------------------------
@functools.partial(jax.jit, static_argnames=("stride",))
def basic_block_forward(x_nchw, params, stride):
    assert stride in (1, 2)
    x = jnp.transpose(x_nchw, (0, 2, 3, 1))                 # NHWC
    N, H, W, Cin = x.shape
    planes = params["w1"].shape[-1]
    Ho = (H + 2 - 3) // stride + 1
    Wo = (W + 2 - 3) // stride + 1
    has_proj = (stride != 1) or (Cin != planes)

    Cp = _round_up(Cin, LANE)
    Pp = _round_up(planes, LANE)
    if not has_proj:
        assert Cp == Pp and stride == 1                      # identity invariants

    # One fused XLA pass over x: layout transpose + channel pad + 1-px zero
    # ring + bf16 cast (+ 2x2 parity regroup for stride 2). This replaces the
    # in-kernel halo staging copy / full-buffer zero fill of the old version.
    if stride == 2:
        Hp, Wp = _round_up(H + 2, 2), _round_up(W + 2, 2)
    else:
        Hp, Wp = H + 2, W + 2
    xp = jnp.pad(x, ((0, 0), (1, Hp - H - 1), (1, Wp - W - 1),
                     (0, Cp - Cin))).astype(jnp.bfloat16)
    if stride == 2:
        Hh, Wh = Hp // 2, Wp // 2
        xp = xp.reshape(N, Hh, 2, Wh, 2, Cp).transpose(0, 2, 4, 1, 3, 5)
        xp = xp.reshape(N, 4, Hh, Wh, Cp)                    # [n, parity, rr, cc, c]

    # Images per grid step: keep the matmul M dimension >= ~256 when spatial
    # extents are small.
    target = max(1, min(8, 256 // max(1, Ho * Wo)))
    nb = 1
    for cand in range(min(N, target), 0, -1):
        if N % cand == 0:
            nb = cand
            break

    if stride == 2:
        x_spec = pl.BlockSpec((nb, 4, Hh, Wh, Cp), lambda n: (n, 0, 0, 0, 0))
    else:
        x_spec = pl.BlockSpec((nb, Hp, Wp, Cp), lambda n: (n, 0, 0, 0))

    w1 = _prep_w3x3(params["w1"], Cp, Pp)
    w2 = _prep_w3x3(params["w2"], Pp, Pp)
    s1, b1 = _bn_fold(params["g1"], params["b1"], params["m1"], params["v1"], Pp)
    s2, b2 = _bn_fold(params["g2"], params["b2"], params["m2"], params["v2"], Pp)

    vec_spec = pl.BlockSpec((1, Pp), lambda n: (0, 0))
    args = [xp, w1, s1, b1, w2, s2, b2]
    in_specs = [x_spec,
                pl.BlockSpec((9 * Cp, Pp), lambda n: (0, 0)), vec_spec, vec_spec,
                pl.BlockSpec((9 * Pp, Pp), lambda n: (0, 0)), vec_spec, vec_spec]
    if has_proj:
        ws = _prep_w1x1(params["ws"], Cp, Pp)
        ss, bs = _bn_fold(params["gs"], params["bs"], params["ms"], params["vs"], Pp)
        args += [ws, ss, bs]
        in_specs += [pl.BlockSpec((Cp, Pp), lambda n: (0, 0)), vec_spec, vec_spec]

    kern = functools.partial(_basic_block_kernel, stride=stride, has_proj=has_proj)
    out = pl.pallas_call(
        kern,
        out_shape=jax.ShapeDtypeStruct((N, Ho, Wo, Pp), jnp.bfloat16),
        grid=(N // nb,),
        in_specs=in_specs,
        out_specs=pl.BlockSpec((nb, Ho, Wo, Pp), lambda n: (n, 0, 0, 0)),
        scratch_shapes=[pltpu.VMEM((nb, Ho + 2, Wo + 2, Pp), jnp.bfloat16)],
        compiler_params=_compiler_params(_vmem_limit_bytes()),
    )(*args)

    out = out[..., :planes].astype(jnp.float32)              # drop channel padding
    return jnp.transpose(out, (0, 3, 1, 2))                  # back to NCHW


# ---------------------------------------------------------------------------
# Pure-JAX f32 reference (for correctness check)
# ---------------------------------------------------------------------------
def reference_forward(x_nchw, params, stride, eps=1e-5):
    def conv(z, w_hwio, s, pad):
        return jax.lax.conv_general_dilated(
            z, w_hwio, (s, s), pad, dimension_numbers=("NCHW", "HWIO", "NCHW"))

    def bn(z, g, b, m, v):
        rs = lambda a: a.reshape(1, -1, 1, 1)
        return (z - rs(m)) / jnp.sqrt(rs(v) + eps) * rs(g) + rs(b)

    in_planes = params["w1"].shape[2]
    planes = params["w1"].shape[3]
    out = jax.nn.relu(bn(conv(x_nchw, params["w1"], stride, ((1, 1), (1, 1))),
                         params["g1"], params["b1"], params["m1"], params["v1"]))
    out = bn(conv(out, params["w2"], 1, ((1, 1), (1, 1))),
             params["g2"], params["b2"], params["m2"], params["v2"])
    if stride != 1 or in_planes != planes:
        sc = bn(conv(x_nchw, params["ws"], stride, ((0, 0), (0, 0))),
                params["gs"], params["bs"], params["ms"], params["vs"])
    else:
        sc = x_nchw
    return jax.nn.relu(out + sc)


# ---------------------------------------------------------------------------
def make_params(key, in_planes, planes):
    ks = jax.random.split(key, 16)
    return {
        "w1": jax.random.normal(ks[0], (3, 3, in_planes, planes), jnp.float32)
              * (2.0 / (9 * in_planes)) ** 0.5,
        "w2": jax.random.normal(ks[1], (3, 3, planes, planes), jnp.float32)
              * (2.0 / (9 * planes)) ** 0.5,
        "ws": jax.random.normal(ks[2], (1, 1, in_planes, planes), jnp.float32)
              * (2.0 / in_planes) ** 0.5,
        "g1": jax.random.uniform(ks[3], (planes,), jnp.float32, 0.5, 1.5),
        "b1": 0.1 * jax.random.normal(ks[4], (planes,), jnp.float32),
        "m1": 0.1 * jax.random.normal(ks[5], (planes,), jnp.float32),
        "v1": jax.random.uniform(ks[6], (planes,), jnp.float32, 0.5, 1.5),
        "g2": jax.random.uniform(ks[7], (planes,), jnp.float32, 0.5, 1.5),
        "b2": 0.1 * jax.random.normal(ks[8], (planes,), jnp.float32),
        "m2": 0.1 * jax.random.normal(ks[9], (planes,), jnp.float32),
        "v2": jax.random.uniform(ks[10], (planes,), jnp.float32, 0.5, 1.5),
        "gs": jax.random.uniform(ks[11], (planes,), jnp.float32, 0.5, 1.5),
        "bs": 0.1 * jax.random.normal(ks[12], (planes,), jnp.float32),
        "ms": 0.1 * jax.random.normal(ks[13], (planes,), jnp.float32),
        "vs": jax.random.uniform(ks[14], (planes,), jnp.float32, 0.5, 1.5),
    }


if __name__ == "__main__":
    key = jax.random.PRNGKey(0)
    kx, kp1, kp2 = jax.random.split(key, 3)

    N, in_planes, planes, H, W = 2, 4, 8, 16, 16
    x = jax.random.normal(kx, (N, in_planes, H, W), jnp.float32)   # NCHW like PyTorch

    # Block 1: downsampling block with 1x1 projection shortcut (stride 2).
    p1 = make_params(kp1, in_planes, planes)
    out1 = jax.block_until_ready(basic_block_forward(x, p1, stride=2))
    ref1 = jax.block_until_ready(reference_forward(x, p1, 2))
    assert out1.shape == ref1.shape, (out1.shape, ref1.shape)
    err1 = jnp.max(jnp.abs(out1 - ref1)) / (jnp.max(jnp.abs(ref1)) + 1e-6)
    assert err1 < 5e-2, f"proj block normalized max err {err1}"

    # Block 2: identity-shortcut block (stride 1), stacked on block 1's output.
    p2 = make_params(kp2, planes, planes)
    out2 = jax.block_until_ready(basic_block_forward(out1, p2, stride=1))
    ref2 = jax.block_until_ready(reference_forward(ref1, p2, 1))
    assert out2.shape == ref2.shape, (out2.shape, ref2.shape)
    err2 = jnp.max(jnp.abs(out2 - ref2)) / (jnp.max(jnp.abs(ref2)) + 1e-6)
    assert err2 < 5e-2, f"identity block normalized max err {err2}"

    print("KERNEL_OK")
</pallas_src>

<mosaic_0001>
module attributes {stable_mosaic.version = 11 : i64} {
  func.func @_basic_block_kernel(%arg0: i32, %arg1: memref<2x4x9x9x128xbf16, #tpu.memory_space<vmem>>, %arg2: memref<1152x128xbf16, #tpu.memory_space<vmem>>, %arg3: memref<1x128xf32, #tpu.memory_space<vmem>>, %arg4: memref<1x128xf32, #tpu.memory_space<vmem>>, %arg5: memref<1152x128xbf16, #tpu.memory_space<vmem>>, %arg6: memref<1x128xf32, #tpu.memory_space<vmem>>, %arg7: memref<1x128xf32, #tpu.memory_space<vmem>>, %arg8: memref<128x128xbf16, #tpu.memory_space<vmem>>, %arg9: memref<1x128xf32, #tpu.memory_space<vmem>>, %arg10: memref<1x128xf32, #tpu.memory_space<vmem>>, %arg11: memref<2x8x8x128xbf16, #tpu.memory_space<vmem>>, %arg12: memref<2x10x10x128xbf16, #tpu.memory_space<vmem>>) attributes {dimension_semantics = [#tpu.dimension_semantics<parallel>], iteration_bounds = array<i64: 1>, scalar_prefetch = 0 : i64, scratch_operands = 1 : i64, tpu.core_type = #tpu.core_type<tc>, window_params = [{transform_indices = @transform_0, window_bounds = array<i64: 2, 4, 9, 9, 128>}, {pipeline_mode = #tpu.pipeline_mode<synchronous>, transform_indices = @transform_1, window_bounds = array<i64: 1152, 128>}, {pipeline_mode = #tpu.pipeline_mode<synchronous>, transform_indices = @transform_2, window_bounds = array<i64: 1, 128>}, {pipeline_mode = #tpu.pipeline_mode<synchronous>, transform_indices = @transform_3, window_bounds = array<i64: 1, 128>}, {pipeline_mode = #tpu.pipeline_mode<synchronous>, transform_indices = @transform_4, window_bounds = array<i64: 1152, 128>}, {pipeline_mode = #tpu.pipeline_mode<synchronous>, transform_indices = @transform_5, window_bounds = array<i64: 1, 128>}, {pipeline_mode = #tpu.pipeline_mode<synchronous>, transform_indices = @transform_6, window_bounds = array<i64: 1, 128>}, {pipeline_mode = #tpu.pipeline_mode<synchronous>, transform_indices = @transform_7, window_bounds = array<i64: 128, 128>}, {pipeline_mode = #tpu.pipeline_mode<synchronous>, transform_indices = @transform_8, window_bounds = array<i64: 1, 128>}, {pipeline_mode = #tpu.pipeline_mode<synchronous>, transform_indices = @transform_9, window_bounds = array<i64: 1, 128>}, {transform_indices = @transform_10, window_bounds = array<i64: 2, 8, 8, 128>}]} {
    %cst = arith.constant 0.000000e+00 : f32
    %0 = vector.broadcast %cst : f32 to vector<128x128xf32>
    %c0 = arith.constant 0 : index
    %c0_0 = arith.constant 0 : index
    %c0_1 = arith.constant 0 : index
    %c0_2 = arith.constant 0 : index
    %c0_3 = arith.constant 0 : index
    %1 = vector.load %arg1[%c0, %c0_0, %c0_1, %c0_2, %c0_3] : memref<2x4x9x9x128xbf16, #tpu.memory_space<vmem>>, vector<2x1x8x8x128xbf16>
    %2 = vector.shape_cast %1 : vector<2x1x8x8x128xbf16> to vector<2x8x8x128xbf16>
    %3 = vector.shape_cast %2 : vector<2x8x8x128xbf16> to vector<128x128xbf16>
    %c0_4 = arith.constant 0 : index
    %c0_5 = arith.constant 0 : index
    %4 = vector.load %arg2[%c0_4, %c0_5] : memref<1152x128xbf16, #tpu.memory_space<vmem>>, vector<128x128xbf16>
    %cst_6 = arith.constant dense<0.000000e+00> : vector<128x128xf32>
    %5 = tpu.matmul %3, %4, %cst_6 {dimension_numbers = #tpu.dot_dimension_numbers<[1], [0], [0], [1], [0, 0, 1, 1], [], []>} : vector<128x128xbf16>, vector<128x128xbf16>, vector<128x128xf32> -> vector<128x128xf32>
    %6 = arith.addf %0, %5 : vector<128x128xf32>
    %c0_7 = arith.constant 0 : index
    %c1 = arith.constant 1 : index
    %c0_8 = arith.constant 0 : index
    %c0_9 = arith.constant 0 : index
    %c0_10 = arith.constant 0 : index
    %7 = vector.load %arg1[%c0_7, %c1, %c0_8, %c0_9, %c0_10] : memref<2x4x9x9x128xbf16, #tpu.memory_space<vmem>>, vector<2x1x8x8x128xbf16>
    %8 = vector.shape_cast %7 : vector<2x1x8x8x128xbf16> to vector<2x8x8x128xbf16>
    %9 = vector.shape_cast %8 : vector<2x8x8x128xbf16> to vector<128x128xbf16>
    %c128 = arith.constant 128 : index
    %c0_11 = arith.constant 0 : index
    %10 = vector.load %arg2[%c128, %c0_11] : memref<1152x128xbf16, #tpu.memory_space<vmem>>, vector<128x128xbf16>
    %cst_12 = arith.constant dense<0.000000e+00> : vector<128x128xf32>
    %11 = tpu.matmul %9, %10, %cst_12 {dimension_numbers = #tpu.dot_dimension_numbers<[1], [0], [0], [1], [0, 0, 1, 1], [], []>} : vector<128x128xbf16>, vector<128x128xbf16>, vector<128x128xf32> -> vector<128x128xf32>
    %12 = arith.addf %6, %11 : vector<128x128xf32>
    %c0_13 = arith.constant 0 : index
    %c0_14 = arith.constant 0 : index
    %c0_15 = arith.constant 0 : index
    %c1_16 = arith.constant 1 : index
    %c0_17 = arith.constant 0 : index
    %13 = vector.load %arg1[%c0_13, %c0_14, %c0_15, %c1_16, %c0_17] : memref<2x4x9x9x128xbf16, #tpu.memory_space<vmem>>, vector<2x1x8x8x128xbf16>
    %14 = vector.shape_cast %13 : vector<2x1x8x8x128xbf16> to vector<2x8x8x128xbf16>
    %15 = vector.shape_cast %14 : vector<2x8x8x128xbf16> to vector<128x128xbf16>
    %c256 = arith.constant 256 : index
    %c0_18 = arith.constant 0 : index
    %16 = vector.load %arg2[%c256, %c0_18] : memref<1152x128xbf16, #tpu.memory_space<vmem>>, vector<128x128xbf16>
    %cst_19 = arith.constant dense<0.000000e+00> : vector<128x128xf32>
    %17 = tpu.matmul %15, %16, %cst_19 {dimension_numbers = #tpu.dot_dimension_numbers<[1], [0], [0], [1], [0, 0, 1, 1], [], []>} : vector<128x128xbf16>, vector<128x128xbf16>, vector<128x128xf32> -> vector<128x128xf32>
    %18 = arith.addf %12, %17 : vector<128x128xf32>
    %c0_20 = arith.constant 0 : index
    %c2 = arith.constant 2 : index
    %c0_21 = arith.constant 0 : index
    %c0_22 = arith.constant 0 : index
    %c0_23 = arith.constant 0 : index
    %19 = vector.load %arg1[%c0_20, %c2, %c0_21, %c0_22, %c0_23] : memref<2x4x9x9x128xbf16, #tpu.memory_space<vmem>>, vector<2x1x8x8x128xbf16>
    %20 = vector.shape_cast %19 : vector<2x1x8x8x128xbf16> to vector<2x8x8x128xbf16>
    %21 = vector.shape_cast %20 : vector<2x8x8x128xbf16> to vector<128x128xbf16>
    %c384 = arith.constant 384 : index
    %c0_24 = arith.constant 0 : index
    %22 = vector.load %arg2[%c384, %c0_24] : memref<1152x128xbf16, #tpu.memory_space<vmem>>, vector<128x128xbf16>
    %cst_25 = arith.constant dense<0.000000e+00> : vector<128x128xf32>
    %23 = tpu.matmul %21, %22, %cst_25 {dimension_numbers = #tpu.dot_dimension_numbers<[1], [0], [0], [1], [0, 0, 1, 1], [], []>} : vector<128x128xbf16>, vector<128x128xbf16>, vector<128x128xf32> -> vector<128x128xf32>
    %24 = arith.addf %18, %23 : vector<128x128xf32>
    %c0_26 = arith.constant 0 : index
    %c3 = arith.constant 3 : index
    %c0_27 = arith.constant 0 : index
    %c0_28 = arith.constant 0 : index
    %c0_29 = arith.constant 0 : index
    %25 = vector.load %arg1[%c0_26, %c3, %c0_27, %c0_28, %c0_29] : memref<2x4x9x9x128xbf16, #tpu.memory_space<vmem>>, vector<2x1x8x8x128xbf16>
    %26 = vector.shape_cast %25 : vector<2x1x8x8x128xbf16> to vector<2x8x8x128xbf16>
    %27 = vector.shape_cast %26 : vector<2x8x8x128xbf16> to vector<128x128xbf16>
    %c512 = arith.constant 512 : index
    %c0_30 = arith.constant 0 : index
    %28 = vector.load %arg2[%c512, %c0_30] : memref<1152x128xbf16, #tpu.memory_space<vmem>>, vector<128x128xbf16>
    %cst_31 = arith.constant dense<0.000000e+00> : vector<128x128xf32>
    %29 = tpu.matmul %27, %28, %cst_31 {dimension_numbers = #tpu.dot_dimension_numbers<[1], [0], [0], [1], [0, 0, 1, 1], [], []>} : vector<128x128xbf16>, vector<128x128xbf16>, vector<128x128xf32> -> vector<128x128xf32>
    %30 = arith.addf %24, %29 : vector<128x128xf32>
    %c0_32 = arith.constant 0 : index
    %c2_33 = arith.constant 2 : index
    %c0_34 = arith.constant 0 : index
    %c1_35 = arith.constant 1 : index
    %c0_36 = arith.constant 0 : index
    %31 = vector.load %arg1[%c0_32, %c2_33, %c0_34, %c1_35, %c0_36] : memref<2x4x9x9x128xbf16, #tpu.memory_space<vmem>>, vector<2x1x8x8x128xbf16>
    %32 = vector.shape_cast %31 : vector<2x1x8x8x128xbf16> to vector<2x8x8x128xbf16>
    %33 = vector.shape_cast %32 : vector<2x8x8x128xbf16> to vector<128x128xbf16>
    %c640 = arith.constant 640 : index
    %c0_37 = arith.constant 0 : index
    %34 = vector.load %arg2[%c640, %c0_37] : memref<1152x128xbf16, #tpu.memory_space<vmem>>, vector<128x128xbf16>
    %cst_38 = arith.constant dense<0.000000e+00> : vector<128x128xf32>
    %35 = tpu.matmul %33, %34, %cst_38 {dimension_numbers = #tpu.dot_dimension_numbers<[1], [0], [0], [1], [0, 0, 1, 1], [], []>} : vector<128x128xbf16>, vector<128x128xbf16>, vector<128x128xf32> -> vector<128x128xf32>
    %36 = arith.addf %30, %35 : vector<128x128xf32>
    %c0_39 = arith.constant 0 : index
    %c0_40 = arith.constant 0 : index
    %c1_41 = arith.constant 1 : index
    %c0_42 = arith.constant 0 : index
    %c0_43 = arith.constant 0 : index
    %37 = vector.load %arg1[%c0_39, %c0_40, %c1_41, %c0_42, %c0_43] : memref<2x4x9x9x128xbf16, #tpu.memory_space<vmem>>, vector<2x1x8x8x128xbf16>
    %38 = vector.shape_cast %37 : vector<2x1x8x8x128xbf16> to vector<2x8x8x128xbf16>
    %39 = vector.shape_cast %38 : vector<2x8x8x128xbf16> to vector<128x128xbf16>
    %c768 = arith.constant 768 : index
    %c0_44 = arith.constant 0 : index
    %40 = vector.load %arg2[%c768, %c0_44] : memref<1152x128xbf16, #tpu.memory_space<vmem>>, vector<128x128xbf16>
    %cst_45 = arith.constant dense<0.000000e+00> : vector<128x128xf32>
    %41 = tpu.matmul %39, %40, %cst_45 {dimension_numbers = #tpu.dot_dimension_numbers<[1], [0], [0], [1], [0, 0, 1, 1], [], []>} : vector<128x128xbf16>, vector<128x128xbf16>, vector<128x128xf32> -> vector<128x128xf32>
    %42 = arith.addf %36, %41 : vector<128x128xf32>
    %c0_46 = arith.constant 0 : index
    %c1_47 = arith.constant 1 : index
    %c1_48 = arith.constant 1 : index
    %c0_49 = arith.constant 0 : index
    %c0_50 = arith.constant 0 : index
    %43 = vector.load %arg1[%c0_46, %c1_47, %c1_48, %c0_49, %c0_50] : memref<2x4x9x9x128xbf16, #tpu.memory_space<vmem>>, vector<2x1x8x8x128xbf16>
    %44 = vector.shape_cast %43 : vector<2x1x8x8x128xbf16> to vector<2x8x8x128xbf16>
    %45 = vector.shape_cast %44 : vector<2x8x8x128xbf16> to vector<128x128xbf16>
    %c896 = arith.constant 896 : index
    %c0_51 = arith.constant 0 : index
    %46 = vector.load %arg2[%c896, %c0_51] : memref<1152x128xbf16, #tpu.memory_space<vmem>>, vector<128x128xbf16>
    %cst_52 = arith.constant dense<0.000000e+00> : vector<128x128xf32>
    %47 = tpu.matmul %45, %46, %cst_52 {dimension_numbers = #tpu.dot_dimension_numbers<[1], [0], [0], [1], [0, 0, 1, 1], [], []>} : vector<128x128xbf16>, vector<128x128xbf16>, vector<128x128xf32> -> vector<128x128xf32>
    %48 = arith.addf %42, %47 : vector<128x128xf32>
    %c0_53 = arith.constant 0 : index
    %c0_54 = arith.constant 0 : index
    %c1_55 = arith.constant 1 : index
    %c1_56 = arith.constant 1 : index
    %c0_57 = arith.constant 0 : index
    %49 = vector.load %arg1[%c0_53, %c0_54, %c1_55, %c1_56, %c0_57] : memref<2x4x9x9x128xbf16, #tpu.memory_space<vmem>>, vector<2x1x8x8x128xbf16>
    %50 = vector.shape_cast %49 : vector<2x1x8x8x128xbf16> to vector<2x8x8x128xbf16>
    %51 = vector.shape_cast %50 : vector<2x8x8x128xbf16> to vector<128x128xbf16>
    %c1024 = arith.constant 1024 : index
    %c0_58 = arith.constant 0 : index
    %52 = vector.load %arg2[%c1024, %c0_58] : memref<1152x128xbf16, #tpu.memory_space<vmem>>, vector<128x128xbf16>
    %cst_59 = arith.constant dense<0.000000e+00> : vector<128x128xf32>
    %53 = tpu.matmul %51, %52, %cst_59 {dimension_numbers = #tpu.dot_dimension_numbers<[1], [0], [0], [1], [0, 0, 1, 1], [], []>} : vector<128x128xbf16>, vector<128x128xbf16>, vector<128x128xf32> -> vector<128x128xf32>
    %54 = arith.addf %48, %53 : vector<128x128xf32>
    %c0_60 = arith.constant 0 : index
    %c0_61 = arith.constant 0 : index
    %55 = vector.load %arg3[%c0_60, %c0_61] : memref<1x128xf32, #tpu.memory_space<vmem>>, vector<1x128xf32>
    %56 = vector.broadcast %55 : vector<1x128xf32> to vector<128x128xf32>
    %57 = arith.mulf %54, %56 : vector<128x128xf32>
    %c0_62 = arith.constant 0 : index
    %c0_63 = arith.constant 0 : index
    %58 = vector.load %arg4[%c0_62, %c0_63] : memref<1x128xf32, #tpu.memory_space<vmem>>, vector<1x128xf32>
    %59 = vector.broadcast %58 : vector<1x128xf32> to vector<128x128xf32>
    %60 = arith.addf %57, %59 : vector<128x128xf32>
    %cst_64 = arith.constant 0.000000e+00 : f32
    %61 = vector.broadcast %cst_64 : f32 to vector<128x128xf32>
    %62 = arith.maximumf %60, %61 : vector<128x128xf32>
    %cst_65 = arith.constant 0.000000e+00 : bf16
    %63 = vector.broadcast %cst_65 : bf16 to vector<2x1x10x128xbf16>
    %cst_66 = arith.constant 0.000000e+00 : bf16
    %64 = vector.broadcast %cst_66 : bf16 to vector<2x10x1x128xbf16>
    %c0_67 = arith.constant 0 : index
    %c0_68 = arith.constant 0 : index
    %c0_69 = arith.constant 0 : index
    %c0_70 = arith.constant 0 : index
    %65 = vector.load %arg12[%c0_67, %c0_68, %c0_69, %c0_70] : memref<2x10x10x128xbf16, #tpu.memory_space<vmem>>, vector<2x1x10x128xbf16>
    tpu.vector_store %arg12[%c0_67, %c0_68, %c0_69, %c0_70], %63 {strides = array<i32>} : memref<2x10x10x128xbf16, #tpu.memory_space<vmem>>, vector<2x1x10x128xbf16>,
    %c0_71 = arith.constant 0 : index
    %c9 = arith.constant 9 : index
    %c0_72 = arith.constant 0 : index
    %c0_73 = arith.constant 0 : index
    %66 = vector.load %arg12[%c0_71, %c9, %c0_72, %c0_73] : memref<2x10x10x128xbf16, #tpu.memory_space<vmem>>, vector<2x1x10x128xbf16>
    tpu.vector_store %arg12[%c0_71, %c9, %c0_72, %c0_73], %63 {strides = array<i32>} : memref<2x10x10x128xbf16, #tpu.memory_space<vmem>>, vector<2x1x10x128xbf16>,
    %c0_74 = arith.constant 0 : index
    %c0_75 = arith.constant 0 : index
    %c0_76 = arith.constant 0 : index
    %c0_77 = arith.constant 0 : index
    %67 = vector.load %arg12[%c0_74, %c0_75, %c0_76, %c0_77] : memref<2x10x10x128xbf16, #tpu.memory_space<vmem>>, vector<2x10x1x128xbf16>
    tpu.vector_store %arg12[%c0_74, %c0_75, %c0_76, %c0_77], %64 {strides = array<i32>} : memref<2x10x10x128xbf16, #tpu.memory_space<vmem>>, vector<2x10x1x128xbf16>,
    %c0_78 = arith.constant 0 : index
    %c0_79 = arith.constant 0 : index
    %c9_80 = arith.constant 9 : index
    %c0_81 = arith.constant 0 : index
    %68 = vector.load %arg12[%c0_78, %c0_79, %c9_80, %c0_81] : memref<2x10x10x128xbf16, #tpu.memory_space<vmem>>, vector<2x10x1x128xbf16>
    tpu.vector_store %arg12[%c0_78, %c0_79, %c9_80, %c0_81], %64 {strides = array<i32>} : memref<2x10x10x128xbf16, #tpu.memory_space<vmem>>, vector<2x10x1x128xbf16>,
    %69 = vector.shape_cast %62 : vector<128x128xf32> to vector<2x8x8x128xf32>
    %70 = arith.truncf %69 : vector<2x8x8x128xf32> to vector<2x8x8x128xbf16>
    %c0_82 = arith.constant 0 : index
    %c1_83 = arith.constant 1 : index
    %c1_84 = arith.constant 1 : index
    %c0_85 = arith.constant 0 : index
    %71 = vector.load %arg12[%c0_82, %c1_83, %c1_84, %c0_85] : memref<2x10x10x128xbf16, #tpu.memory_space<vmem>>, vector<2x8x8x128xbf16>
    tpu.vector_store %arg12[%c0_82, %c1_83, %c1_84, %c0_85], %70 {strides = array<i32>} : memref<2x10x10x128xbf16, #tpu.memory_space<vmem>>, vector<2x8x8x128xbf16>,
    %cst_86 = arith.constant 0.000000e+00 : f32
    %72 = vector.broadcast %cst_86 : f32 to vector<128x128xf32>
    %c0_87 = arith.constant 0 : index
    %c0_88 = arith.constant 0 : index
    %c0_89 = arith.constant 0 : index
    %c0_90 = arith.constant 0 : index
    %73 = vector.load %arg12[%c0_87, %c0_88, %c0_89, %c0_90] : memref<2x10x10x128xbf16, #tpu.memory_space<vmem>>, vector<2x8x8x128xbf16>
    %74 = vector.shape_cast %73 : vector<2x8x8x128xbf16> to vector<128x128xbf16>
    %c0_91 = arith.constant 0 : index
    %c0_92 = arith.constant 0 : index
    %75 = vector.load %arg5[%c0_91, %c0_92] : memref<1152x128xbf16, #tpu.memory_space<vmem>>, vector<128x128xbf16>
    %cst_93 = arith.constant dense<0.000000e+00> : vector<128x128xf32>
    %76 = tpu.matmul %74, %75, %cst_93 {dimension_numbers = #tpu.dot_dimension_numbers<[1], [0], [0], [1], [0, 0, 1, 1], [], []>} : vector<128x128xbf16>, vector<128x128xbf16>, vector<128x128xf32> -> vector<128x128xf32>
    %77 = arith.addf %72, %76 : vector<128x128xf32>
    %c0_94 = arith.constant 0 : index
    %c0_95 = arith.constant 0 : index
    %c1_96 = arith.constant 1 : index
    %c0_97 = arith.constant 0 : index
    %78 = vector.load %arg12[%c0_94, %c0_95, %c1_96, %c0_97] : memref<2x10x10x128xbf16, #tpu.memory_space<vmem>>, vector<2x8x8x128xbf16>
    %79 = vector.shape_cast %78 : vector<2x8x8x128xbf16> to vector<128x128xbf16>
    %c128_98 = arith.constant 128 : index
    %c0_99 = arith.constant 0 : index
    %80 = vector.load %arg5[%c128_98, %c0_99] : memref<1152x128xbf16, #tpu.memory_space<vmem>>, vector<128x128xbf16>
    %cst_100 = arith.constant dense<0.000000e+00> : vector<128x128xf32>
    %81 = tpu.matmul %79, %80, %cst_100 {dimension_numbers = #tpu.dot_dimension_numbers<[1], [0], [0], [1], [0, 0, 1, 1], [], []>} : vector<128x128xbf16>, vector<128x128xbf16>, vector<128x128xf32> -> vector<128x128xf32>
    %82 = arith.addf %77, %81 : vector<128x128xf32>
    %c0_101 = arith.constant 0 : index
    %c0_102 = arith.constant 0 : index
    %c2_103 = arith.constant 2 : index
    %c0_104 = arith.constant 0 : index
    %83 = vector.load %arg12[%c0_101, %c0_102, %c2_103, %c0_104] : memref<2x10x10x128xbf16, #tpu.memory_space<vmem>>, vector<2x8x8x128xbf16>
    %84 = vector.shape_cast %83 : vector<2x8x8x128xbf16> to vector<128x128xbf16>
    %c256_105 = arith.constant 256 : index
    %c0_106 = arith.constant 0 : index
    %85 = vector.load %arg5[%c256_105, %c0_106] : memref<1152x128xbf16, #tpu.memory_space<vmem>>, vector<128x128xbf16>
    %cst_107 = arith.constant dense<0.000000e+00> : vector<128x128xf32>
    %86 = tpu.matmul %84, %85, %cst_107 {dimension_numbers = #tpu.dot_dimension_numbers<[1], [0], [0], [1], [0, 0, 1, 1], [], []>} : vector<128x128xbf16>, vector<128x128xbf16>, vector<128x128xf32> -> vector<128x128xf32>
    %87 = arith.addf %82, %86 : vector<128x128xf32>
    %c0_108 = arith.constant 0 : index
    %c1_109 = arith.constant 1 : index
    %c0_110 = arith.constant 0 : index
    %c0_111 = arith.constant 0 : index
    %88 = vector.load %arg12[%c0_108, %c1_109, %c0_110, %c0_111] : memref<2x10x10x128xbf16, #tpu.memory_space<vmem>>, vector<2x8x8x128xbf16>
    %89 = vector.shape_cast %88 : vector<2x8x8x128xbf16> to vector<128x128xbf16>
    %c384_112 = arith.constant 384 : index
    %c0_113 = arith.constant 0 : index
    %90 = vector.load %arg5[%c384_112, %c0_113] : memref<1152x128xbf16, #tpu.memory_space<vmem>>, vector<128x128xbf16>
    %cst_114 = arith.constant dense<0.000000e+00> : vector<128x128xf32>
    %91 = tpu.matmul %89, %90, %cst_114 {dimension_numbers = #tpu.dot_dimension_numbers<[1], [0], [0], [1], [0, 0, 1, 1], [], []>} : vector<128x128xbf16>, vector<128x128xbf16>, vector<128x128xf32> -> vector<128x128xf32>
    %92 = arith.addf %87, %91 : vector<128x128xf32>
    %c0_115 = arith.constant 0 : index
    %c1_116 = arith.constant 1 : index
    %c1_117 = arith.constant 1 : index
    %c0_118 = arith.constant 0 : index
    %93 = vector.load %arg12[%c0_115, %c1_116, %c1_117, %c0_118] : memref<2x10x10x128xbf16, #tpu.memory_space<vmem>>, vector<2x8x8x128xbf16>
    %94 = vector.shape_cast %93 : vector<2x8x8x128xbf16> to vector<128x128xbf16>
    %c512_119 = arith.constant 512 : index
    %c0_120 = arith.constant 0 : index
    %95 = vector.load %arg5[%c512_119, %c0_120] : memref<1152x128xbf16, #tpu.memory_space<vmem>>, vector<128x128xbf16>
    %cst_121 = arith.constant dense<0.000000e+00> : vector<128x128xf32>
    %96 = tpu.matmul %94, %95, %cst_121 {dimension_numbers = #tpu.dot_dimension_numbers<[1], [0], [0], [1], [0, 0, 1, 1], [], []>} : vector<128x128xbf16>, vector<128x128xbf16>, vector<128x128xf32> -> vector<128x128xf32>
    %97 = arith.addf %92, %96 : vector<128x128xf32>
    %c0_122 = arith.constant 0 : index
    %c1_123 = arith.constant 1 : index
    %c2_124 = arith.constant 2 : index
    %c0_125 = arith.constant 0 : index
    %98 = vector.load %arg12[%c0_122, %c1_123, %c2_124, %c0_125] : memref<2x10x10x128xbf16, #tpu.memory_space<vmem>>, vector<2x8x8x128xbf16>
    %99 = vector.shape_cast %98 : vector<2x8x8x128xbf16> to vector<128x128xbf16>
    %c640_126 = arith.constant 640 : index
    %c0_127 = arith.constant 0 : index
    %100 = vector.load %arg5[%c640_126, %c0_127] : memref<1152x128xbf16, #tpu.memory_space<vmem>>, vector<128x128xbf16>
    %cst_128 = arith.constant dense<0.000000e+00> : vector<128x128xf32>
    %101 = tpu.matmul %99, %100, %cst_128 {dimension_numbers = #tpu.dot_dimension_numbers<[1], [0], [0], [1], [0, 0, 1, 1], [], []>} : vector<128x128xbf16>, vector<128x128xbf16>, vector<128x128xf32> -> vector<128x128xf32>
    %102 = arith.addf %97, %101 : vector<128x128xf32>
    %c0_129 = arith.constant 0 : index
    %c2_130 = arith.constant 2 : index
    %c0_131 = arith.constant 0 : index
    %c0_132 = arith.constant 0 : index
    %103 = vector.load %arg12[%c0_129, %c2_130, %c0_131, %c0_132] : memref<2x10x10x128xbf16, #tpu.memory_space<vmem>>, vector<2x8x8x128xbf16>
    %104 = vector.shape_cast %103 : vector<2x8x8x128xbf16> to vector<128x128xbf16>
    %c768_133 = arith.constant 768 : index
    %c0_134 = arith.constant 0 : index
    %105 = vector.load %arg5[%c768_133, %c0_134] : memref<1152x128xbf16, #tpu.memory_space<vmem>>, vector<128x128xbf16>
    %cst_135 = arith.constant dense<0.000000e+00> : vector<128x128xf32>
    %106 = tpu.matmul %104, %105, %cst_135 {dimension_numbers = #tpu.dot_dimension_numbers<[1], [0], [0], [1], [0, 0, 1, 1], [], []>} : vector<128x128xbf16>, vector<128x128xbf16>, vector<128x128xf32> -> vector<128x128xf32>
    %107 = arith.addf %102, %106 : vector<128x128xf32>
    %c0_136 = arith.constant 0 : index
    %c2_137 = arith.constant 2 : index
    %c1_138 = arith.constant 1 : index
    %c0_139 = arith.constant 0 : index
    %108 = vector.load %arg12[%c0_136, %c2_137, %c1_138, %c0_139] : memref<2x10x10x128xbf16, #tpu.memory_space<vmem>>, vector<2x8x8x128xbf16>
    %109 = vector.shape_cast %108 : vector<2x8x8x128xbf16> to vector<128x128xbf16>
    %c896_140 = arith.constant 896 : index
    %c0_141 = arith.constant 0 : index
    %110 = vector.load %arg5[%c896_140, %c0_141] : memref<1152x128xbf16, #tpu.memory_space<vmem>>, vector<128x128xbf16>
    %cst_142 = arith.constant dense<0.000000e+00> : vector<128x128xf32>
    %111 = tpu.matmul %109, %110, %cst_142 {dimension_numbers = #tpu.dot_dimension_numbers<[1], [0], [0], [1], [0, 0, 1, 1], [], []>} : vector<128x128xbf16>, vector<128x128xbf16>, vector<128x128xf32> -> vector<128x128xf32>
    %112 = arith.addf %107, %111 : vector<128x128xf32>
    %c0_143 = arith.constant 0 : index
    %c2_144 = arith.constant 2 : index
    %c2_145 = arith.constant 2 : index
    %c0_146 = arith.constant 0 : index
    %113 = vector.load %arg12[%c0_143, %c2_144, %c2_145, %c0_146] : memref<2x10x10x128xbf16, #tpu.memory_space<vmem>>, vector<2x8x8x128xbf16>
    %114 = vector.shape_cast %113 : vector<2x8x8x128xbf16> to vector<128x128xbf16>
    %c1024_147 = arith.constant 1024 : index
    %c0_148 = arith.constant 0 : index
    %115 = vector.load %arg5[%c1024_147, %c0_148] : memref<1152x128xbf16, #tpu.memory_space<vmem>>, vector<128x128xbf16>
    %cst_149 = arith.constant dense<0.000000e+00> : vector<128x128xf32>
    %116 = tpu.matmul %114, %115, %cst_149 {dimension_numbers = #tpu.dot_dimension_numbers<[1], [0], [0], [1], [0, 0, 1, 1], [], []>} : vector<128x128xbf16>, vector<128x128xbf16>, vector<128x128xf32> -> vector<128x128xf32>
    %117 = arith.addf %112, %116 : vector<128x128xf32>
    %c0_150 = arith.constant 0 : index
    %c0_151 = arith.constant 0 : index
    %118 = vector.load %arg6[%c0_150, %c0_151] : memref<1x128xf32, #tpu.memory_space<vmem>>, vector<1x128xf32>
    %119 = vector.broadcast %118 : vector<1x128xf32> to vector<128x128xf32>
    %120 = arith.mulf %117, %119 : vector<128x128xf32>
    %c0_152 = arith.constant 0 : index
    %c0_153 = arith.constant 0 : index
    %121 = vector.load %arg7[%c0_152, %c0_153] : memref<1x128xf32, #tpu.memory_space<vmem>>, vector<1x128xf32>
    %122 = vector.broadcast %121 : vector<1x128xf32> to vector<128x128xf32>
    %123 = arith.addf %120, %122 : vector<128x128xf32>
    %c0_154 = arith.constant 0 : index
    %c0_155 = arith.constant 0 : index
    %124 = vector.load %arg8[%c0_154, %c0_155] : memref<128x128xbf16, #tpu.memory_space<vmem>>, vector<128x128xbf16>
    %cst_156 = arith.constant dense<0.000000e+00> : vector<128x128xf32>
    %125 = tpu.matmul %27, %124, %cst_156 {dimension_numbers = #tpu.dot_dimension_numbers<[1], [0], [0], [1], [0, 0, 1, 1], [], []>} : vector<128x128xbf16>, vector<128x128xbf16>, vector<128x128xf32> -> vector<128x128xf32>
    %c0_157 = arith.constant 0 : index
    %c0_158 = arith.constant 0 : index
    %126 = vector.load %arg9[%c0_157, %c0_158] : memref<1x128xf32, #tpu.memory_space<vmem>>, vector<1x128xf32>
    %127 = vector.broadcast %126 : vector<1x128xf32> to vector<128x128xf32>
    %128 = arith.mulf %125, %127 : vector<128x128xf32>
    %c0_159 = arith.constant 0 : index
    %c0_160 = arith.constant 0 : index
    %129 = vector.load %arg10[%c0_159, %c0_160] : memref<1x128xf32, #tpu.memory_space<vmem>>, vector<1x128xf32>
    %130 = vector.broadcast %129 : vector<1x128xf32> to vector<128x128xf32>
    %131 = arith.addf %128, %130 : vector<128x128xf32>
    %132 = arith.addf %123, %131 : vector<128x128xf32>
    %cst_161 = arith.constant 0.000000e+00 : f32
    %133 = vector.broadcast %cst_161 : f32 to vector<128x128xf32>
    %134 = arith.maximumf %132, %133 : vector<128x128xf32>
    %135 = vector.shape_cast %134 : vector<128x128xf32> to vector<2x8x8x128xf32>
    %136 = arith.truncf %135 : vector<2x8x8x128xf32> to vector<2x8x8x128xbf16>
    %c0_162 = arith.constant 0 : index
    %c0_163 = arith.constant 0 : index
    %c0_164 = arith.constant 0 : index
    %c0_165 = arith.constant 0 : index
    %137 = vector.load %arg11[%c0_162, %c0_163, %c0_164, %c0_165] : memref<2x8x8x128xbf16, #tpu.memory_space<vmem>>, vector<2x8x8x128xbf16>
    tpu.vector_store %arg11[%c0_162, %c0_163, %c0_164, %c0_165], %136 {strides = array<i32>} : memref<2x8x8x128xbf16, #tpu.memory_space<vmem>>, vector<2x8x8x128xbf16>,
    return
  }
  func.func @transform_0(%arg0: i32) -> (i32, i32, i32, i32, i32) {
    %c0_i32 = arith.constant 0 : i32
    %c0_i32_0 = arith.constant 0 : i32
    %c0_i32_1 = arith.constant 0 : i32
    %c0_i32_2 = arith.constant 0 : i32
    %c0_i32_3 = arith.constant 0 : i32
    return %arg0, %c0_i32, %c0_i32_0, %c0_i32_1, %c0_i32_2 : i32, i32, i32, i32, i32
  }
  func.func @transform_1(%arg0: i32) -> (i32, i32) {
    %c0_i32 = arith.constant 0 : i32
    %c0_i32_0 = arith.constant 0 : i32
    %c0_i32_1 = arith.constant 0 : i32
    return %c0_i32, %c0_i32_0 : i32, i32
  }
  func.func @transform_2(%arg0: i32) -> (i32, i32) {
    %c0_i32 = arith.constant 0 : i32
    %c0_i32_0 = arith.constant 0 : i32
    %c0_i32_1 = arith.constant 0 : i32
    return %c0_i32, %c0_i32_0 : i32, i32
  }
  func.func @transform_3(%arg0: i32) -> (i32, i32) {
    %c0_i32 = arith.constant 0 : i32
    %c0_i32_0 = arith.constant 0 : i32
    %c0_i32_1 = arith.constant 0 : i32
    return %c0_i32, %c0_i32_0 : i32, i32
  }
  func.func @transform_4(%arg0: i32) -> (i32, i32) {
    %c0_i32 = arith.constant 0 : i32
    %c0_i32_0 = arith.constant 0 : i32
    %c0_i32_1 = arith.constant 0 : i32
    return %c0_i32, %c0_i32_0 : i32, i32
  }
  func.func @transform_5(%arg0: i32) -> (i32, i32) {
    %c0_i32 = arith.constant 0 : i32
    %c0_i32_0 = arith.constant 0 : i32
    %c0_i32_1 = arith.constant 0 : i32
    return %c0_i32, %c0_i32_0 : i32, i32
  }
  func.func @transform_6(%arg0: i32) -> (i32, i32) {
    %c0_i32 = arith.constant 0 : i32
    %c0_i32_0 = arith.constant 0 : i32
    %c0_i32_1 = arith.constant 0 : i32
    return %c0_i32, %c0_i32_0 : i32, i32
  }
  func.func @transform_7(%arg0: i32) -> (i32, i32) {
    %c0_i32 = arith.constant 0 : i32
    %c0_i32_0 = arith.constant 0 : i32
    %c0_i32_1 = arith.constant 0 : i32
    return %c0_i32, %c0_i32_0 : i32, i32
  }
  func.func @transform_8(%arg0: i32) -> (i32, i32) {
    %c0_i32 = arith.constant 0 : i32
    %c0_i32_0 = arith.constant 0 : i32
    %c0_i32_1 = arith.constant 0 : i32
    return %c0_i32, %c0_i32_0 : i32, i32
  }
  func.func @transform_9(%arg0: i32) -> (i32, i32) {
    %c0_i32 = arith.constant 0 : i32
    %c0_i32_0 = arith.constant 0 : i32
    %c0_i32_1 = arith.constant 0 : i32
    return %c0_i32, %c0_i32_0 : i32, i32
  }
  func.func @transform_10(%arg0: i32) -> (i32, i32, i32, i32) {
    %c0_i32 = arith.constant 0 : i32
    %c0_i32_0 = arith.constant 0 : i32
    %c0_i32_1 = arith.constant 0 : i32
    %c0_i32_2 = arith.constant 0 : i32
    return %arg0, %c0_i32, %c0_i32_0, %c0_i32_1 : i32, i32, i32, i32
  }
}

</mosaic_0001>

<bundles_post_ra>
// kernel: basic_block_forward.1
= control target key start
LH: loop header
LB: loop body
LE: loop exit
PB: predicated region body
PF: predicated region fallthrough
CT: control target
= control target key end

     0   :  { %vm423_vm0 = vsmask.f32 3328  ;;  %vm424_vm1 = vsmask.f32 7440  ;;  %vm2486_vm3 = vcmask 1040384   ;;  %vm2788_vm8 = vcmask 1043456   ;;  %s9561_s1 = inlined_call_operand.vmem [shape: bf16[1152,128], index: 1, kind: input, shape index: {}]   ;;  %s9562_s0 = inlined_call_operand.vmem [shape: bf16[2,4,9,9,128], index: 0, kind: input, shape index: {}]   ;;  %s9563_s2 = inlined_call_operand.vmem [shape: f32[1,128], index: 2, kind: input, shape index: {}]   ;;  %s9564_s3 = inlined_call_operand.vmem [shape: f32[1,128], index: 3, kind: input, shape index: {}]   ;;  %s9565_s4 = inlined_call_operand.vmem [shape: bf16[1152,128], index: 4, kind: input, shape index: {}]   ;;  %s9566_s7 = inlined_call_operand.vmem [shape: bf16[128,128], index: 7, kind: input, shape index: {}]   ;;  %s9567_s8 = inlined_call_operand.vmem [shape: f32[1,128], index: 8, kind: input, shape index: {}]   ;;  %s9568_s9 = inlined_call_operand.vmem [shape: f32[1,128], index: 9, kind: input, shape index: {}]   ;;  %s9569_s5 = inlined_call_operand.vmem [shape: f32[1,128], index: 5, kind: input, shape index: {}]   ;;  %s9570_s6 = inlined_call_operand.vmem [shape: f32[1,128], index: 6, kind: input, shape index: {}]   ;;  %s9571_s10 = inlined_call_operand.vmem [shape: bf16[2,8,8,128], index: 10, kind: output, shape index: {}]  }
   0x1   :  { %v6871_v0 = vld [vmem:[%s9561_s1 + $0x78] sm:$0xff]  ;;  %v6870_v3 = vld [vmem:[%s9561_s1 + $0x70] sm:$0xff]  ;;  %v6869_v6 = vld [vmem:[%s9561_s1 + $0x68] sm:$0xff]  ;;  %vm2487_vm4 = vsmask.f32 256  ;;  %vm3496_vm10 = vcmask 1042432  }
   0x2   :  { %v7212_v1 = vld [vmem:[%s9561_s1 + $0xb8] sm:$0xff]  ;;  %197 = vmatpush.bf16.msra.mxu0 %v6871_v0  ;;  %7111 = vmatpush.bf16.msra.mxu3 %v6871_v0  ;;  %v7227_v4 = vld [vmem:[%s9561_s1 + $0xb0] sm:$0xff]  ;;  %v7242_v7 = vld [vmem:[%s9561_s1 + $0xa8] sm:$0xff]  ;;  %vm2549_vm5 = vsmask.f32 7938  ;;  %vm3497_vm11 = vcmask 1046532  }
   0x3   :  { %v7217_v2 = vld [vmem:[%s9561_s1 + $0x38] sm:$0xff]  ;;  %7127 = vmatpush.bf16.msra.mxu2 %v7212_v1  ;;  %v7232_v5 = vld [vmem:[%s9561_s1 + $0x30] sm:$0xff]  ;;  %v7247_v8 = vld [vmem:[%s9561_s1 + $0x28] sm:$0xff] }
   0x4   :  { %7119 = vmatpush.bf16.msra.mxu1 %v7217_v2  ;;  %v399_v9 = vld [vmem:[%s9562_s0 + $0x20] sm:$0xf]  ;;  %v401_v11 = vld [vmem:[%s9562_s0 + $0x28] sm:$0xf]  ;;  %v400_v18 = vld [vmem:[%s9562_s0 + $0x24] sm:$0x1] }
   0x5   :  { %v6868_v10 = vld [vmem:[%s9561_s1 + $0x60] sm:$0xff]  ;;  %v483_v12 = vshrl.u32 %v399_v9, 16  ;;  %v486_v13 = vshll.u32 %v399_v9, 16  ;;  %v497_v16 = vshrl.u32 %v401_v11, 16  ;;  %v500_v17 = vshll.u32 %v401_v11, 16  ;;  %v6867_v24 = vld [vmem:[%s9561_s1 + $0x58] sm:$0xff]  ;;  %vm7309_vm2 = vmor %vm423_vm0, %vm424_vm1 }
   0x6   :  { %198 = vmatpush.bf16.msra.mxu0 %v6870_v3  ;;  %7112 = vmatpush.bf16.msra.mxu3 %v6870_v3  ;;  %v7263_v14 = vld [vmem:[%s9561_s1 + $0xa0] sm:$0xff]  ;;  %v402_v19 = vld [vmem:[%s9562_s0 + $0x2c] sm:$0x1]  ;;  %v7284_v25 = vld [vmem:[%s9561_s1 + $0x98] sm:$0xff]  ;;  %v492_v28 = vshll.u32 %v400_v18, 16 }
   0x7   :  { %7128 = vmatpush.bf16.msra.mxu2 %v7227_v4  ;;  %v7268_v15 = vld [vmem:[%s9561_s1 + $0x20] sm:$0xff]  ;;  %v485_v20 = vrot.slane %v483_v12, 4  ;;  %v488_v21 = vrot.slane %v486_v13, 5  ;;  %v499_v22 = vrot.slane %v497_v16, 4  ;;  %v502_v23 = vrot.slane %v500_v17, 5  ;;  %v7289_v26 = vld [vmem:[%s9561_s1 + $0x18] sm:$0xff]  ;;  %vm8362_vm6 = vmand %vm2486_vm3, %vm2487_vm4 }
   0x8   :  { %7120 = vmatpush.bf16.msra.mxu1 %v7232_v5  ;;  %v506_v30 = vshll.u32 %v402_v19, 16  ;;  %v6866_v31 = vld [vmem:[%s9561_s1 + $0x50] sm:$0xff]  ;;  %v494_v35 = vrot.slane %v492_v28, 5  ;;  %v405_v40 = vld [vmem:[%s9562_s0 + $0x38] sm:$0xf]  ;;  %v6865_v41 = vld [vmem:[%s9561_s1 + $0x48] sm:$0xff] }
   0x9   :  { %v489_v27 = vor.u32 %v488_v21, %v485_v20  ;;  %v503_v29 = vor.u32 %v502_v23, %v499_v22  ;;  %v7297_v32 = vld [vmem:[%s9561_s1 + $0x90] sm:$0xff]  ;;  %v7324_v44 = vld [vmem:[%s9561_s1 + $0x88] sm:$0xff]  ;;  %v525_v48 = vshrl.u32 %v405_v40, 16  ;;  %v528_v49 = vshll.u32 %v405_v40, 16  ;;  %v6864_v50 = vld [vmem:[%s9561_s1 + $0x40] sm:$0xff] }
   0xa   :  { %199 = vmatpush.bf16.msra.mxu0 %v6869_v6  ;;  %7113 = vmatpush.bf16.msra.mxu3 %v6869_v6  ;;  %v7302_v33 = vld [vmem:[%s9561_s1 + $0x10] sm:$0xff]  ;;  %v508_v37 = vrot.slane %v506_v30, 5  ;;  %v7329_v45 = vld [vmem:[%s9561_s1 + $0x8] sm:$0xff]  ;;  %v7341_v51 = vld [vmem:[%s9561_s1 + $0x80] sm:$0xff] }
   0xb   :  { %7129 = vmatpush.bf16.msra.mxu2 %v7242_v7  ;;  %v490_v34 = vrot.slane %v489_v27, 4  ;;  %v504_v36 = vrot.slane %v503_v29, 4  ;;  %v403_v38 = vld [vmem:[%s9562_s0 + $0x30] sm:$0xf]  ;;  %v5770_v52 = vld [vmem:[%s9562_s0 + $0x48] sm:$0xf]  ;;  %vm8369_vm7 = vmand %vm2486_vm3, %vm2549_vm5 }
   0xc   :  { %7121 = vmatpush.bf16.msra.mxu1 %v7247_v8  ;;  %v511_v42 = vshrl.u32 %v403_v38, 16  ;;  %v514_v43 = vshll.u32 %v403_v38, 16  ;;  %v6856_v53 = vld [vmem:[%s9562_s0 + $0x4c] sm:$0xf0]  ;;  %v5778_v54 = vld [vmem:[%s9562_s0 + $0x68] sm:$0xf]  ;;  %vm8509_vm9 = vmand %vm2788_vm8, %vm2549_vm5 }
   0xd   :  { %v495_v46 = vsel %vm7309_vm2, %v490_v34, %v494_v35  ;;  %v509_v47 = vsel %vm7309_vm2, %v504_v36, %v508_v37  ;;  %v6858_v55 = vld [vmem:[%s9562_s0 + $0x6c] sm:$0xf0]  ;;  %v6895_v56 = vld [vmem:[%s9561_s1 + $0xf8] sm:$0xff]  ;;  %v5842_v59 = vld [vmem:[%s9562_s0 + $0x20] sm:$0xf]  ;;  %v527_v63 = vrot.slane %v525_v48, 4 }
   0xe   :  { %200 = vmatpush.bf16.msra.mxu0 %v6868_v10  ;;  %7114 = vmatpush.bf16.msra.mxu3 %v6868_v10  ;;  %v670_v57 = vunpack.c.l.b16 %v495_v46  ;;  %v671_v58 = vunpack.c.l.b16 %v509_v47  ;;  %v6842_v60 = vld [vmem:[%s9562_s0 + $0x24] sm:$0xf0]  ;;  %v513_v61 = vrot.slane %v511_v42, 4  ;;  %v516_v62 = vrot.slane %v514_v43, 5  ;;  %v7369_v3 = vld [vmem:[%s9561_s1] sm:$0xff]  ;;  %v6894_v16 = vld [vmem:[%s9561_s1 + $0xf0] sm:$0xff] }
   0xf   :  { %7130 = vmatpush.bf16.msra.mxu2 %v7263_v14  ;;  %v530_v0 = vrot.slane %v528_v49, 5  ;;  %v404_v6 = vld [vmem:[%s9562_s0 + $0x34] sm:$0x1]  ;;  %v406_v9 = vld [vmem:[%s9562_s0 + $0x3c] sm:$0x1]  ;;  %v5771_v10 = vor.u32 %v6856_v53, %v5770_v52  ;;  %v5779_v11 = vor.u32 %v6858_v55, %v5778_v54  ;;  %v5843_v13 = vor.u32 %v6842_v60, %v5842_v59  ;;  %v6892_v37 = vld [vmem:[%s9561_s1 + $0xe0] sm:$0xff] }
  0x10   :  { %7122 = vmatpush.bf16.msra.mxu1 %v7268_v15  ;;  %v684_v12 = vpack.c.b16 %v671_v58, %v670_v57  ;;  %v517_v17 = vor.u32 %v516_v62, %v513_v61  ;;  %v520_v18 = vshll.u32 %v404_v6, 16  ;;  %v534_v20 = vshll.u32 %v406_v9, 16  ;;  %v407_v21 = vld [vmem:[%s9562_s0 + $0x120] sm:$0xf]  ;;  %v409_v22 = vld [vmem:[%s9562_s0 + $0x128] sm:$0xf]  ;;  %vm8541_vm12 = vmor %vm3496_vm10, %vm3497_vm11 }
  0x11   :  { %v531_v19 = vor.u32 %v530_v0, %v527_v63  ;;  %v539_v29 = vshrl.u32 %v407_v21, 16  ;;  %v542_v30 = vshll.u32 %v407_v21, 16  ;;  %v556_v34 = vshll.u32 %v409_v22, 16  ;;  %v6857_v38 = vld [vmem:[%s9562_s0 + $0x5c] sm:$0xf0]  ;;  %v6891_v6 = vld [vmem:[%s9561_s1 + $0xd8] sm:$0xff] }
  0x12   :  { %201 = vmatpush.bf16.msra.mxu0 %v6867_v24  ;;  %7115 = vmatpush.bf16.msra.mxu3 %v6867_v24  ;;  %v518_v23 = vrot.slane %v517_v17, 4  ;;  %v522_v24 = vrot.slane %v520_v18, 5  ;;  %v536_v28 = vrot.slane %v534_v20, 5  ;;  %v5782_v40 = vld [vmem:[%s9562_s0 + $0x78] sm:$0xf]  ;;  %v6890_v18 = vld [vmem:[%s9561_s1 + $0xd0] sm:$0xff] }
  0x13   :  { %7131 = vmatpush.bf16.msra.mxu2 %v7284_v25  ;;  %v532_v27 = vrot.slane %v531_v19, 4  ;;  %v541_v42 = vrot.slane %v539_v29, 4  ;;  %v544_v43 = vrot.slane %v542_v30, 5  ;;  %v408_v49 = vld [vmem:[%s9562_s0 + $0x124] sm:$0x1] }
  0x14   :  { %7123 = vmatpush.bf16.msra.mxu1 %v7289_v26  ;;  %v523_v35 = vsel %vm7309_vm2, %v518_v23, %v522_v24  ;;  %v5846_v54 = vld [vmem:[%s9562_s0 + $0x30] sm:$0xf]  ;;  %v6843_v55 = vld [vmem:[%s9562_s0 + $0x34] sm:$0xf0]  ;;  %v548_v57 = vshll.u32 %v408_v49, 16 }
  0x15   :  { %v537_v36 = vsel %vm7309_vm2, %v532_v27, %v536_v28  ;;  %v672_v47 = vunpack.c.l.b16 %v523_v35  ;;  %v5847_v61 = vor.u32 %v6843_v55, %v5846_v54  ;;  %v411_v9 = vld [vmem:[%s9562_s0 + $0x130] sm:$0xf]  ;;  %v5834_v20 = vld [vmem:[%s9562_s0] sm:$0xf]  ;;  %v6840_v23 = vld [vmem:[%s9562_s0 + $0x4] sm:$0xf0] }
  0x16   :  { %202 = vmatpush.bf16.msra.mxu0 %v6866_v31  ;;  %7116 = vmatpush.bf16.msra.mxu3 %v6866_v31  ;;  %v553_v31 = vshrl.u32 %v409_v22, 16  ;;  %v673_v48 = vunpack.c.l.b16 %v537_v36  ;;  %v550_v62 = vrot.slane %v548_v57, 5  ;;  %v6860_v19 = vld [vmem:[%s9562_s0 + $0x16c] sm:$0xf0]  ;;  %v5850_v29 = vld [vmem:[%s9562_s0 + $0x120] sm:$0xf]  ;;  %v5835_v35 = vor.u32 %v6840_v23, %v5834_v20 }
  0x17   :  { %7132 = vmatpush.bf16.msra.mxu2 %v7297_v32  ;;  %v6844_v30 = vld [vmem:[%s9562_s0 + $0x124] sm:$0xf0]  ;;  %v6935_v54 = vld [vmem:[%s9561_s1 + $0x1b8] sm:$0xff]  ;;  %v5838_v20 = vld [vmem:[%s9562_s0 + $0x10] sm:$0xf] }
  0x18   :  { %7124 = vmatpush.bf16.msra.mxu1 %v7302_v33  ;;  %v555_v46 = vrot.slane %v553_v31, 4  ;;  %v685_v60 = vpack.c.b16 %v673_v48, %v672_v47  ;;  %v414_v31 = vld [vmem:[%s9562_s0 + $0x13c] sm:$0x1]  ;;  %v6889_v55 = vld [vmem:[%s9561_s1 + $0xc8] sm:$0xff] }
  0x1a   :  { %203 = vmatpush.bf16.msra.mxu0 %v6865_v41  ;;  %7117 = vmatpush.bf16.msra.mxu3 %v6865_v41  ;;  %v6859_v41 = vld [vmem:[%s9562_s0 + $0x7c] sm:$0xf0] }
  0x1b   :  { %7133 = vmatpush.bf16.msra.mxu2 %v7324_v44  ;;  %v5783_v53 = vor.u32 %v6859_v41, %v5782_v40  ;;  %v590_v40 = vshll.u32 %v414_v31, 16  ;;  %v391_v41 = vld [vmem:[%s9562_s0] sm:$0xf] }
  0x1c   :  { %7125 = vmatpush.bf16.msra.mxu1 %v7329_v45  ;;  %v427_v48 = vshrl.u32 %v391_v41, 16 }
  0x1d   :  { %v592_v49 = vrot.slane %v590_v40, 5 }
  0x1e   :  { %204 = vmatpush.bf16.msra.mxu0 %v6864_v50  ;;  %7118 = vmatpush.bf16.msra.mxu3 %v6864_v50  ;;  %v410_v50 = vld [vmem:[%s9562_s0 + $0x12c] sm:$0x1] }
  0x1f   :  { %7134 = vmatpush.bf16.msra.mxu2 %v7341_v51  ;;  %v562_v59 = vshll.u32 %v410_v50, 16  ;;  %v430_v50 = vshll.u32 %v391_v41, 16 }
  0x20   :  { %7126 = vmatpush.bf16.msra.mxu1 %v7369_v3 }
  0x21   :  { %205 = vmatmul.bf16.vlgmr.msra.gmra.mxu0 %v5771_v10  ;;  %215 = vmatmul.bf16.vlgmr.msra.gmra.mxu3 %v5779_v11  ;;  %v564_v0 = vrot.slane %v562_v59, 5  ;;  %v6919_v59 = vld [vmem:[%s9561_s1 + $0x178] sm:$0xff] }
  0x22   :  { %940 = vmatpush.bf16.msrb.mxu3 %v6895_v56  ;;  %342 = vmatpush.bf16.msrb.mxu0 %v7217_v2  ;;  %v6893_v2 = vld [vmem:[%s9561_s1 + $0xe8] sm:$0xff]  ;;  %v545_v56 = vor.u32 %v544_v43, %v541_v42 }
  0x23   :  { %764 = vmatmul.bf16.vlgmr.msra.gmra.mxu2 %v684_v12  ;;  %360 = vmatmul.bf16.vlgmr.msra.gmra.mxu1 %v5843_v13  ;;  %v567_v12 = vshrl.u32 %v411_v9, 16  ;;  %v570_v13 = vshll.u32 %v411_v9, 16  ;;  %v393_v42 = vld [vmem:[%s9562_s0 + $0x8] sm:$0xf] }
  0x24   :  { %v417_v43 = vld [vmem:[%s9562_s0 + $0x148] sm:$0xf]  ;;  %1745 = vmatpush.bf16.msrb.mxu2 %v6935_v54  ;;  %1551 = vmatpush.bf16.msrb.mxu1 %v6919_v59 }
  0x25   :  { %v572_v24 = vrot.slane %v570_v13, 5 }
  0x26   :  { %941 = vmatpush.bf16.msrb.mxu3 %v6894_v16  ;;  %343 = vmatpush.bf16.msrb.mxu0 %v7232_v5  ;;  %v5774_v5 = vld [vmem:[%s9562_s0 + $0x58] sm:$0xf] }
  0x27   :  { %v5775_v52 = vor.u32 %v6857_v38, %v5774_v5  ;;  %v5851_v38 = vor.u32 %v6844_v30, %v5850_v29 }
  0x2a   :  { %942 = vmatpush.bf16.msrb.mxu3 %v6893_v2  ;;  %344 = vmatpush.bf16.msrb.mxu0 %v7247_v8  ;;  %v558_v8 = vrot.slane %v556_v34, 5  ;;  %v412_v2 = vld [vmem:[%s9562_s0 + $0x134] sm:$0x1] }
  0x2b   :  { %v576_v5 = vshll.u32 %v412_v2, 16 }
  0x2c   :  { %v559_v58 = vor.u32 %v558_v8, %v555_v46 }
  0x2d   :  { %v578_v8 = vrot.slane %v576_v5, 5 }
  0x2e   :  { %943 = vmatpush.bf16.msrb.mxu3 %v6892_v37  ;;  %345 = vmatpush.bf16.msrb.mxu0 %v7268_v15  ;;  %v546_v15 = vrot.slane %v545_v56, 4  ;;  %v560_v63 = vrot.slane %v559_v58, 4  ;;  %v612_v58 = vshll.u32 %v417_v43, 16 }
  0x30   :  { %v551_v10 = vsel %vm7309_vm2, %v546_v15, %v550_v62  ;;  %v565_v11 = vsel %vm7309_vm2, %v560_v63, %v564_v0  ;;  %v429_v15 = vrot.slane %v427_v48, 4  ;;  %v392_v63 = vld [vmem:[%s9562_s0 + $0x4] sm:$0x1]  ;;  %v432_v0 = vrot.slane %v430_v50, 5 }
  0x31   :  { %210 = vmatmul.bf16.gmra.mxu0 %v5775_v52  ;;  %220 = vmatmul.bf16.gmra.mxu3 %v5783_v53  ;;  %v674_v21 = vunpack.c.l.b16 %v551_v10  ;;  %v675_v22 = vunpack.c.l.b16 %v565_v11  ;;  %v441_v52 = vshrl.u32 %v393_v42, 16  ;;  %v444_v53 = vshll.u32 %v393_v42, 16  ;;  %v394_v10 = vld [vmem:[%s9562_s0 + $0xc] sm:$0x1]  ;;  %v6932_v48 = vld [vmem:[%s9561_s1 + $0x1a0] sm:$0xff] }
  0x32   :  { %346 = vmatpush.bf16.msrb.mxu0 %v7289_v26  ;;  %944 = vmatpush.bf16.msrb.mxu3 %v6891_v6  ;;  %v413_v26 = vld [vmem:[%s9562_s0 + $0x138] sm:$0xf]  ;;  %v450_v2 = vshll.u32 %v394_v10, 16 }
  0x33   :  { %769 = vmatmul.bf16.gmra.mxu2 %v685_v60  ;;  %365 = vmatmul.bf16.gmra.mxu1 %v5847_v61  ;;  %v581_v16 = vshrl.u32 %v413_v26, 16  ;;  %v584_v17 = vshll.u32 %v413_v26, 16  ;;  %v686_v36 = vpack.c.b16 %v675_v22, %v674_v21  ;;  %v6934_v60 = vld [vmem:[%s9561_s1 + $0x1b0] sm:$0xff]  ;;  %v443_v6 = vrot.slane %v441_v52, 4  ;;  %v6841_v21 = vld [vmem:[%s9562_s0 + $0x14] sm:$0xf0] }
  0x34   :  { %v446_v9 = vrot.slane %v444_v53, 5  ;;  %v6918_v26 = vld [vmem:[%s9561_s1 + $0x170] sm:$0xff]  ;;  %1746 = vmatpush.bf16.msrb.mxu2 %v6934_v60  ;;  %v452_v41 = vrot.slane %v450_v2, 5  ;;  %v421_v52 = vld [vmem:[%s9562_s0 + $0x158] sm:$0xf] }
  0x35   :  { %v583_v27 = vrot.slane %v581_v16, 4  ;;  %v586_v28 = vrot.slane %v584_v17, 5  ;;  %v614_v16 = vrot.slane %v612_v58, 5  ;;  %v416_v17 = vld [vmem:[%s9562_s0 + $0x144] sm:$0x1]  ;;  %1552 = vmatpush.bf16.msrb.mxu1 %v6918_v26 }
  0x36   :  { %347 = vmatpush.bf16.msrb.mxu0 %v7302_v33  ;;  %945 = vmatpush.bf16.msrb.mxu3 %v6890_v18  ;;  %v5786_v33 = vld [vmem:[%s9562_s0 + $0x168] sm:$0xf]  ;;  %v418_v18 = vld [vmem:[%s9562_s0 + $0x14c] sm:$0x1]  ;;  %v604_v30 = vshll.u32 %v416_v17, 16 }
  0x37   :  { %v5787_v34 = vor.u32 %v6860_v19, %v5786_v33  ;;  %v6933_v33 = vld [vmem:[%s9561_s1 + $0x1a8] sm:$0xff]  ;;  %v6861_v19 = vld [vmem:[%s9562_s0 + $0x17c] sm:$0xf0] }
  0x38   :  { %1747 = vmatpush.bf16.msrb.mxu2 %v6933_v33  ;;  %v6846_v2 = vld [vmem:[%s9562_s0 + $0x144] sm:$0xf0] }
  0x3a   :  { %348 = vmatpush.bf16.msrb.mxu0 %v7329_v45  ;;  %v569_v45 = vrot.slane %v567_v12, 4  ;;  %946 = vmatpush.bf16.msrb.mxu3 %v6889_v55 }
  0x3c   :  { %v573_v37 = vor.u32 %v572_v24, %v569_v45  ;;  %v5854_v45 = vld [vmem:[%s9562_s0 + $0x130] sm:$0xf]  ;;  %v433_v24 = vor.u32 %v432_v0, %v429_v15  ;;  %1748 = vmatpush.bf16.msrb.mxu2 %v6932_v48  ;;  %v5794_v0 = vld [vmem:[%s9562_s0 + $0x188] sm:$0xf]  ;;  %v6928_v48 = vld [vmem:[%s9561_s1 + $0x180] sm:$0xff] }
  0x3e   :  { %349 = vmatpush.bf16.msrb.mxu0 %v7369_v3  ;;  %v587_v3 = vor.u32 %v586_v28, %v583_v27  ;;  %v574_v46 = vrot.slane %v573_v37, 4  ;;  %v436_v27 = vshll.u32 %v392_v63, 16  ;;  %v447_v28 = vor.u32 %v446_v9, %v443_v6  ;;  %v6862_v6 = vld [vmem:[%s9562_s0 + $0x18c] sm:$0xf0]  ;;  %v6911_v9 = vld [vmem:[%s9561_s1 + $0x138] sm:$0xff] }
  0x3f   :  { %v640_v63 = vshll.u32 %v421_v52, 16 }
  0x40   :  { %v588_v47 = vrot.slane %v587_v3, 4  ;;  %v579_v61 = vsel %vm7309_vm2, %v574_v46, %v578_v8  ;;  %v434_v3 = vrot.slane %v433_v24, 4  ;;  %v448_v40 = vrot.slane %v447_v28, 4  ;;  %v395_v8 = vld [vmem:[%s9562_s0 + $0x10] sm:$0xf] }
  0x41   :  { %225 = vmatmul.bf16.gmra.mxu3 %v5787_v34  ;;  %350 = vmatmul.bf16.vlgmr.msrb.gmra.mxu0 %v5835_v35  ;;  %v676_v22 = vunpack.c.l.b16 %v579_v61  ;;  %v618_v34 = vshll.u32 %v418_v18, 16  ;;  %v458_v58 = vshll.u32 %v395_v8, 16  ;;  %v5858_v24 = vld [vmem:[%s9562_s0 + $0x140] sm:$0xf] }
  0x42   :  { %746 = vmatpush.bf16.msra.mxu0 %v7212_v1  ;;  %v415_v1 = vld [vmem:[%s9562_s0 + $0x140] sm:$0xf]  ;;  %v593_v62 = vsel %vm7309_vm2, %v588_v47, %v592_v49  ;;  %v6917_v47 = vld [vmem:[%s9561_s1 + $0x168] sm:$0xff]  ;;  %v453_v53 = vsel %vm7309_vm2, %v448_v40, %v452_v41  ;;  %v5859_v41 = vor.u32 %v6846_v2, %v5858_v24 }
  0x43   :  { %774 = vmatmul.bf16.gmra.mxu2 %v686_v36  ;;  %370 = vmatmul.bf16.gmra.mxu1 %v5851_v38  ;;  %v595_v56 = vshrl.u32 %v415_v1, 16  ;;  %v598_v57 = vshll.u32 %v415_v1, 16  ;;  %v677_v23 = vunpack.c.l.b16 %v593_v62  ;;  %v5839_v36 = vor.u32 %v6841_v21, %v5838_v20  ;;  %v6888_v49 = vld [vmem:[%s9561_s1 + $0xc0] sm:$0xff]  ;;  %v420_v20 = vld [vmem:[%s9562_s0 + $0x154] sm:$0x1] }
  0x44   :  { %v438_v38 = vrot.slane %v436_v27, 5  ;;  %v606_v1 = vrot.slane %v604_v30, 5  ;;  %v620_v46 = vrot.slane %v618_v34, 5  ;;  %1553 = vmatpush.bf16.msrb.mxu1 %v6917_v47  ;;  %947 = vmatpush.bf16.msrb.mxu3 %v6888_v49  ;;  %v637_v62 = vshrl.u32 %v421_v52, 16  ;;  %v6914_v30 = vld [vmem:[%s9561_s1 + $0x150] sm:$0xff]  ;;  %v6913_v47 = vld [vmem:[%s9561_s1 + $0x148] sm:$0xff] }
  0x45   :  { %v597_v11 = vrot.slane %v595_v56, 4  ;;  %v600_v12 = vrot.slane %v598_v57, 5  ;;  %v687_v37 = vpack.c.b16 %v677_v23, %v676_v22  ;;  %v6916_v56 = vld [vmem:[%s9561_s1 + $0x160] sm:$0xff]  ;;  %v6931_v57 = vld [vmem:[%s9561_s1 + $0x198] sm:$0xff]  ;;  %v460_v18 = vrot.slane %v458_v58, 5 }
  0x46   :  { %747 = vmatpush.bf16.msra.mxu0 %v7227_v4  ;;  %v609_v4 = vshrl.u32 %v417_v43, 16  ;;  %v439_v50 = vsel %vm7309_vm2, %v434_v3, %v438_v38  ;;  %1749 = vmatpush.bf16.msrb.mxu2 %v6931_v57  ;;  %v639_v23 = vrot.slane %v637_v62, 4  ;;  %v5795_v27 = vor.u32 %v6862_v6, %v5794_v0  ;;  %v5798_v0 = vld [vmem:[%s9562_s0 + $0x198] sm:$0xf]  ;;  %v6904_v2 = vld [vmem:[%s9561_s1 + $0x100] sm:$0xff] }
  0x47   :  { %v601_v29 = vor.u32 %v600_v12, %v597_v11  ;;  %v666_v26 = vunpack.c.l.b16 %v439_v50  ;;  %v396_v11 = vld [vmem:[%s9562_s0 + $0x14] sm:$0x1]  ;;  %v6915_v12 = vld [vmem:[%s9561_s1 + $0x158] sm:$0xff] }
  0x48   :  { %v611_v13 = vrot.slane %v609_v4, 4  ;;  %v455_v4 = vshrl.u32 %v395_v8, 16  ;;  %1554 = vmatpush.bf16.msrb.mxu1 %v6916_v56  ;;  %v6090_v56 = vld [vmem:[%s9562_s0 + $0x98] sm:$0xf] }
  0x49   :  { %v602_v42 = vrot.slane %v601_v29, 4  ;;  %v464_v29 = vshll.u32 %v396_v11, 16  ;;  %v1246_v62 = vshrl.u32 %v6090_v56, 16  ;;  %v5862_v11 = vld [vmem:[%s9562_s0 + $0x150] sm:$0xf] }
  0x4a   :  { %748 = vmatpush.bf16.msra.mxu0 %v7242_v7  ;;  %v5790_v7 = vld [vmem:[%s9562_s0 + $0x178] sm:$0xf]  ;;  %v615_v31 = vor.u32 %v614_v16, %v611_v13  ;;  %v6930_v13 = vld [vmem:[%s9561_s1 + $0x190] sm:$0xff]  ;;  %v398_v16 = vld [vmem:[%s9562_s0 + $0x1c] sm:$0x1]  ;;  %v457_v17 = vrot.slane %v455_v4, 4 }
  0x4b   :  { %v5791_v35 = vor.u32 %v6861_v19, %v5790_v7  ;;  %v607_v54 = vsel %vm7309_vm2, %v602_v42, %v606_v1  ;;  %v667_v7 = vunpack.c.l.b16 %v453_v53  ;;  %1750 = vmatpush.bf16.msrb.mxu2 %v6930_v13  ;;  %v6909_v42 = vld [vmem:[%s9561_s1 + $0x128] sm:$0xff]  ;;  %v466_v1 = vrot.slane %v464_v29, 5  ;;  %v6908_v53 = vld [vmem:[%s9561_s1 + $0x120] sm:$0xff] }
  0x4c   :  { %v616_v43 = vrot.slane %v615_v31, 4  ;;  %v678_v10 = vunpack.c.l.b16 %v607_v54  ;;  %1555 = vmatpush.bf16.msrb.mxu1 %v6915_v12  ;;  %v6929_v31 = vld [vmem:[%s9561_s1 + $0x188] sm:$0xff]  ;;  %v6912_v54 = vld [vmem:[%s9561_s1 + $0x140] sm:$0xff]  ;;  %v6847_v12 = vld [vmem:[%s9562_s0 + $0x154] sm:$0xf0] }
  0x4d   :  { %v682_v28 = vpack.c.b16 %v667_v7, %v666_v26  ;;  %v6863_v26 = vld [vmem:[%s9562_s0 + $0x19c] sm:$0xf0] }
  0x4e   :  { %749 = vmatpush.bf16.msra.mxu0 %v7263_v14  ;;  %v6845_v14 = vld [vmem:[%s9562_s0 + $0x134] sm:$0xf0]  ;;  %v621_v55 = vsel %vm7309_vm2, %v616_v43, %v620_v46 }
  0x4f   :  { %v5855_v5 = vor.u32 %v6845_v14, %v5854_v45  ;;  %v642_v45 = vrot.slane %v640_v63, 5  ;;  %v6910_v14 = vld [vmem:[%s9561_s1 + $0x130] sm:$0xff]  ;;  %1751 = vmatpush.bf16.msrb.mxu2 %v6929_v31  ;;  %v1249_v63 = vshll.u32 %v6090_v56, 16 }
  0x50   :  { %1556 = vmatpush.bf16.msrb.mxu1 %v6914_v30 }
  0x51   :  { %230 = vmatmul.bf16.gmra.mxu3 %v5791_v35  ;;  %355 = vmatmul.bf16.gmra.mxu0 %v5839_v36  ;;  %v461_v35 = vor.u32 %v460_v18, %v457_v17  ;;  %v478_v36 = vshll.u32 %v398_v16, 16  ;;  %v643_v38 = vor.u32 %v642_v45, %v639_v23  ;;  %v1248_v17 = vrot.slane %v1246_v62, 4  ;;  %v6905_v45 = vld [vmem:[%s9561_s1 + $0x108] sm:$0xff] }
  0x52   :  { %750 = vmatpush.bf16.msra.mxu0 %v7284_v25  ;;  %v397_v25 = vld [vmem:[%s9562_s0 + $0x18] sm:$0xf]  ;;  %v1251_v18 = vrot.slane %v1249_v63, 5  ;;  %v5863_v23 = vor.u32 %v6847_v12, %v5862_v11  ;;  %v6949_v63 = vld [vmem:[%s9561_s1 + $0x1e8] sm:$0xff] }
  0x53   :  { %779 = vmatmul.bf16.gmra.mxu2 %v687_v37  ;;  %375 = vmatmul.bf16.gmra.mxu1 %v5855_v5  ;;  %v469_v59 = vshrl.u32 %v397_v25, 16  ;;  %v472_v60 = vshll.u32 %v397_v25, 16  ;;  %v632_v37 = vshll.u32 %v420_v20, 16  ;;  %v462_v43 = vrot.slane %v461_v35, 4  ;;  %v6951_v25 = vld [vmem:[%s9561_s1 + $0x1f8] sm:$0xff] }
  0x54   :  { %v480_v46 = vrot.slane %v478_v36, 5  ;;  %1939 = vmatpush.bf16.msra.mxu3 %v6951_v25  ;;  %1557 = vmatpush.bf16.msrb.mxu1 %v6913_v47  ;;  %v5799_v20 = vor.u32 %v6863_v26, %v5798_v0  ;;  %v6959_v35 = vld [vmem:[%s9561_s1 + $0x238] sm:$0xff]  ;;  %v6092_v36 = vld [vmem:[%s9562_s0 + $0xa0] sm:$0xf]  ;;  %v6170_v47 = vld [vmem:[%s9562_s0 + $0x8] sm:$0xf] }
  0x55   :  { %v471_v33 = vrot.slane %v469_v59, 4  ;;  %v474_v19 = vrot.slane %v472_v60, 5  ;;  %v634_v8 = vrot.slane %v632_v37, 5  ;;  %1752 = vmatpush.bf16.msrb.mxu2 %v6928_v48  ;;  %v467_v57 = vsel %vm7309_vm2, %v462_v43, %v466_v1  ;;  %v6907_v60 = vld [vmem:[%s9561_s1 + $0x118] sm:$0xff]  ;;  %v6094_v37 = vld [vmem:[%s9562_s0 + $0xa8] sm:$0xf] }
  0x56   :  { %751 = vmatpush.bf16.msra.mxu0 %v7297_v32  ;;  %v419_v32 = vld [vmem:[%s9562_s0 + $0x150] sm:$0xf]  ;;  %v668_v6 = vunpack.c.l.b16 %v467_v57  ;;  %v1277_v1 = vshll.u32 %v6094_v37, 16  ;;  %v6896_v25 = vld [vmem:[%s9562_s0 + $0xdc] sm:$0xf0] }
  0x57   :  { %v623_v61 = vshrl.u32 %v419_v32, 16  ;;  %v626_v15 = vshll.u32 %v419_v32, 16  ;;  %v475_v5 = vor.u32 %v474_v19, %v471_v33  ;;  %v644_v32 = vrot.slane %v643_v38, 4  ;;  %v6089_v33 = vld [vmem:[%s9562_s0 + $0x94] sm:$0x1] }
  0x58   :  { %1558 = vmatpush.bf16.msrb.mxu1 %v6912_v54  ;;  %v6091_v19 = vld [vmem:[%s9562_s0 + $0x9c] sm:$0x1]  ;;  %v1241_v24 = vshll.u32 %v6089_v33, 16  ;;  %v6958_v38 = vld [vmem:[%s9561_s1 + $0x230] sm:$0xff]  ;;  %v1279_v54 = vrot.slane %v1277_v1, 5 }
  0x59   :  { %v625_v21 = vrot.slane %v623_v61, 4  ;;  %v628_v22 = vrot.slane %v626_v15, 5  ;;  %v476_v49 = vrot.slane %v475_v5, 4  ;;  %v5946_v43 = vld [vmem:[%s9562_s0 + $0x90] sm:$0xf] }
  0x5a   :  { %752 = vmatpush.bf16.msra.mxu0 %v7324_v44  ;;  %v679_v44 = vunpack.c.l.b16 %v621_v55  ;;  %v6088_v55 = vld [vmem:[%s9562_s0 + $0x90] sm:$0xf]  ;;  %v1243_v30 = vrot.slane %v1241_v24, 5  ;;  %v6093_v57 = vld [vmem:[%s9562_s0 + $0xa4] sm:$0x1] }
  0x5b   :  { %v629_v3 = vor.u32 %v628_v22, %v625_v21  ;;  %v481_v4 = vsel %vm7309_vm2, %v476_v49, %v480_v46  ;;  %v1232_v61 = vshrl.u32 %v6088_v55, 16  ;;  %v1235_v15 = vshll.u32 %v6088_v55, 16  ;;  %v6880_v46 = vld [vmem:[%s9562_s0 + $0x94] sm:$0xf0]  ;;  %v6920_v48 = vld [vmem:[%s9562_s0 + $0xc] sm:$0xf0] }
  0x5c   :  { %v688_v34 = vpack.c.b16 %v679_v44, %v678_v10  ;;  %v6906_v44 = vld [vmem:[%s9561_s1 + $0x110] sm:$0xff]  ;;  %v5947_v55 = vor.u32 %v6880_v46, %v5946_v43  ;;  %v6100_v43 = vld [vmem:[%s9562_s0 + $0xc0] sm:$0xf]  ;;  %v6102_v46 = vld [vmem:[%s9562_s0 + $0xc8] sm:$0xf] }
  0x5d   :  { %v630_v50 = vrot.slane %v629_v3, 4  ;;  %v1234_v13 = vrot.slane %v1232_v61, 4  ;;  %v1237_v16 = vrot.slane %v1235_v15, 5  ;;  %v1269_v61 = vshll.u32 %v6093_v57, 16  ;;  %v6096_v0 = vld [vmem:[%s9562_s0 + $0xb0] sm:$0xf] }
  0x5e   :  { %753 = vmatpush.bf16.msra.mxu0 %v7341_v51  ;;  %v422_v51 = vld [vmem:[%s9562_s0 + $0x15c] sm:$0x1]  ;;  %v1291_v11 = vshll.u32 %v6096_v0, 16  ;;  %v6178_v57 = vld [vmem:[%s9562_s0 + $0x28] sm:$0xf] }
  0x5f   :  { %v646_v40 = vshll.u32 %v422_v51, 16  ;;  %v635_v58 = vsel %vm7309_vm2, %v630_v50, %v634_v8  ;;  %v1252_v51 = vor.u32 %v1251_v18, %v1248_v17  ;;  %v6026_v8 = vld [vmem:[%s9562_s0 + $0xd8] sm:$0xf]  ;;  %v1271_v26 = vrot.slane %v1269_v61, 5  ;;  %v5950_v17 = vld [vmem:[%s9562_s0 + $0xa0] sm:$0xf] }
  0x60   :  { %v680_v7 = vunpack.c.l.b16 %v635_v58  ;;  %v7718_v56 = vor.u32 %v6896_v25, %v6026_v8  ;;  %v6171_v58 = vor.u32 %v6920_v48, %v6170_v47  ;;  %v6881_v18 = vld [vmem:[%s9562_s0 + $0xa4] sm:$0xf0]  ;;  %v6956_v47 = vld [vmem:[%s9561_s1 + $0x220] sm:$0xff]  ;;  %v1316_v48 = vshrl.u32 %v6100_v43, 16 }
  0x61   :  { %235 = vmatmul.bf16.gmra.mxu3 %v5795_v27  ;;  %754 = vmatmul.bf16.vlgmr.msra.gmra.mxu0 %v682_v28  ;;  %v648_v52 = vrot.slane %v646_v40, 5  ;;  %v1255_v27 = vshll.u32 %v6091_v19, 16  ;;  %v6950_v28 = vld [vmem:[%s9561_s1 + $0x1f0] sm:$0xff]  ;;  %v1253_v31 = vrot.slane %v1252_v51, 4  ;;  %v1260_v40 = vshrl.u32 %v6092_v36, 16 }
  0x62   :  { %1134 = vmatpush.bf16.msrb.mxu0 %v6911_v9  ;;  %v669_v9 = vunpack.c.l.b16 %v481_v4  ;;  %1940 = vmatpush.bf16.msra.mxu3 %v6950_v28  ;;  %v6095_v4 = vld [vmem:[%s9562_s0 + $0xac] sm:$0x1] }
  0x63   :  { %784 = vmatmul.bf16.gmra.mxu2 %v688_v34  ;;  %380 = vmatmul.bf16.gmra.mxu1 %v5859_v41  ;;  %v649_v59 = vsel %vm7309_vm2, %v644_v32, %v648_v52  ;;  %v1257_v34 = vrot.slane %v1255_v27, 5  ;;  %v1263_v41 = vshll.u32 %v6092_v36, 16  ;;  %v1262_v32 = vrot.slane %v1260_v40, 4 }
  0x64   :  { %v681_v10 = vunpack.c.l.b16 %v649_v59  ;;  %v683_v21 = vpack.c.b16 %v669_v9, %v668_v6  ;;  %v1283_v62 = vshll.u32 %v6095_v4, 16  ;;  %v6098_v6 = vld [vmem:[%s9562_s0 + $0xb8] sm:$0xf] }
  0x65   :  { %v1258_v3 = vsel %vm7309_vm2, %v1253_v31, %v1257_v34  ;;  %v1265_v52 = vrot.slane %v1263_v41, 5  ;;  %v1302_v12 = vshrl.u32 %v6098_v6, 16 }
  0x66   :  { %1135 = vmatpush.bf16.msrb.mxu0 %v6910_v14  ;;  %v689_v22 = vpack.c.b16 %v681_v10, %v680_v7  ;;  %v1238_v14 = vor.u32 %v1237_v16, %v1234_v13  ;;  %v1472_v50 = vunpack.c.l.b16 %v1258_v3  ;;  %1941 = vmatpush.bf16.msra.mxu3 %v6949_v63  ;;  %v1285_v10 = vrot.slane %v1283_v62, 5  ;;  %v6957_v16 = vld [vmem:[%s9561_s1 + $0x228] sm:$0xff]  ;;  %v6101_v63 = vld [vmem:[%s9562_s0 + $0xc4] sm:$0x1] }
  0x67   :  { %v1305_v13 = vshll.u32 %v6098_v6, 16  ;;  %v1304_v24 = vrot.slane %v1302_v12, 4 }
  0x68   :  { %v1239_v29 = vrot.slane %v1238_v14, 4  ;;  %v1293_v14 = vrot.slane %v1291_v11, 5  ;;  %v1325_v11 = vshll.u32 %v6101_v63, 16  ;;  %v6108_v63 = vld [vmem:[%s9562_s0 + $0x1c0] sm:$0xf] }
  0x69   :  { %v1307_v51 = vrot.slane %v1305_v13, 5 }
  0x6a   :  { %1136 = vmatpush.bf16.msrb.mxu0 %v6909_v42  ;;  %v1244_v5 = vsel %vm7309_vm2, %v1239_v29, %v1243_v30  ;;  %v1274_v42 = vshrl.u32 %v6094_v37, 16  ;;  %v6099_v29 = vld [vmem:[%s9562_s0 + $0xbc] sm:$0x1]  ;;  %v5951_v30 = vor.u32 %v6881_v18, %v5950_v17 }
  0x6b   :  { %v1471_v49 = vunpack.c.l.b16 %v1244_v5  ;;  %v1308_v37 = vor.u32 %v1307_v51, %v1304_v24  ;;  %v1311_v5 = vshll.u32 %v6099_v29, 16  ;;  %v6947_v17 = vld [vmem:[%s9561_s1 + $0x1d8] sm:$0xff] }
  0x6d   :  { %v1487_v59 = vpack.c.b16 %v1472_v50, %v1471_v49  ;;  %v1313_v1 = vrot.slane %v1311_v5, 5  ;;  %v1319_v49 = vshll.u32 %v6100_v43, 16  ;;  %v1330_v50 = vshrl.u32 %v6102_v46, 16  ;;  %v6883_v5 = vld [vmem:[%s9562_s0 + $0xc4] sm:$0xf0] }
  0x6e   :  { %1137 = vmatpush.bf16.msrb.mxu0 %v6908_v53  ;;  %v1276_v53 = vrot.slane %v1274_v42, 4  ;;  %v1309_v42 = vrot.slane %v1308_v37, 4  ;;  %v5958_v37 = vld [vmem:[%s9562_s0 + $0xc0] sm:$0xf] }
  0x6f   :  { %v1321_v61 = vrot.slane %v1319_v49, 5 }
  0x70   :  { %v1280_v15 = vor.u32 %v1279_v54, %v1276_v53  ;;  %v1314_v25 = vsel %vm7309_vm2, %v1309_v42, %v1313_v1  ;;  %v6882_v53 = vld [vmem:[%s9562_s0 + $0xb4] sm:$0xf0] }
  0x71   :  { %240 = vmatmul.bf16.gmra.mxu3 %v5799_v20  ;;  %759 = vmatmul.bf16.gmra.mxu0 %v683_v21  ;;  %v6030_v20 = vld [vmem:[%s9562_s0 + $0xe8] sm:$0xf]  ;;  %v6897_v21 = vld [vmem:[%s9562_s0 + $0xec] sm:$0xf0]  ;;  %v6034_v54 = vld [vmem:[%s9562_s0 + $0xf8] sm:$0xf] }
  0x72   :  { %1138 = vmatpush.bf16.msrb.mxu0 %v6907_v60  ;;  %v1266_v60 = vor.u32 %v1265_v52, %v1262_v32  ;;  %v1281_v7 = vrot.slane %v1280_v15, 4  ;;  %v7767_v31 = vor.u32 %v6897_v21, %v6030_v20  ;;  %v1333_v32 = vshll.u32 %v6102_v46, 16  ;;  %v5954_v52 = vld [vmem:[%s9562_s0 + $0xb0] sm:$0xf] }
  0x73   :  { %789 = vmatmul.bf16.gmra.mxu2 %v689_v22  ;;  %385 = vmatmul.bf16.gmra.mxu1 %v5863_v23  ;;  %v6174_v22 = vld [vmem:[%s9562_s0 + $0x18] sm:$0xf]  ;;  %v6921_v23 = vld [vmem:[%s9562_s0 + $0x1c] sm:$0xf0]  ;;  %v1332_v15 = vrot.slane %v1330_v50, 4  ;;  %v5955_v6 = vor.u32 %v6882_v53, %v5954_v52  ;;  %v5959_v50 = vor.u32 %v6883_v5, %v5958_v37 }
  0x74   :  { %v1267_v9 = vrot.slane %v1266_v60, 4  ;;  %v1286_v19 = vsel %vm7309_vm2, %v1281_v7, %v1285_v10  ;;  %v6175_v34 = vor.u32 %v6921_v23, %v6174_v22  ;;  %v1318_v60 = vrot.slane %v1316_v48, 4  ;;  %v6105_v52 = vld [vmem:[%s9562_s0 + $0x1b4] sm:$0x1]  ;;  %v6107_v53 = vld [vmem:[%s9562_s0 + $0x1bc] sm:$0x1] }
  0x75   :  { %v1474_v28 = vunpack.c.l.b16 %v1286_v19  ;;  %v1335_v62 = vrot.slane %v1333_v32, 5 }
  0x76   :  { %1139 = vmatpush.bf16.msrb.mxu0 %v6906_v44  ;;  %v1288_v44 = vshrl.u32 %v6096_v0, 16  ;;  %v1272_v33 = vsel %vm7309_vm2, %v1267_v9, %v1271_v26  ;;  %v6103_v0 = vld [vmem:[%s9562_s0 + $0xcc] sm:$0x1] }
  0x77   :  { %v1473_v27 = vunpack.c.l.b16 %v1272_v33  ;;  %v1336_v12 = vor.u32 %v1335_v62, %v1332_v15  ;;  %v1339_v13 = vshll.u32 %v6103_v0, 16  ;;  %v1327_v33 = vrot.slane %v1325_v11, 5  ;;  %v6946_v62 = vld [vmem:[%s9561_s1 + $0x1d0] sm:$0xff]  ;;  %v6110_v0 = vld [vmem:[%s9562_s0 + $0x1c8] sm:$0xf] }
  0x78   :  { %v1367_v15 = vshll.u32 %v6107_v53, 16 }
  0x79   :  { %v1488_v3 = vpack.c.b16 %v1474_v28, %v1473_v27  ;;  %v1337_v19 = vrot.slane %v1336_v12, 4  ;;  %v1341_v20 = vrot.slane %v1339_v13, 5 }
  0x7a   :  { %1140 = vmatpush.bf16.msrb.mxu0 %v6905_v45  ;;  %v1290_v45 = vrot.slane %v1288_v44, 4  ;;  %v1322_v44 = vor.u32 %v1321_v61, %v1318_v60  ;;  %v1353_v60 = vshll.u32 %v6105_v52, 16  ;;  %v1369_v11 = vrot.slane %v1367_v15, 5 }
  0x7b   :  { %v1342_v28 = vsel %vm7309_vm2, %v1337_v19, %v1341_v20  ;;  %v1389_v19 = vshll.u32 %v6110_v0, 16 }
  0x7c   :  { %v1323_v18 = vrot.slane %v1322_v44, 4  ;;  %v1478_v1 = vunpack.c.l.b16 %v1342_v28  ;;  %v6042_v28 = vld [vmem:[%s9562_s0 + $0x1f8] sm:$0xf] }
  0x7d   :  { %v1391_v37 = vrot.slane %v1389_v19, 5 }
  0x7e   :  { %1141 = vmatpush.bf16.msrb.mxu0 %v6904_v2  ;;  %v6097_v2 = vld [vmem:[%s9562_s0 + $0xb4] sm:$0x1]  ;;  %v1328_v27 = vsel %vm7309_vm2, %v1323_v18, %v1327_v33  ;;  %v1375_v18 = vshll.u32 %v6108_v63, 16  ;;  %v1386_v33 = vshrl.u32 %v6110_v0, 16 }
  0x7f   :  { %v1297_v36 = vshll.u32 %v6097_v2, 16  ;;  %v6955_v2 = vld [vmem:[%s9561_s1 + $0x218] sm:$0xff]  ;;  %v1477_v42 = vunpack.c.l.b16 %v1328_v27 }
  0x81   :  { %948 = vmatmul.bf16.vlgmr.msrb.gmra.mxu3 %v5947_v55  ;;  %1142 = vmatmul.bf16.vlgmr.msrb.gmra.mxu0 %v7718_v56  ;;  %v1299_v41 = vrot.slane %v1297_v36, 5  ;;  %v6898_v55 = vld [vmem:[%s9562_s0 + $0xfc] sm:$0xf0] }
  0x82   :  { %2356 = vmatpush.bf16.msra.mxu0 %v6959_v35  ;;  %v1294_v35 = vor.u32 %v1293_v14, %v1290_v45  ;;  %v7810_v9 = vor.u32 %v6898_v55, %v6034_v54  ;;  %v6104_v45 = vld [vmem:[%s9562_s0 + $0x1b0] sm:$0xf]  ;;  %v6106_v14 = vld [vmem:[%s9562_s0 + $0x1b8] sm:$0xf] }
  0x83   :  { %1753 = vmatmul.bf16.vlgmr.msrb.gmra.mxu2 %v6171_v58  ;;  %1559 = vmatmul.bf16.vlgmr.msrb.gmra.mxu1 %v1487_v59  ;;  %v1476_v58 = vunpack.c.l.b16 %v1314_v25  ;;  %v6922_v59 = vld [vmem:[%s9562_s0 + $0x2c] sm:$0xf0]  ;;  %v1361_v36 = vshll.u32 %v6106_v14, 16 }
  0x84   :  { %v1295_v40 = vrot.slane %v1294_v35, 4  ;;  %9582 = vst [vmem:[#allocation3_spill] sm:$0xff] %v7810_v9  ;;  %v6179_v7 = vor.u32 %v6922_v59, %v6178_v57  ;;  %v1358_v35 = vshrl.u32 %v6106_v14, 16 }
  0x86   :  { %2357 = vmatpush.bf16.msra.mxu0 %v6958_v38  ;;  %v6948_v38 = vld [vmem:[%s9561_s1 + $0x1e0] sm:$0xff]  ;;  %v1300_v8 = vsel %vm7309_vm2, %v1295_v40, %v1299_v41  ;;  %v6182_v40 = vld [vmem:[%s9562_s0 + $0x38] sm:$0xf]  ;;  %v1360_v25 = vrot.slane %v1358_v35, 4  ;;  %v1377_v35 = vrot.slane %v1375_v18, 5  ;;  %v6953_v18 = vld [vmem:[%s9561_s1 + $0x208] sm:$0xff] }
  0x87   :  { %1942 = vmatpush.bf16.msra.mxu3 %v6948_v38  ;;  %v1475_v4 = vunpack.c.l.b16 %v1300_v8  ;;  %v6899_v38 = vld [vmem:[%s9562_s0 + $0x10c] sm:$0xf0]  ;;  %v6923_v41 = vld [vmem:[%s9562_s0 + $0x3c] sm:$0xf0] }
  0x88   :  { %v6183_v55 = vor.u32 %v6923_v41, %v6182_v40  ;;  %v6111_v40 = vld [vmem:[%s9562_s0 + $0x1cc] sm:$0x1] }
  0x89   :  { %v1489_v10 = vpack.c.b16 %v1476_v58, %v1475_v4  ;;  %v1490_v4 = vpack.c.b16 %v1478_v1, %v1477_v42 }
  0x8a   :  { %2358 = vmatpush.bf16.msra.mxu0 %v6957_v16 }
  0x8b   :  { %1943 = vmatpush.bf16.msra.mxu3 %v6947_v17  ;;  %v1372_v17 = vshrl.u32 %v6108_v63, 16  ;;  %v6114_v63 = vld [vmem:[%s9562_s0 + $0x1d8] sm:$0xf] }
  0x8c   :  { %v1417_v19 = vshll.u32 %v6114_v63, 16 }
  0x8e   :  { %2359 = vmatpush.bf16.msra.mxu0 %v6956_v47  ;;  %v1363_v47 = vrot.slane %v1361_v36, 5  ;;  %v1388_v36 = vrot.slane %v1386_v33, 4  ;;  %v1414_v33 = vshrl.u32 %v6114_v63, 16 }
  0x8f   :  { %1944 = vmatpush.bf16.msra.mxu3 %v6946_v62 }
  0x90   :  { %v1364_v61 = vor.u32 %v1363_v47, %v1360_v25 }
  0x91   :  { %953 = vmatmul.bf16.gmra.mxu3 %v5951_v30  ;;  %1147 = vmatmul.bf16.gmra.mxu0 %v7767_v31  ;;  %v1344_v30 = vshrl.u32 %v6104_v45, 16 }
  0x92   :  { %2360 = vmatpush.bf16.msra.mxu0 %v6955_v2  ;;  %v1365_v44 = vrot.slane %v1364_v61, 4  ;;  %v6900_v2 = vld [vmem:[%s9562_s0 + $0x1fc] sm:$0xf0] }
  0x93   :  { %1758 = vmatmul.bf16.gmra.mxu2 %v6175_v34  ;;  %1564 = vmatmul.bf16.gmra.mxu1 %v1488_v3  ;;  %v1347_v34 = vshll.u32 %v6104_v45, 16  ;;  %v6038_v3 = vld [vmem:[%s9562_s0 + $0x108] sm:$0xf]  ;;  %v1346_v46 = vrot.slane %v1344_v30, 4  ;;  %v6884_v45 = vld [vmem:[%s9562_s0 + $0x1b4] sm:$0xf0] }
  0x94   :  { %v7853_v32 = vor.u32 %v6899_v38, %v6038_v3  ;;  %v1370_v27 = vsel %vm7309_vm2, %v1365_v44, %v1369_v11  ;;  %v6924_v30 = vld [vmem:[%s9562_s0 + $0x12c] sm:$0xf0]  ;;  %v6109_v38 = vld [vmem:[%s9562_s0 + $0x1c4] sm:$0x1] }
  0x95   :  { %v1349_v8 = vrot.slane %v1347_v34, 5  ;;  %v1374_v34 = vrot.slane %v1372_v17, 4  ;;  %v1480_v3 = vunpack.c.l.b16 %v1370_v27  ;;  %v6925_v27 = vld [vmem:[%s9562_s0 + $0x13c] sm:$0xf0] }
  0x96   :  { %9583 = vst [vmem:[#allocation4_spill] sm:$0xff] %v7853_v32 }
  0x97   :  { %v1350_v59 = vor.u32 %v1349_v8, %v1346_v46  ;;  %v7910_v46 = vor.u32 %v6900_v2, %v6042_v28  ;;  %v1378_v47 = vor.u32 %v1377_v35, %v1374_v34  ;;  %v1416_v35 = vrot.slane %v1414_v33, 4 }
  0x99   :  { %9584 = vst [vmem:[#allocation5_spill] sm:$0xff] %v7910_v46 }
  0x9e   :  { %v7812_v26 = vpop.f32.mrf.mxu0 }
  0xa0   :  { %v361_v16 = vpop.f32.mrf.mxu1 }
  0xa1   :  { %958 = vmatmul.bf16.gmra.mxu3 %v5955_v6  ;;  %1152 = vmatmul.bf16.gmra.mxu0 %v7810_v9 }
  0xa3   :  { %1763 = vmatmul.bf16.gmra.mxu2 %v6179_v7  ;;  %1569 = vmatmul.bf16.gmra.mxu1 %v1489_v10  ;;  %v1351_v7 = vrot.slane %v1350_v59, 4  ;;  %v1355_v10 = vrot.slane %v1353_v60, 5  ;;  %v1379_v59 = vrot.slane %v1378_v47, 4 }
  0xa4   :  { %v216_v21 = vpop.f32.mrf.mxu3 }
  0xa5   :  { %v362_v22 = vadd.f32 %v361_v16, %v216_v21  ;;  %v6954_v21 = vld [vmem:[%s9561_s1 + $0x210] sm:$0xff]  ;;  %v1356_v14 = vsel %vm7309_vm2, %v1351_v7, %v1355_v10 }
  0xa6   :  { %v765_v23 = vpop.f32.mrf.mxu2  ;;  %v7824_v24 = vpop.f32.mrf.mxu0  ;;  %2361 = vmatpush.bf16.msra.mxu0 %v6954_v21  ;;  %v1479_v5 = vunpack.c.l.b16 %v1356_v14  ;;  %v6190_v14 = vld [vmem:[%s9562_s0 + $0x138] sm:$0xf] }
  0xa7   :  { %v7826_v51 = vadd.f32 %v765_v23, %v362_v22  ;;  %v5962_v23 = vld [vmem:[%s9562_s0 + $0x1b0] sm:$0xf] }
  0xa8   :  { %v363_v29 = vpop.f32.mrf.mxu1 }
  0xaa   :  { %2362 = vmatpush.bf16.msra.mxu0 %v6953_v18 }
  0xac   :  { %v218_v43 = vpop.f32.mrf.mxu3 }
  0xad   :  { %v364_v48 = vadd.f32 %v363_v29, %v218_v43  ;;  %v6186_v29 = vld [vmem:[%s9562_s0 + $0x128] sm:$0xf]  ;;  %v5963_v43 = vor.u32 %v6884_v45, %v5962_v23  ;;  %v6901_v45 = vld [vmem:[%s9562_s0 + $0x20c] sm:$0xf0] }
  0xae   :  { %v767_v49 = vpop.f32.mrf.mxu2  ;;  %v7861_v54 = vpop.f32.mrf.mxu0  ;;  %v6187_v8 = vor.u32 %v6924_v30, %v6186_v29  ;;  %v6885_v23 = vld [vmem:[%s9562_s0 + $0x1c4] sm:$0xf0]  ;;  %v6113_v29 = vld [vmem:[%s9562_s0 + $0x1d4] sm:$0x1] }
  0xaf   :  { %v7863_v57 = vadd.f32 %v767_v49, %v364_v48  ;;  %v1381_v48 = vshll.u32 %v6109_v38, 16  ;;  %v1392_v49 = vor.u32 %v1391_v37, %v1388_v36  ;;  %v1419_v36 = vrot.slane %v1417_v19, 5  ;;  %v6886_v19 = vld [vmem:[%s9562_s0 + $0x1d4] sm:$0xf0] }
  0xb0   :  { %v366_v58 = vpop.f32.mrf.mxu1 }
  0xb1   :  { %963 = vmatmul.bf16.gmra.mxu3 %v5959_v50  ;;  %1157 = vmatmul.bf16.gmra.mxu0 %v7853_v32  ;;  %v1395_v50 = vshll.u32 %v6111_v40, 16  ;;  %v1383_v60 = vrot.slane %v1381_v48, 5  ;;  %v1393_v61 = vrot.slane %v1392_v49, 4  ;;  %v1420_v47 = vor.u32 %v1419_v36, %v1416_v35 }
  0xb3   :  { %1768 = vmatmul.bf16.gmra.mxu2 %v6183_v55  ;;  %1574 = vmatmul.bf16.gmra.mxu1 %v1490_v4  ;;  %v1491_v55 = vpack.c.b16 %v1480_v3, %v1479_v5  ;;  %v1397_v15 = vrot.slane %v1395_v50, 5  ;;  %v1384_v10 = vsel %vm7309_vm2, %v1379_v59, %v1383_v60  ;;  %v6115_v5 = vld [vmem:[%s9562_s0 + $0x1dc] sm:$0x1]  ;;  %v6944_v50 = vld [vmem:[%s9561_s1 + $0x1c0] sm:$0xff] }
  0xb4   :  { %v221_v6 = vpop.f32.mrf.mxu3  ;;  %v1481_v28 = vunpack.c.l.b16 %v1384_v10  ;;  %v1423_v48 = vshll.u32 %v6115_v5, 16  ;;  %v6952_v10 = vld [vmem:[%s9561_s1 + $0x200] sm:$0xff] }
  0xb5   :  { %v367_v12 = vadd.f32 %v366_v58, %v221_v6  ;;  %v6945_v58 = vld [vmem:[%s9561_s1 + $0x1c8] sm:$0xff]  ;;  %v1398_v44 = vsel %vm7309_vm2, %v1393_v61, %v1397_v15  ;;  %v6116_v15 = vld [vmem:[%s9562_s0 + $0x1e0] sm:$0xf]  ;;  %2363 = vmatpush.bf16.msra.mxu0 %v6952_v10 }
  0xb6   :  { %v770_v13 = vpop.f32.mrf.mxu2  ;;  %v7875_v16 = vpop.f32.mrf.mxu0  ;;  %1945 = vmatpush.bf16.msra.mxu3 %v6945_v58  ;;  %v1482_v2 = vunpack.c.l.b16 %v1398_v44  ;;  %v1421_v58 = vrot.slane %v1420_v47, 4  ;;  %v1425_v59 = vrot.slane %v1423_v48, 5 }
  0xb7   :  { %v7877_v20 = vadd.f32 %v770_v13, %v367_v12 }
  0xb8   :  { %v368_v22 = vpop.f32.mrf.mxu1 }
  0xba   :  { %1946 = vmatpush.bf16.msra.mxu3 %v6944_v50 }
  0xbc   :  { %v223_v41 = vpop.f32.mrf.mxu3 }
  0xbd   :  { %v369_v42 = vadd.f32 %v368_v22, %v223_v41  ;;  %v5966_v22 = vld [vmem:[%s9562_s0 + $0x1c0] sm:$0xf] }
  0xbe   :  { %v772_v1 = vpop.f32.mrf.mxu2  ;;  %v351_v25 = vpop.f32.mrf.mxu0  ;;  %v5967_v38 = vor.u32 %v6885_v23, %v5966_v22  ;;  %v6050_v22 = vld [vmem:[%s9562_s0 + $0x218] sm:$0xf]  ;;  %v6902_v23 = vld [vmem:[%s9562_s0 + $0x21c] sm:$0xf0] }
  0xbf   :  { %v7913_v52 = vadd.f32 %v351_v25, %v7812_v26  ;;  %v7915_v53 = vadd.f32 %v772_v1, %v369_v42  ;;  %v6112_v26 = vld [vmem:[%s9562_s0 + $0x1d0] sm:$0xf]  ;;  %v6191_v42 = vor.u32 %v6925_v27, %v6190_v14  ;;  %v1492_v1 = vpack.c.b16 %v1482_v2, %v1481_v28  ;;  %v6117_v2 = vld [vmem:[%s9562_s0 + $0x1e4] sm:$0x1] }
  0xc0   :  { %v371_v4 = vpop.f32.mrf.mxu1  ;;  %v1400_v11 = vshrl.u32 %v6112_v26, 16  ;;  %v1403_v12 = vshll.u32 %v6112_v26, 16  ;;  %v6118_v26 = vld [vmem:[%s9562_s0 + $0x1e8] sm:$0xf]  ;;  %v1437_v47 = vshll.u32 %v6117_v2, 16 }
  0xc1   :  { %968 = vmatmul.bf16.gmra.mxu3 %v5963_v43  ;;  %1162 = vmatmul.bf16.gmra.mxu0 %v7910_v46  ;;  %v1409_v43 = vshll.u32 %v6113_v29, 16  ;;  %v1442_v18 = vshrl.u32 %v6118_v26, 16  ;;  %v1445_v33 = vshll.u32 %v6118_v26, 16  ;;  %v2566_v46 = vld [vmem:[#allocation2 + $0x2c] sm:$0x1] }
  0xc2   :  { %v1402_v30 = vrot.slane %v1400_v11, 4  ;;  %v1405_v34 = vrot.slane %v1403_v12, 5  ;;  %v1428_v11 = vshrl.u32 %v6116_v15, 16  ;;  %v1431_v12 = vshll.u32 %v6116_v15, 16 }
  0xc3   :  { %1773 = vmatmul.bf16.gmra.mxu2 %v6187_v8  ;;  %1579 = vmatmul.bf16.gmra.mxu1 %v1491_v55  ;;  %v1447_v35 = vrot.slane %v1445_v33, 5 }
  0xc4   :  { %v226_v62 = vpop.f32.mrf.mxu3  ;;  %v1406_v25 = vor.u32 %v1405_v34, %v1402_v30  ;;  %v1430_v29 = vrot.slane %v1428_v11, 4  ;;  %v1433_v30 = vrot.slane %v1431_v12, 5  ;;  %v1444_v34 = vrot.slane %v1442_v18, 4 }
  0xc5   :  { %v372_v0 = vadd.f32 %v371_v4, %v226_v62  ;;  %v1411_v4 = vrot.slane %v1409_v43, 5 }
  0xc6   :  { %v775_v6 = vpop.f32.mrf.mxu2  ;;  %v353_v7 = vpop.f32.mrf.mxu0  ;;  %v1407_v55 = vrot.slane %v1406_v25, 4  ;;  %v1448_v50 = vor.u32 %v1447_v35, %v1444_v34  ;;  %v6198_v34 = vld [vmem:[%s9562_s0 + $0x158] sm:$0xf]  ;;  %v6927_v35 = vld [vmem:[%s9562_s0 + $0x15c] sm:$0xf0] }
  0xc7   :  { %v7932_v13 = vadd.f32 %v353_v7, %v7824_v24  ;;  %v7934_v17 = vadd.f32 %v775_v6, %v372_v0  ;;  %v6046_v24 = vld [vmem:[%s9562_s0 + $0x208] sm:$0xf]  ;;  %v1426_v7 = vsel %vm7309_vm2, %v1421_v58, %v1425_v59  ;;  %v6314_v58 = vld [vmem:[%s9562_s0 + $0x10] sm:$0xf] }
  0xc8   :  { %v7939_v21 = vpop.f32.mrf.mxu1  ;;  %v7969_v40 = vor.u32 %v6901_v45, %v6046_v24  ;;  %v1412_v6 = vsel %vm7309_vm2, %v1407_v55, %v1411_v4  ;;  %v6194_v24 = vld [vmem:[%s9562_s0 + $0x148] sm:$0xf]  ;;  %v6926_v45 = vld [vmem:[%s9562_s0 + $0x14c] sm:$0xf0]  ;;  %v1484_v27 = vunpack.c.l.b16 %v1426_v7  ;;  %v2051_v7 = vshrl.u32 %v6314_v58, 16 }
  0xc9   :  { %v1483_v14 = vunpack.c.l.b16 %v1412_v6  ;;  %v6312_v4 = vld [vmem:[%s9562_s0 + $0x8] sm:$0xf]  ;;  %v2054_v10 = vshll.u32 %v6314_v58, 16  ;;  %v6199_v58 = vor.u32 %v6927_v35, %v6198_v34 }
  0xca   :  { %9585 = vst [vmem:[#allocation6_spill] sm:$0xff] %v7969_v40  ;;  %v2037_v15 = vshrl.u32 %v6312_v4, 16  ;;  %v2040_v6 = vshll.u32 %v6312_v4, 16 }
  0xcb   :  { %v1493_v25 = vpack.c.b16 %v1484_v27, %v1483_v14  ;;  %v2053_v27 = vrot.slane %v2051_v7, 4  ;;  %v2056_v2 = vrot.slane %v2054_v10, 5 }
  0xcc   :  { %v7962_v37 = vpop.f32.mrf.mxu3  ;;  %v2042_v14 = vrot.slane %v2040_v6, 5 }
  0xce   :  { %v7967_v3 = vpop.f32.mrf.mxu2  ;;  %v356_v41 = vpop.f32.mrf.mxu0 }
  0xcf   :  { %v7972_v8 = vadd.f32 %v356_v41, %v7861_v54  ;;  %v6119_v41 = vld [vmem:[%s9562_s0 + $0x1ec] sm:$0x1] }
  0xd0   :  { %v376_v49 = vpop.f32.mrf.mxu1  ;;  %v1451_v55 = vshll.u32 %v6119_v41, 16 }
  0xd1   :  { %973 = vmatmul.bf16.gmra.mxu3 %v5967_v38  ;;  %1167 = vmatmul.bf16.gmra.mxu0 %v7969_v40  ;;  %v8023_v38 = vor.u32 %v6902_v23, %v6050_v22  ;;  %v6054_v22 = vld [vmem:[%s9562_s0 + $0x228] sm:$0xf] }
  0xd3   :  { %1778 = vmatmul.bf16.gmra.mxu2 %v6191_v42  ;;  %1584 = vmatmul.bf16.gmra.mxu1 %v1492_v1  ;;  %9586 = vst [vmem:[#allocation7_spill] sm:$0xff] %v8023_v38  ;;  %v6195_v1 = vor.u32 %v6926_v45, %v6194_v24  ;;  %v6903_v24 = vld [vmem:[%s9562_s0 + $0x22c] sm:$0xf0]  ;;  %v2039_v45 = vrot.slane %v2037_v15, 4 }
  0xd4   :  { %v231_v54 = vpop.f32.mrf.mxu3 }
  0xd5   :  { %v377_v60 = vadd.f32 %v376_v49, %v231_v54  ;;  %v1434_v49 = vor.u32 %v1433_v30, %v1430_v29  ;;  %v6313_v29 = vld [vmem:[%s9562_s0 + $0xc] sm:$0x1]  ;;  %v6315_v30 = vld [vmem:[%s9562_s0 + $0x14] sm:$0x1] }
  0xd6   :  { %v780_v61 = vpop.f32.mrf.mxu2  ;;  %v358_v62 = vpop.f32.mrf.mxu0 }
  0xd7   :  { %v7985_v63 = vadd.f32 %v358_v62, %v7875_v16  ;;  %v7987_v0 = vadd.f32 %v780_v61, %v377_v60  ;;  %v5970_v16 = vld [vmem:[%s9562_s0 + $0x1d0] sm:$0xf]  ;;  %v1435_v54 = vrot.slane %v1434_v49, 4  ;;  %v1449_v60 = vrot.slane %v1448_v50, 4 }
  0xd8   :  { %v7996_v44 = vpop.f32.mrf.mxu1  ;;  %v5971_v5 = vor.u32 %v6886_v19, %v5970_v16  ;;  %v1453_v61 = vrot.slane %v1451_v55, 5  ;;  %v5974_v16 = vld [vmem:[%s9562_s0 + $0x1e0] sm:$0xf]  ;;  %v6887_v19 = vld [vmem:[%s9562_s0 + $0x1e4] sm:$0xf0]  ;;  %v2046_v49 = vshll.u32 %v6313_v29, 16  ;;  %v2057_v50 = vor.u32 %v2056_v2, %v2053_v27 }
  0xd9   :  { %v2060_v55 = vshll.u32 %v6315_v30, 16  ;;  %v6250_v27 = vld [vmem:[%s9562_s0 + $0x50] sm:$0xf]  ;;  %v6936_v30 = vld [vmem:[%s9562_s0 + $0x54] sm:$0xf0] }
  0xda   :  { %v1454_v23 = vsel %vm7309_vm2, %v1449_v60, %v1453_v61  ;;  %v2048_v60 = vrot.slane %v2046_v49, 5  ;;  %v2058_v61 = vrot.slane %v2057_v50, 4  ;;  %v6251_v49 = vor.u32 %v6936_v30, %v6250_v27  ;;  %v6254_v27 = vld [vmem:[%s9562_s0 + $0x60] sm:$0xf] }
  0xdb   :  { %v1486_v41 = vunpack.c.l.b16 %v1454_v23  ;;  %v2062_v15 = vrot.slane %v2060_v55, 5 }
  0xdc   :  { %v8016_v28 = vpop.f32.mrf.mxu3 }
  0xde   :  { %v8021_v36 = vpop.f32.mrf.mxu2  ;;  %v755_v42 = vpop.f32.mrf.mxu0 }
  0xdf   :  { %v8029_v43 = vadd.f32 %v755_v42, %v7913_v52  ;;  %v1439_v52 = vrot.slane %v1437_v47, 5 }
  0xe0   :  { %v381_v48 = vpop.f32.mrf.mxu1 }
  0xe1   :  { %978 = vmatmul.bf16.gmra.mxu3 %v5971_v5  ;;  %1172 = vmatmul.bf16.gmra.mxu0 %v8023_v38 }
  0xe3   :  { %1783 = vmatmul.bf16.gmra.mxu2 %v6195_v1  ;;  %1589 = vmatmul.bf16.gmra.mxu1 %v1493_v25  ;;  %v5975_v1 = vor.u32 %v6887_v19, %v5974_v16  ;;  %v8075_v25 = vor.u32 %v6903_v24, %v6054_v22  ;;  %v2063_v16 = vsel %vm7309_vm2, %v2058_v61, %v2062_v15 }
  0xe4   :  { %v236_v59 = vpop.f32.mrf.mxu3  ;;  %v2277_v29 = vunpack.c.l.b16 %v2063_v16 }
  0xe5   :  { %v382_v26 = vadd.f32 %v381_v48, %v236_v59  ;;  %9587 = vst [vmem:[#allocation8_spill] sm:$0xff] %v8075_v25  ;;  %v2043_v48 = vor.u32 %v2042_v14, %v2039_v45 }
  0xe6   :  { %v785_v62 = vpop.f32.mrf.mxu2  ;;  %v757_v11 = vpop.f32.mrf.mxu0 }
  0xe7   :  { %v8039_v12 = vadd.f32 %v757_v11, %v7932_v13  ;;  %v8041_v18 = vadd.f32 %v785_v62, %v382_v26  ;;  %v1440_v13 = vsel %vm7309_vm2, %v1435_v54, %v1439_v52  ;;  %v2044_v54 = vrot.slane %v2043_v48, 4  ;;  %v6316_v62 = vld [vmem:[%s9562_s0 + $0x18] sm:$0xf] }
  0xe8   :  { %v8043_v33 = vpop.f32.mrf.mxu1  ;;  %v1485_v5 = vunpack.c.l.b16 %v1440_v13  ;;  %v2065_v22 = vshrl.u32 %v6316_v62, 16  ;;  %v2068_v13 = vshll.u32 %v6316_v62, 16 }
  0xe9   :  { %v2049_v11 = vsel %vm7309_vm2, %v2044_v54, %v2048_v60  ;;  %v6320_v60 = vld [vmem:[%s9562_s0 + $0x28] sm:$0xf] }
  0xea   :  { %v1494_v59 = vpack.c.b16 %v1486_v41, %v1485_v5  ;;  %v2276_v2 = vunpack.c.l.b16 %v2049_v11  ;;  %v2067_v34 = vrot.slane %v2065_v22, 4  ;;  %v2070_v35 = vrot.slane %v2068_v13, 5 }
  0xec   :  { %v8073_v42 = vpop.f32.mrf.mxu3  ;;  %v2292_v50 = vpack.c.b16 %v2277_v29, %v2276_v2  ;;  %v6937_v2 = vld [vmem:[%s9562_s0 + $0x64] sm:$0xf0] }
  0xee   :  { %v8077_v47 = vpop.f32.mrf.mxu2  ;;  %v760_v4 = vpop.f32.mrf.mxu0 }
  0xef   :  { %v8080_v52 = vadd.f32 %v760_v4, %v7972_v8  ;;  %v6318_v8 = vld [vmem:[%s9562_s0 + $0x20] sm:$0xf]  ;;  %v2071_v4 = vor.u32 %v2070_v35, %v2067_v34  ;;  %v6321_v35 = vld [vmem:[%s9562_s0 + $0x2c] sm:$0x1] }
  0xf0   :  { %v386_v26 = vpop.f32.mrf.mxu1  ;;  %v2079_v23 = vshrl.u32 %v6318_v8, 16  ;;  %v2082_v24 = vshll.u32 %v6318_v8, 16  ;;  %v6322_v8 = vld [vmem:[%s9562_s0 + $0x30] sm:$0xf] }
  0xf1   :  { %983 = vmatmul.bf16.gmra.mxu3 %v5975_v1  ;;  %1177 = vmatmul.bf16.gmra.mxu0 %v8075_v25  ;;  %v6319_v1 = vld [vmem:[%s9562_s0 + $0x24] sm:$0x1]  ;;  %v2072_v61 = vrot.slane %v2071_v4, 4  ;;  %v2107_v16 = vshrl.u32 %v6322_v8, 16  ;;  %v2102_v4 = vshll.u32 %v6321_v35, 16 }
  0xf2   :  { %v2081_v5 = vrot.slane %v2079_v23, 4  ;;  %v2084_v41 = vrot.slane %v2082_v24, 5  ;;  %v2088_v54 = vshll.u32 %v6319_v1, 16  ;;  %v6323_v1 = vld [vmem:[%s9562_s0 + $0x34] sm:$0x1] }
  0xf3   :  { %1788 = vmatmul.bf16.gmra.mxu2 %v6199_v58  ;;  %1594 = vmatmul.bf16.gmra.mxu1 %v1494_v59 }
  0xf4   :  { %v241_v6 = vpop.f32.mrf.mxu3  ;;  %v2085_v59 = vor.u32 %v2084_v41, %v2081_v5  ;;  %v2090_v62 = vrot.slane %v2088_v54, 5  ;;  %v2109_v5 = vrot.slane %v2107_v16, 4 }
  0xf5   :  { %v387_v7 = vadd.f32 %v386_v26, %v241_v6 }
  0xf6   :  { %v790_v10 = vpop.f32.mrf.mxu2  ;;  %v762_v19 = vpop.f32.mrf.mxu0  ;;  %v2086_v26 = vrot.slane %v2085_v59, 4 }
  0xf7   :  { %v8094_v45 = vadd.f32 %v762_v19, %v7985_v63  ;;  %v8096_v14 = vadd.f32 %v790_v10, %v387_v7  ;;  %v6317_v63 = vld [vmem:[%s9562_s0 + $0x1c] sm:$0x1]  ;;  %v2093_v7 = vshrl.u32 %v6320_v60, 16  ;;  %v2096_v10 = vshll.u32 %v6320_v60, 16 }
  0xf8   :  { %v2074_v58 = vshll.u32 %v6317_v63, 16  ;;  %v2110_v19 = vshll.u32 %v6322_v8, 16  ;;  %v2091_v23 = vsel %vm7309_vm2, %v2086_v26, %v2090_v62  ;;  %v6975_v63 = vld [vmem:[%s9565_s4 + $0x38] sm:$0xff]  ;;  %v2116_v60 = vshll.u32 %v6323_v1, 16 }
  0xf9   :  { %v2098_v29 = vrot.slane %v2096_v10, 5  ;;  %v2279_v34 = vunpack.c.l.b16 %v2091_v23  ;;  %3399 = vmatpush.bf16.msra.mxu2 %v6975_v63  ;;  %v2104_v8 = vrot.slane %v2102_v4, 5  ;;  %v6326_v10 = vld [vmem:[%s9562_s0 + $0x40] sm:$0xf] }
  0xfa   :  { %v2076_v15 = vrot.slane %v2074_v58, 5  ;;  %v2112_v41 = vrot.slane %v2110_v19, 5 }
  0xfc   :  { %v8110_v48 = vpop.f32.mrf.mxu3  ;;  %v2077_v13 = vsel %vm7309_vm2, %v2072_v61, %v2076_v15  ;;  %v2113_v54 = vor.u32 %v2112_v41, %v2109_v5  ;;  %v6983_v61 = vld [vmem:[%s9565_s4 + $0x78] sm:$0xff] }
  0xfd   :  { %v2278_v30 = vunpack.c.l.b16 %v2077_v13  ;;  %3254 = vmatpush.bf16.msra.mxu1 %v6983_v61 }
  0xfe   :  { %v1143_v55 = vpop.f32.mrf.mxu0 }
  0xff   :  { %v2293_v59 = vpack.c.b16 %v2279_v34, %v2278_v30  ;;  %v6258_v30 = vld [vmem:[%s9562_s0 + $0x70] sm:$0xf] }
 0x101   :  { %1947 = vmatmul.bf16.vlgmr.msra.gmra.mxu3 %v6251_v49  ;;  %2364 = vmatmul.bf16.vlgmr.msra.gmra.mxu0 %v2292_v50  ;;  %v6255_v50 = vor.u32 %v6937_v2, %v6254_v27  ;;  %v2135_v27 = vshrl.u32 %v6326_v10, 16  ;;  %v2138_v2 = vshll.u32 %v6326_v10, 16 }
 0x103   :  { %v2137_v63 = vrot.slane %v2135_v27, 4  ;;  %v2140_v1 = vrot.slane %v2138_v2, 5 }
 0x104   :  { %v949_v6 = vpop.f32.mrf.mxu3 }
 0x105   :  { %v989_v11 = vadd.f32 %v949_v6, %v8029_v43  ;;  %v2095_v43 = vrot.slane %v2093_v7, 4  ;;  %v2114_v6 = vrot.slane %v2113_v54, 4  ;;  %v2118_v7 = vrot.slane %v2116_v60, 5 }
 0x106   :  { %v1145_v22 = vpop.f32.mrf.mxu0 }
 0x107   :  { %v8123_v24 = vadd.f32 %v1143_v55, %v989_v11  ;;  %v2099_v55 = vor.u32 %v2098_v29, %v2095_v43  ;;  %v2119_v23 = vsel %vm7309_vm2, %v2114_v6, %v2118_v7 }
 0x108   :  { %v2281_v35 = vunpack.c.l.b16 %v2119_v23 }
 0x109   :  { %v2100_v62 = vrot.slane %v2099_v55, 4  ;;  %v6327_v55 = vld [vmem:[%s9562_s0 + $0x44] sm:$0x1] }
 0x10b   :  { %v2105_v16 = vsel %vm7309_vm2, %v2100_v62, %v2104_v8  ;;  %v2144_v62 = vshll.u32 %v6327_v55, 16  ;;  %v6982_v8 = vld [vmem:[%s9565_s4 + $0x70] sm:$0xff] }
 0x10c   :  { %v951_v49 = vpop.f32.mrf.mxu3  ;;  %v2280_v34 = vunpack.c.l.b16 %v2105_v16  ;;  %3255 = vmatpush.bf16.msra.mxu1 %v6982_v8 }
 0x10d   :  { %v990_v58 = vadd.f32 %v951_v49, %v8039_v12  ;;  %v6324_v12 = vld [vmem:[%s9562_s0 + $0x38] sm:$0xf]  ;;  %v6974_v49 = vld [vmem:[%s9565_s4 + $0x30] sm:$0xff]  ;;  %v2146_v16 = vrot.slane %v2144_v62, 5  ;;  %v6981_v62 = vld [vmem:[%s9565_s4 + $0x68] sm:$0xff] }
 0x10e   :  { %v1148_v15 = vpop.f32.mrf.mxu0  ;;  %v2121_v19 = vshrl.u32 %v6324_v12, 16  ;;  %3400 = vmatpush.bf16.msra.mxu2 %v6974_v49 }
 0x10f   :  { %v8144_v26 = vadd.f32 %v1145_v22, %v990_v58  ;;  %v2124_v22 = vshll.u32 %v6324_v12, 16 }
 0x110   :  { %v2123_v5 = vrot.slane %v2121_v19, 4  ;;  %v6330_v19 = vld [vmem:[%s9562_s0 + $0x130] sm:$0xf]  ;;  %3256 = vmatpush.bf16.msra.mxu1 %v6981_v62 }
 0x111   :  { %1952 = vmatmul.bf16.gmra.mxu3 %v6255_v50  ;;  %2369 = vmatmul.bf16.gmra.mxu0 %v2293_v59  ;;  %v2126_v41 = vrot.slane %v2124_v22, 5  ;;  %v6325_v50 = vld [vmem:[%s9562_s0 + $0x3c] sm:$0x1]  ;;  %v2294_v59 = vpack.c.b16 %v2281_v35, %v2280_v34  ;;  %v2163_v34 = vshrl.u32 %v6330_v19, 16  ;;  %v2166_v35 = vshll.u32 %v6330_v19, 16 }
 0x112   :  { %v2130_v61 = vshll.u32 %v6325_v50, 16 }
 0x113   :  { %v2127_v54 = vor.u32 %v2126_v41, %v2123_v5  ;;  %v6262_v41 = vld [vmem:[%s9562_s0 + $0x80] sm:$0xf]  ;;  %v2165_v55 = vrot.slane %v2163_v34, 4 }
 0x114   :  { %v954_v11 = vpop.f32.mrf.mxu3  ;;  %v2132_v10 = vrot.slane %v2130_v61, 5 }
 0x115   :  { %v991_v13 = vadd.f32 %v954_v11, %v8080_v52  ;;  %v6938_v52 = vld [vmem:[%s9562_s0 + $0x74] sm:$0xf0]  ;;  %v2128_v12 = vrot.slane %v2127_v54, 4 }
 0x116   :  { %v1150_v43 = vpop.f32.mrf.mxu0  ;;  %v6259_v58 = vor.u32 %v6938_v52, %v6258_v30 }
 0x117   :  { %v8157_v29 = vadd.f32 %v1148_v15, %v991_v13  ;;  %v2141_v15 = vor.u32 %v2140_v1, %v2137_v63  ;;  %v2133_v23 = vsel %vm7309_vm2, %v2128_v12, %v2132_v10  ;;  %v6939_v1 = vld [vmem:[%s9562_s0 + $0x84] sm:$0xf0] }
 0x118   :  { %v2282_v52 = vunpack.c.l.b16 %v2133_v23  ;;  %v6263_v61 = vor.u32 %v6939_v1, %v6262_v41 }
 0x119   :  { %v2142_v11 = vrot.slane %v2141_v15, 4 }
 0x11b   :  { %v2147_v27 = vsel %vm7309_vm2, %v2142_v11, %v2146_v16 }
 0x11c   :  { %v956_v4 = vpop.f32.mrf.mxu3  ;;  %v2283_v63 = vunpack.c.l.b16 %v2147_v27 }
 0x11d   :  { %v992_v60 = vadd.f32 %v956_v4, %v8094_v45  ;;  %v6328_v45 = vld [vmem:[%s9562_s0 + $0x128] sm:$0xf]  ;;  %v2168_v4 = vrot.slane %v2166_v35, 5 }
 0x11e   :  { %v1153_v6 = vpop.f32.mrf.mxu0  ;;  %v2152_v30 = vshll.u32 %v6328_v45, 16  ;;  %v2295_v15 = vpack.c.b16 %v2283_v63, %v2282_v52 }
 0x11f   :  { %v8178_v7 = vadd.f32 %v1150_v43, %v992_v60  ;;  %v2149_v43 = vshrl.u32 %v6328_v45, 16  ;;  %v2169_v10 = vor.u32 %v2168_v4, %v2165_v55  ;;  %v6334_v45 = vld [vmem:[%s9562_s0 + $0x140] sm:$0xf] }
 0x120   :  { %v2154_v50 = vrot.slane %v2152_v30, 5  ;;  %v2194_v34 = vshll.u32 %v6334_v45, 16 }
 0x121   :  { %1957 = vmatmul.bf16.gmra.mxu3 %v6259_v58  ;;  %2374 = vmatmul.bf16.gmra.mxu0 %v2294_v59  ;;  %v2151_v49 = vrot.slane %v2149_v43, 4  ;;  %v6329_v58 = vld [vmem:[%s9562_s0 + $0x12c] sm:$0x1]  ;;  %v6331_v59 = vld [vmem:[%s9562_s0 + $0x134] sm:$0x1] }
 0x122   :  { %v2158_v12 = vshll.u32 %v6329_v58, 16  ;;  %v2172_v11 = vshll.u32 %v6331_v59, 16  ;;  %v2196_v55 = vrot.slane %v2194_v34, 5  ;;  %v6333_v59 = vld [vmem:[%s9562_s0 + $0x13c] sm:$0x1] }
 0x124   :  { %v959_v22 = vpop.f32.mrf.mxu3  ;;  %v2174_v23 = vrot.slane %v2172_v11, 5 }
 0x125   :  { %v993_v13 = vadd.f32 %v959_v22, %v7826_v51  ;;  %v6973_v51 = vld [vmem:[%s9565_s4 + $0x28] sm:$0xff]  ;;  %v2160_v22 = vrot.slane %v2158_v12, 5 }
 0x126   :  { %v1155_v2 = vpop.f32.mrf.mxu0  ;;  %3401 = vmatpush.bf16.msra.mxu2 %v6973_v51 }
 0x127   :  { %v8191_v5 = vadd.f32 %v1153_v6, %v993_v13  ;;  %v2155_v6 = vor.u32 %v2154_v50, %v2151_v49  ;;  %v2170_v13 = vrot.slane %v2169_v10, 4 }
 0x129   :  { %v2156_v19 = vrot.slane %v2155_v6, 4  ;;  %v2175_v63 = vsel %vm7309_vm2, %v2170_v13, %v2174_v23 }
 0x12a   :  { %v2285_v58 = vunpack.c.l.b16 %v2175_v63 }
 0x12b   :  { %v2161_v52 = vsel %vm7309_vm2, %v2156_v19, %v2160_v22 }
 0x12c   :  { %v961_v54 = vpop.f32.mrf.mxu3  ;;  %v2284_v4 = vunpack.c.l.b16 %v2161_v52 }
 0x12d   :  { %v994_v60 = vadd.f32 %v961_v54, %v7863_v57  ;;  %v6332_v57 = vld [vmem:[%s9562_s0 + $0x138] sm:$0xf]  ;;  %v6972_v54 = vld [vmem:[%s9565_s4 + $0x20] sm:$0xff] }
 0x12e   :  { %v1158_v8 = vpop.f32.mrf.mxu0  ;;  %v2177_v43 = vshrl.u32 %v6332_v57, 16  ;;  %v2180_v30 = vshll.u32 %v6332_v57, 16  ;;  %3402 = vmatpush.bf16.msra.mxu2 %v6972_v54  ;;  %v2296_v57 = vpack.c.b16 %v2285_v58, %v2284_v4  ;;  %v6270_v58 = vld [vmem:[%s9562_s0 + $0x180] sm:$0xf] }
 0x12f   :  { %v8212_v16 = vadd.f32 %v1155_v2, %v994_v60  ;;  %v2191_v2 = vshrl.u32 %v6334_v45, 16  ;;  %v6266_v60 = vld [vmem:[%s9562_s0 + $0x170] sm:$0xf]  ;;  %v6980_v45 = vld [vmem:[%s9565_s4 + $0x60] sm:$0xff] }
 0x130   :  { %v2179_v1 = vrot.slane %v2177_v43, 4  ;;  %v2182_v49 = vrot.slane %v2180_v30, 5  ;;  %3257 = vmatpush.bf16.msra.mxu1 %v6980_v45  ;;  %v8251_v30 = vpop.f32.mrf.mxu1 }
 0x131   :  { %1962 = vmatmul.bf16.gmra.mxu3 %v6263_v61  ;;  %2379 = vmatmul.bf16.gmra.mxu0 %v2295_v15  ;;  %v2193_v50 = vrot.slane %v2191_v2, 4  ;;  %v6940_v61 = vld [vmem:[%s9562_s0 + $0x174] sm:$0xf0]  ;;  %v6338_v2 = vld [vmem:[%s9562_s0 + $0x150] sm:$0xf] }
 0x132   :  { %v2183_v62 = vor.u32 %v2182_v49, %v2179_v1  ;;  %v6267_v11 = vor.u32 %v6940_v61, %v6266_v60  ;;  %v2219_v49 = vshrl.u32 %v6338_v2, 16 }
 0x133   :  { %v2197_v6 = vor.u32 %v2196_v55, %v2193_v50  ;;  %v2222_v50 = vshll.u32 %v6338_v2, 16 }
 0x134   :  { %v964_v27 = vpop.f32.mrf.mxu3  ;;  %v2184_v13 = vrot.slane %v2183_v62, 4  ;;  %v6971_v62 = vld [vmem:[%s9565_s4 + $0x18] sm:$0xff] }
 0x135   :  { %v995_v35 = vadd.f32 %v964_v27, %v7877_v20  ;;  %v6335_v20 = vld [vmem:[%s9562_s0 + $0x144] sm:$0x1]  ;;  %v2198_v27 = vrot.slane %v2197_v6, 4  ;;  %v6337_v6 = vld [vmem:[%s9562_s0 + $0x14c] sm:$0x1]  ;;  %3403 = vmatpush.bf16.msra.mxu2 %v6971_v62 }
 0x136   :  { %v1160_v41 = vpop.f32.mrf.mxu0  ;;  %v2200_v12 = vshll.u32 %v6335_v20, 16 }
 0x137   :  { %v8225_v51 = vadd.f32 %v1158_v8, %v995_v35  ;;  %v2186_v8 = vshll.u32 %v6333_v59, 16  ;;  %v6941_v59 = vld [vmem:[%s9562_s0 + $0x184] sm:$0xf0] }
 0x138   :  { %v2202_v43 = vrot.slane %v2200_v12, 5  ;;  %v6339_v12 = vld [vmem:[%s9562_s0 + $0x154] sm:$0x1] }
 0x139   :  { %v2188_v23 = vrot.slane %v2186_v8, 5  ;;  %v8274_v8 = vpop.f32.mrf.mxu1 }
 0x13b   :  { %v2189_v35 = vsel %vm7309_vm2, %v2184_v13, %v2188_v23  ;;  %v2214_v13 = vshll.u32 %v6337_v6, 16  ;;  %v6274_v6 = vld [vmem:[%s9562_s0 + $0x190] sm:$0xf] }
 0x13c   :  { %v966_v15 = vpop.f32.mrf.mxu3  ;;  %v2286_v20 = vunpack.c.l.b16 %v2189_v35 }
 0x13d   :  { %v996_v10 = vadd.f32 %v966_v15, %v7915_v53  ;;  %v6336_v53 = vld [vmem:[%s9562_s0 + $0x148] sm:$0xf]  ;;  %v2224_v15 = vrot.slane %v2222_v50, 5 }
 0x13e   :  { %v1163_v19 = vpop.f32.mrf.mxu0  ;;  %v2205_v52 = vshrl.u32 %v6336_v53, 16  ;;  %v2208_v1 = vshll.u32 %v6336_v53, 16 }
 0x13f   :  { %v8246_v22 = vadd.f32 %v1160_v41, %v996_v10  ;;  %v2203_v41 = vsel %vm7309_vm2, %v2198_v27, %v2202_v43  ;;  %v8282_v10 = vpop.f32.mrf.mxu2  ;;  %v2228_v27 = vshll.u32 %v6339_v12, 16  ;;  %v6979_v43 = vld [vmem:[%s9565_s4 + $0x58] sm:$0xff] }
 0x140   :  { %v2287_v54 = vunpack.c.l.b16 %v2203_v41  ;;  %v2207_v60 = vrot.slane %v2205_v52, 4  ;;  %v2210_v61 = vrot.slane %v2208_v1, 5  ;;  %3258 = vmatpush.bf16.msra.mxu1 %v6979_v43  ;;  %v6342_v1 = vld [vmem:[%s9562_s0 + $0x160] sm:$0xf]  ;;  %v6341_v43 = vld [vmem:[%s9562_s0 + $0x15c] sm:$0x1] }
 0x141   :  { %1967 = vmatmul.bf16.gmra.mxu3 %v6267_v11  ;;  %2384 = vmatmul.bf16.gmra.mxu0 %v2296_v57  ;;  %v6271_v57 = vor.u32 %v6941_v59, %v6270_v58  ;;  %v2230_v41 = vrot.slane %v2228_v27, 5 }
 0x142   :  { %v2297_v45 = vpack.c.b16 %v2287_v54, %v2286_v20 }
 0x144   :  { %v969_v34 = vpop.f32.mrf.mxu3 }
 0x145   :  { %v997_v63 = vadd.f32 %v969_v34, %v7934_v17  ;;  %v2221_v17 = vrot.slane %v2219_v49, 4  ;;  %v2216_v34 = vrot.slane %v2214_v13, 5  ;;  %v8297_v49 = vpop.f32.mrf.mxu1 }
 0x146   :  { %v8261_v55 = vpop.f32.mrf.mxu0 }
 0x147   :  { %v8263_v4 = vadd.f32 %v1163_v19, %v997_v63  ;;  %v2211_v19 = vor.u32 %v2210_v61, %v2207_v60  ;;  %v2225_v23 = vor.u32 %v2224_v15, %v2221_v17  ;;  %v8289_v52 = vpop.f32.mrf.mxu2  ;;  %v6340_v63 = vld [vmem:[%s9562_s0 + $0x158] sm:$0xf]  ;;  %v2247_v17 = vshrl.u32 %v6342_v1, 16 }
 0x148   :  { %v2233_v60 = vshrl.u32 %v6340_v63, 16  ;;  %v2236_v61 = vshll.u32 %v6340_v63, 16  ;;  %v2250_v15 = vshll.u32 %v6342_v1, 16  ;;  %v6978_v63 = vld [vmem:[%s9565_s4 + $0x50] sm:$0xff] }
 0x149   :  { %v2212_v2 = vrot.slane %v2211_v19, 4  ;;  %v2226_v35 = vrot.slane %v2225_v23, 4  ;;  %v2249_v23 = vrot.slane %v2247_v17, 4  ;;  %3259 = vmatpush.bf16.msra.mxu1 %v6978_v63  ;;  %v7007_v63 = vld [vmem:[%s9565_s4 + $0xf8] sm:$0xff] }
 0x14a   :  { %v2235_v19 = vrot.slane %v2233_v60, 4  ;;  %v2238_v13 = vrot.slane %v2236_v61, 5  ;;  %v2252_v27 = vrot.slane %v2250_v15, 5  ;;  %3852 = vmatpush.bf16.msrb.mxu0 %v7007_v63 }
 0x14b   :  { %v2217_v59 = vsel %vm7309_vm2, %v2212_v2, %v2216_v34  ;;  %v2231_v20 = vsel %vm7309_vm2, %v2226_v35, %v2230_v41 }
 0x14c   :  { %v8284_v11 = vpop.f32.mrf.mxu3  ;;  %v2288_v12 = vunpack.c.l.b16 %v2217_v59  ;;  %v2242_v59 = vshll.u32 %v6341_v43, 16 }
 0x14d   :  { %v8330_v1 = vpop.f32.mrf.mxu1 }
 0x14e   :  { %v1168_v53 = vpop.f32.mrf.mxu0  ;;  %v2244_v17 = vrot.slane %v2242_v59, 5 }
 0x14f   :  { %v8325_v34 = vpop.f32.mrf.mxu2 }
 0x151   :  { %1972 = vmatmul.bf16.gmra.mxu3 %v6271_v57  ;;  %2389 = vmatmul.bf16.gmra.mxu0 %v2297_v45  ;;  %v6970_v57 = vld [vmem:[%s9565_s4 + $0x10] sm:$0xff]  ;;  %v6942_v45 = vld [vmem:[%s9562_s0 + $0x194] sm:$0xf0] }
 0x152   :  { %3404 = vmatpush.bf16.msra.mxu2 %v6970_v57  ;;  %v6275_v35 = vor.u32 %v6942_v45, %v6274_v6 }
 0x154   :  { %v974_v50 = vpop.f32.mrf.mxu3 }
 0x155   :  { %v999_v58 = vadd.f32 %v974_v50, %v7987_v0  ;;  %v2289_v0 = vunpack.c.l.b16 %v2231_v20  ;;  %v2253_v20 = vor.u32 %v2252_v27, %v2249_v23  ;;  %v6991_v27 = vld [vmem:[%s9565_s4 + $0xb8] sm:$0xff]  ;;  %v8346_v43 = vpop.f32.mrf.mxu1 }
 0x156   :  { %v8304_v54 = vpop.f32.mrf.mxu0  ;;  %3659 = vmatpush.bf16.msrb.mxu3 %v6991_v27 }
 0x157   :  { %v8306_v62 = vadd.f32 %v1168_v53, %v999_v58  ;;  %v6343_v53 = vld [vmem:[%s9562_s0 + $0x164] sm:$0x1]  ;;  %v2298_v41 = vpack.c.b16 %v2289_v0, %v2288_v12  ;;  %v2239_v58 = vor.u32 %v2238_v13, %v2235_v19  ;;  %v2254_v15 = vrot.slane %v2253_v20, 4  ;;  %v8339_v13 = vpop.f32.mrf.mxu2 }
 0x158   :  { %v2256_v60 = vshll.u32 %v6343_v53, 16 }
 0x159   :  { %v2240_v61 = vrot.slane %v2239_v58, 4 }
 0x15a   :  { %v2258_v57 = vrot.slane %v2256_v60, 5 }
 0x15b   :  { %v2245_v45 = vsel %vm7309_vm2, %v2240_v61, %v2244_v17  ;;  %v2492_v61 = vld [vmem:[#allocation2 + $0x8] sm:$0x1]  ;;  %v2554_v17 = vld [vmem:[#allocation2 + $0xc] sm:$0x1] }
 0x15c   :  { %v8323_v2 = vpop.f32.mrf.mxu3  ;;  %v2259_v19 = vsel %vm7309_vm2, %v2254_v15, %v2258_v57  ;;  %v2290_v53 = vunpack.c.l.b16 %v2245_v45  ;;  %v2493_v57 = vsel %vm8362_vm6, 0, %v2492_v61  ;;  %v2555_v45 = vsel %vm8369_vm7, 0, %v2554_v17 }
 0x15d   :  { %2494 = vst [vmem:[#allocation2 + $0x8] sm:$0x1] %v2493_v57  ;;  %v2557_v57 = vld [vmem:[#allocation2 + $0x14] sm:$0x1] }
 0x15e   :  { %v1173_v50 = vpop.f32.mrf.mxu0  ;;  %2556 = vst [vmem:[#allocation2 + $0xc] sm:$0x1] %v2555_v45  ;;  %v6987_v45 = vld [vmem:[%s9565_s4 + $0x98] sm:$0xff] }
 0x15f   :  { %v8381_v27 = vpop.f32.mrf.mxu2 }
 0x161   :  { %1977 = vmatmul.bf16.gmra.mxu3 %v6275_v35  ;;  %2394 = vmatmul.bf16.gmra.mxu0 %v2298_v41  ;;  %v6278_v35 = vld [vmem:[%s9562_s0 + $0x1a0] sm:$0xf]  ;;  %v6943_v41 = vld [vmem:[%s9562_s0 + $0x1a4] sm:$0xf0] }
 0x162   :  { %v6279_v59 = vor.u32 %v6943_v41, %v6278_v35  ;;  %v7005_v35 = vld [vmem:[%s9565_s4 + $0xe8] sm:$0xff]  ;;  %v6988_v41 = vld [vmem:[%s9565_s4 + $0xa0] sm:$0xff] }
 0x164   :  { %v979_v6 = vpop.f32.mrf.mxu3 }
 0x165   :  { %v1001_v12 = vadd.f32 %v979_v6, %v8041_v18  ;;  %v2291_v18 = vunpack.c.l.b16 %v2259_v19  ;;  %v6989_v19 = vld [vmem:[%s9565_s4 + $0xa8] sm:$0xff] }
 0x166   :  { %v8333_v0 = vpop.f32.mrf.mxu0 }
 0x167   :  { %v8341_v23 = vadd.f32 %v1173_v50, %v1001_v12  ;;  %v6990_v50 = vld [vmem:[%s9565_s4 + $0xb0] sm:$0xff]  ;;  %v2299_v20 = vpack.c.b16 %v2291_v18, %v2290_v53  ;;  %v7150_v53 = vmov 0   ;;  %v8383_v18 = vpop.f32.mrf.mxu1 }
 0x168   :  { %3660 = vmatpush.bf16.msrb.mxu3 %v6990_v50  ;;  %v7006_v12 = vld [vmem:[%s9565_s4 + $0xf0] sm:$0xff]  ;;  %2477 = vst [vmem:[#allocation2] sm:$0xf] %v7150_v53 }
 0x169   :  { %3853 = vmatpush.bf16.msrb.mxu0 %v7006_v12  ;;  %2478 = vst [vmem:[#allocation2 + $0x4] sm:$0x1] %v7150_v53  ;;  %v7004_v12 = vld [vmem:[%s9565_s4 + $0xe0] sm:$0xff] }
 0x16a   :  { %2479 = vst [vmem:[#allocation2 + $0x50] sm:$0xf] %v7150_v53 }
 0x16b   :  { %2480 = vst [vmem:[#allocation2 + $0x54] sm:$0x1] %v7150_v53 }
 0x16c   :  { %v8360_v58 = vpop.f32.mrf.mxu3  ;;  %3661 = vmatpush.bf16.msrb.mxu3 %v6989_v19  ;;  %2482 = vst [vmem:[#allocation2 + $0x48] sm:$0xf] %v7150_v53 }
 0x16d   :  { %3854 = vmatpush.bf16.msrb.mxu0 %v7005_v35  ;;  %2483 = vst [vmem:[#allocation2 + $0x4c] sm:$0x1] %v7150_v53 }
 0x16e   :  { %v1178_v15 = vpop.f32.mrf.mxu0  ;;  %2484 = vst [vmem:[#allocation2 + $0x98] sm:$0xf] %v7150_v53 }
 0x16f   :  { %v2489_v19 = vld [vmem:[#allocation2] sm:$0x1]  ;;  %2485 = vst [vmem:[#allocation2 + $0x9c] sm:$0x1] %v7150_v53  ;;  %v7002_v53 = vld [vmem:[%s9565_s4 + $0xd0] sm:$0xff] }
 0x170   :  { %3662 = vmatpush.bf16.msrb.mxu3 %v6988_v41  ;;  %v2490_v35 = vsel %vm8362_vm6, 0, %v2489_v19  ;;  %v2551_v41 = vld [vmem:[#allocation2 + $0x4] sm:$0x1]  ;;  %v2560_v19 = vld [vmem:[#allocation2 + $0x1c] sm:$0x1] }
 0x171   :  { %1982 = vmatmul.bf16.gmra.mxu3 %v6279_v59  ;;  %2399 = vmatmul.bf16.gmra.mxu0 %v2299_v20  ;;  %v2495_v20 = vld [vmem:[#allocation2 + $0x10] sm:$0x1]  ;;  %2491 = vst [vmem:[#allocation2] sm:$0x1] %v2490_v35  ;;  %v6968_v35 = vld [vmem:[%s9565_s4] sm:$0xff]  ;;  %v2561_v25 = vsel %vm8369_vm7, 0, %v2560_v19 }
 0x172   :  { %v2496_v17 = vsel %vm8362_vm6, 0, %v2495_v20  ;;  %3855 = vmatpush.bf16.msrb.mxu0 %v7004_v12  ;;  %v8416_v20 = vpop.f32.mrf.mxu2  ;;  %2562 = vst [vmem:[#allocation2 + $0x1c] sm:$0x1] %v2561_v25  ;;  %v8455_v25 = vld [vmem:[%s9563_s2] ss:$0 sm:$0xff] }
 0x173   :  { %2497 = vst [vmem:[#allocation2 + $0x10] sm:$0x1] %v2496_v17  ;;  %v6986_v17 = vld [vmem:[%s9565_s4 + $0x90] sm:$0xff] }
 0x174   :  { %v984_v63 = vpop.f32.mrf.mxu3  ;;  %3663 = vmatpush.bf16.msrb.mxu3 %v6987_v45  ;;  %v2498_v45 = vld [vmem:[#allocation2 + $0x18] sm:$0x1] }
 0x175   :  { %v1003_v50 = vadd.f32 %v984_v63, %v8096_v14  ;;  %v2558_v14 = vsel %vm8369_vm7, 0, %v2557_v57  ;;  %v7003_v63 = vld [vmem:[%s9565_s4 + $0xd8] sm:$0xff]  ;;  %v8421_v57 = vpop.f32.mrf.mxu1 }
 0x176   :  { %v8392_v59 = vpop.f32.mrf.mxu0  ;;  %2559 = vst [vmem:[#allocation2 + $0x14] sm:$0x1] %v2558_v14  ;;  %3856 = vmatpush.bf16.msrb.mxu0 %v7003_v63  ;;  %v6985_v63 = vld [vmem:[%s9565_s4 + $0x88] sm:$0xff] }
 0x177   :  { %v8394_v61 = vadd.f32 %v1178_v15, %v1003_v50  ;;  %v6969_v15 = vld [vmem:[%s9565_s4 + $0x8] sm:$0xff]  ;;  %v2552_v50 = vsel %vm8369_vm7, 0, %v2551_v41  ;;  %v2499_v41 = vsel %vm8362_vm6, 0, %v2498_v45 }
 0x178   :  { %3405 = vmatpush.bf16.msra.mxu2 %v6969_v15  ;;  %2553 = vst [vmem:[#allocation2 + $0x4] sm:$0x1] %v2552_v50  ;;  %3664 = vmatpush.bf16.msrb.mxu3 %v6986_v17  ;;  %v1600_v15 = vadd.f32 %v8274_v8, %v8123_v24  ;;  %v6977_v24 = vld [vmem:[%s9565_s4 + $0x48] sm:$0xff]  ;;  %v6984_v17 = vld [vmem:[%s9565_s4 + $0x80] sm:$0xff] }
 0x179   :  { %2500 = vst [vmem:[#allocation2 + $0x18] sm:$0x1] %v2499_v41  ;;  %v7001_v8 = vld [vmem:[%s9565_s4 + $0xc8] sm:$0xff]  ;;  %3260 = vmatpush.bf16.msra.mxu1 %v6977_v24  ;;  %v1601_v24 = vadd.f32 %v8297_v49, %v8144_v26  ;;  %v6976_v26 = vld [vmem:[%s9565_s4 + $0x40] sm:$0xff] }
 0x17a   :  { %3857 = vmatpush.bf16.msrb.mxu0 %v7002_v53  ;;  %v1794_v50 = vadd.f32 %v8289_v52, %v1600_v15  ;;  %v8450_v19 = vpop.f32.mrf.mxu2  ;;  %v2563_v52 = vld [vmem:[#allocation2 + $0x24] sm:$0x1] }
 0x17b   :  { %v7000_v15 = vld [vmem:[%s9565_s4 + $0xc0] sm:$0xff]  ;;  %v2564_v38 = vsel %vm8369_vm7, 0, %v2563_v52  ;;  %v1795_v49 = vadd.f32 %v8325_v34, %v1601_v24  ;;  %v374_v52 = vadd.f32 %v7939_v21, %v7962_v37  ;;  %v2567_v24 = vsel %vm8369_vm7, 0, %v2566_v46 }
 0x17c   :  { %v8423_v12 = vpop.f32.mrf.mxu3  ;;  %3406 = vmatpush.bf16.msra.mxu2 %v6968_v35  ;;  %3665 = vmatpush.bf16.msrb.mxu3 %v6985_v63  ;;  %v2501_v63 = vld [vmem:[#allocation2 + $0x20] sm:$0x1]  ;;  %2565 = vst [vmem:[#allocation2 + $0x24] sm:$0x1] %v2564_v38 }
 0x17d   :  { %v8457_v41 = vpop.f32.mrf.mxu1  ;;  %3261 = vmatpush.bf16.msra.mxu1 %v6976_v26  ;;  %2568 = vst [vmem:[#allocation2 + $0x2c] sm:$0x1] %v2567_v24 }
 0x17e   :  { %v2365_v14 = vpop.f32.mrf.mxu0  ;;  %3858 = vmatpush.bf16.msrb.mxu0 %v7001_v8  ;;  %v2502_v8 = vsel %vm8362_vm6, 0, %v2501_v63 }
 0x17f   :  { %2503 = vst [vmem:[#allocation2 + $0x20] sm:$0x1] %v2502_v8  ;;  %v2504_v8 = vld [vmem:[#allocation2 + $0x28] sm:$0x1] }
 0x180   :  { %3666 = vmatpush.bf16.msrb.mxu3 %v6984_v17  ;;  %v2505_v34 = vsel %vm8362_vm6, 0, %v2504_v8 }
 0x181   :  { %2506 = vst [vmem:[#allocation2 + $0x28] sm:$0x1] %v2505_v34 }
 0x182   :  { %3859 = vmatpush.bf16.msrb.mxu0 %v7000_v15  ;;  %v8483_v32 = vpop.f32.mrf.mxu2 }
 0x184   :  { %v1948_v45 = vpop.f32.mrf.mxu3 }
 0x185   :  { %v1988_v35 = vadd.f32 %v1948_v45, %v1794_v50  ;;  %v8467_v45 = vld [vmem:[%s9564_s3] ss:$0 sm:$0xff]  ;;  %v8491_v21 = vpop.f32.mrf.mxu1 }
 0x186   :  { %v2367_v53 = vpop.f32.mrf.mxu0 }
 0x187   :  { %v2405_v50 = vadd.f32 %v2365_v14, %v1988_v35 }
 0x189   :  { %v2425_v17 = vmul.f32 %v8455_v25, %v2405_v50  ;;  %v1602_v50 = vadd.f32 %v8330_v1, %v8157_v29 }
 0x18b   :  { %v2445_v14 = vadd.f32 %v8467_v45, %v2425_v17  ;;  %v379_v17 = vadd.f32 %v7996_v44, %v8016_v28  ;;  %v1796_v1 = vadd.f32 %v8339_v13, %v1602_v50  ;;  %v384_v28 = vadd.f32 %v8043_v33, %v8073_v42 }
 0x18c   :  { %v1950_v35 = vpop.f32.mrf.mxu3  ;;  %v1604_v33 = vadd.f32 %v8383_v18, %v8191_v5  ;;  %v1605_v42 = vadd.f32 %v8421_v57, %v8212_v16  ;;  %v1606_v57 = vadd.f32 %v8457_v41, %v8225_v51 }
 0x18d   :  { %v2461_v40 = vmax.f32 %v2445_v14, 0.0  ;;  %v1989_v63 = vadd.f32 %v1950_v35, %v1795_v49  ;;  %v2886_v49 = vld [vmem:[#allocation2] sm:$0xf]  ;;  %v8500_v44 = vadd.f32 %v8021_v36, %v379_v17  ;;  %v2790_v14 = vld [vmem:[#allocation2 + $0x8] sm:$0xf]  ;;  %v8528_v18 = vadd.f32 %v8077_v47, %v384_v28 }
 0x18e   :  { %v2370_v38 = vpop.f32.mrf.mxu0  ;;  %v2793_v35 = vld [vmem:[#allocation2 + $0xc] sm:$0x1] }
 0x18f   :  { %v2611_v15 = vpack.c.bf16 %v2461_v40, %v2461_v40  ;;  %v2406_v9 = vadd.f32 %v2367_v53, %v1989_v63  ;;  %v8495_v40 = vadd.f32 %v7967_v3, %v374_v52  ;;  %v1603_v3 = vadd.f32 %v8346_v43, %v8178_v7  ;;  %v2507_v7 = vld [vmem:[#allocation2 + $0x30] sm:$0x1] }
 0x190   :  { %v2935_v43 = vshrl.u32 %v2886_v49, 16  ;;  %v2508_v5 = vsel %vm8362_vm6, 0, %v2507_v7  ;;  %v8550_v7 = vadd.f32 %v8450_v19, %v1605_v42 }
 0x191   :  { %v2628_v37 = vshrl.u32 %v2611_v15, 16  ;;  %v2426_v29 = vmul.f32 %v8455_v25, %v2406_v9  ;;  %v2631_v26 = vshll.u32 %v2611_v15, 16  ;;  %v389_v9 = vadd.f32 %v8251_v30, %v8110_v48  ;;  %v2569_v30 = vld [vmem:[#allocation2 + $0x34] sm:$0x1]  ;;  %2509 = vst [vmem:[#allocation2 + $0x30] sm:$0x1] %v2508_v5 }
 0x192   :  { %v2938_v15 = vshll.u32 %v2886_v49, 16  ;;  %v2570_v16 = vsel %vm8369_vm7, 0, %v2569_v30  ;;  %v1580_v49 = vpop.f32.mrf.mxu1  ;;  %v1797_v28 = vadd.f32 %v8381_v27, %v1603_v3  ;;  %v1607_v27 = vadd.f32 %v8491_v21, %v8246_v22  ;;  %v2796_v3 = vld [vmem:[#allocation2 + $0x10] sm:$0xf]  ;;  %v2799_v30 = vld [vmem:[#allocation2 + $0x14] sm:$0x1] }
 0x193   :  { %v2630_v53 = vrot.slane %v2628_v37, 7  ;;  %v2446_v46 = vadd.f32 %v8467_v45, %v2426_v29  ;;  %v8521_v29 = vld [vmem:[#allocation2 + $0x4] sm:$0x1]  ;;  %2571 = vst [vmem:[#allocation2 + $0x34] sm:$0x1] %v2570_v16 }
 0x194   :  { %v1953_v63 = vpop.f32.mrf.mxu3  ;;  %v2940_v47 = vrot.slane %v2938_v15, 5 }
 0x195   :  { %v2633_v52 = vor.u32 %v2631_v26, %v2630_v53  ;;  %v2634_v36 = vrot.slane %v2630_v53, 4  ;;  %v2462_v50 = vmax.f32 %v2446_v46, 0.0  ;;  %v1990_v8 = vadd.f32 %v1953_v63, %v1796_v1  ;;  %v3448_v1 = vld [vmem:[#allocation2] sm:$0xe]  ;;  %v1771_v53 = vpop.f32.mrf.mxu2  ;;  %v7023_v46 = vld [vmem:[%s9565_s4 + $0x178] sm:$0xff] }
 0x196   :  { %v2372_v48 = vpop.f32.mrf.mxu0  ;;  %v2937_v63 = vrot.slane %v2935_v43, 4  ;;  %4542 = vmatpush.bf16.msrb.mxu2 %v7023_v46 }
 0x197   :  { %v2791_v34 = vsel %vm8509_vm9, %v2633_v52, %v2790_v14  ;;  %v2794_v24 = vsel %vm8362_vm6, %v2634_v36, %v2793_v35  ;;  %v2612_v17 = vpack.c.bf16 %v2462_v50, %v2462_v50  ;;  %v2407_v37 = vadd.f32 %v2370_v38, %v1990_v8 }
 0x198   :  { %2792 = vst [vmem:[#allocation2 + $0x8] sm:$0xf] %v2791_v34  ;;  %v6472_v14 = vrot.slane %v3448_v1, 9  ;;  %v3501_v35 = vrot.slane %v8521_v29, 5  ;;  %v8546_v50 = vadd.f32 %v8282_v10, %v389_v9  ;;  %v1798_v8 = vadd.f32 %v8416_v20, %v1604_v33 }
 0x199   :  { %2795 = vst [vmem:[#allocation2 + $0xc] sm:$0x1] %v2794_v24  ;;  %v2636_v38 = vshrl.u32 %v2612_v17, 16  ;;  %v2427_v26 = vmul.f32 %v8455_v25, %v2407_v37  ;;  %v2639_v51 = vshll.u32 %v2612_v17, 16  ;;  %v6410_v37 = vld [vmem:[#allocation2] sm:$0xf]  ;;  %v8555_v1 = vadd.f32 %v8483_v32, %v1606_v57 }
 0x19a   :  { %v3502_v20 = vsel %vm8541_vm12, %v6472_v14, %v3501_v35  ;;  %v2941_v19 = vor.u32 %v2940_v47, %v2937_v63  ;;  %v2944_v9 = vshll.u32 %v8521_v29, 16  ;;  %v8567_v32 = vadd.f32 %v1580_v49, %v8263_v4 }
 0x19b   :  { %v2638_v52 = vrot.slane %v2636_v38, 7  ;;  %v2447_v41 = vadd.f32 %v8467_v45, %v2427_v26  ;;  %v8564_v38 = vadd.f32 %v1771_v53, %v1607_v27  ;;  %v998_v29 = vadd.f32 %v8284_v11, %v8495_v40 }
 0x19c   :  { %v1955_v43 = vpop.f32.mrf.mxu3  ;;  %v3579_v4 = vunpack.c.l.b16 %v3502_v20  ;;  %v2942_v47 = vrot.slane %v2941_v19, 4 }
 0x19d   :  { %v2641_v15 = vor.u32 %v2639_v51, %v2638_v52  ;;  %v2642_v34 = vrot.slane %v2638_v52, 4  ;;  %v2463_v24 = vmax.f32 %v2447_v41, 0.0  ;;  %v1991_v17 = vadd.f32 %v1955_v43, %v1797_v28  ;;  %v1774_v52 = vpop.f32.mrf.mxu2  ;;  %v2802_v41 = vld [vmem:[#allocation2 + $0x18] sm:$0xf]  ;;  %v2805_v43 = vld [vmem:[#allocation2 + $0x1c] sm:$0x1] }
 0x19e   :  { %v2375_v10 = vpop.f32.mrf.mxu0  ;;  %v2946_v28 = vrot.slane %v2944_v9, 5 }
 0x19f   :  { %v2797_v22 = vsel %vm8509_vm9, %v2641_v15, %v2796_v3  ;;  %v2800_v21 = vsel %vm8362_vm6, %v2642_v34, %v2799_v30  ;;  %v2613_v33 = vpack.c.bf16 %v2463_v24, %v2463_v24  ;;  %v2408_v42 = vadd.f32 %v2372_v48, %v1991_v17  ;;  %v6960_v5 = vld [vmem:[#allocation2 + $0x4] sm:$0xf0]  ;;  %v7015_v48 = vld [vmem:[%s9565_s4 + $0x138] sm:$0xff]  ;;  %v1582_v30 = vpop.f32.mrf.mxu1 }
 0x1a0   :  { %v3449_v16 = vld [vmem:[#allocation2 + $0x8] sm:$0xe]  ;;  %2798 = vst [vmem:[#allocation2 + $0x10] sm:$0xf] %v2797_v22  ;;  %v6411_v57 = vor.u32 %v6960_v5, %v6410_v37  ;;  %v2919_v26 = vld [vmem:[#allocation2 + $0xc] sm:$0x1]  ;;  %4269 = vmatpush.bf16.msrb.mxu1 %v7015_v48 }
 0x1a1   :  { %v6473_v46 = vrot.slane %v3449_v16, 9  ;;  %2801 = vst [vmem:[#allocation2 + $0x14] sm:$0x1] %v2800_v21  ;;  %v2644_v14 = vshrl.u32 %v2613_v33, 16  ;;  %v2428_v35 = vmul.f32 %v8455_v25, %v2408_v42  ;;  %v3505_v63 = vrot.slane %v2919_v26, 5 }
 0x1a2   :  { %v2647_v53 = vshll.u32 %v2613_v33, 16  ;;  %3407 = vmatmul.bf16.vlgmr.msra.gmra.mxu2 %v6411_v57  ;;  %v2887_v49 = vld [vmem:[#allocation2 + $0x8] sm:$0xf]  ;;  %v2510_v3 = vld [vmem:[#allocation2 + $0x38] sm:$0x1]  ;;  %v2958_v17 = vshll.u32 %v2919_v26, 16  ;;  %v1192_v33 = vadd.f32 %v8261_v55, %v998_v29  ;;  %v2947_v55 = vsel %vm7309_vm2, %v2942_v47, %v2946_v28 }
 0x1a3   :  { %v2646_v51 = vrot.slane %v2644_v14, 7  ;;  %v2448_v11 = vadd.f32 %v8467_v45, %v2428_v35  ;;  %v3506_v40 = vsel %vm8541_vm12, %v6473_v46, %v3505_v63  ;;  %v2949_v27 = vshrl.u32 %v2887_v49, 16  ;;  %v2572_v21 = vld [vmem:[#allocation2 + $0x3c] sm:$0x1]  ;;  %v6522_v63 = vld [vmem:[#allocation2 + $0x8] sm:$0xf] }
 0x1a4   :  { %v1958_v15 = vpop.f32.mrf.mxu3  ;;  %v3580_v34 = vunpack.c.l.b16 %v3506_v40  ;;  %v2952_v24 = vshll.u32 %v2887_v49, 16  ;;  %v2511_v37 = vsel %vm8362_vm6, 0, %v2510_v3  ;;  %v7022_v40 = vld [vmem:[%s9565_s4 + $0x170] sm:$0xff]  ;;  %v8601_v47 = vadd.f32 %v1582_v30, %v1192_v33  ;;  %v2808_v3 = vld [vmem:[#allocation2 + $0x20] sm:$0xf] }
 0x1a5   :  { %v2649_v20 = vor.u32 %v2647_v53, %v2646_v51  ;;  %v2650_v19 = vrot.slane %v2646_v51, 4  ;;  %v2464_v9 = vmax.f32 %v2448_v11, 0.0  ;;  %v1992_v22 = vadd.f32 %v1958_v15, %v1798_v8  ;;  %2512 = vst [vmem:[#allocation2 + $0x38] sm:$0x1] %v2511_v37  ;;  %4543 = vmatpush.bf16.msrb.mxu2 %v7022_v40  ;;  %v8611_v33 = vpop.f32.mrf.mxu2 }
 0x1a6   :  { %v2377_v42 = vpop.f32.mrf.mxu0  ;;  %v3595_v5 = vpack.c.b16 %v3580_v34, %v3579_v4  ;;  %v2951_v16 = vrot.slane %v2949_v27, 4  ;;  %v2954_v57 = vrot.slane %v2952_v24, 5  ;;  %v2573_v4 = vsel %vm8369_vm7, 0, %v2572_v21  ;;  %v2513_v34 = vld [vmem:[#allocation2 + $0x40] sm:$0x1] }
 0x1a7   :  { %v2803_v46 = vsel %vm8509_vm9, %v2649_v20, %v2802_v41  ;;  %v2806_v26 = vsel %vm8362_vm6, %v2650_v19, %v2805_v43  ;;  %v2614_v14 = vpack.c.bf16 %v2464_v9, %v2464_v9  ;;  %v2409_v35 = vadd.f32 %v2375_v10, %v1992_v22  ;;  %v6992_v48 = vld [vmem:[#allocation2 + $0xc] sm:$0xf0]  ;;  %v2811_v43 = vld [vmem:[#allocation2 + $0x24] sm:$0x1]  ;;  %2574 = vst [vmem:[#allocation2 + $0x3c] sm:$0x1] %v2573_v4 }
 0x1a8   :  { %v8585_v53 = vld [vmem:[#allocation2 + $0x10] sm:$0xe]  ;;  %2804 = vst [vmem:[#allocation2 + $0x18] sm:$0xf] %v2803_v46  ;;  %3667 = vmatmul.bf16.vlgmr.msrb.gmra.mxu3 %v3595_v5  ;;  %v6523_v8 = vor.u32 %v6992_v48, %v6522_v63  ;;  %v2955_v29 = vor.u32 %v2954_v57, %v2951_v16  ;;  %v8591_v49 = vld [vmem:[#allocation2 + $0x14] sm:$0x1]  ;;  %v8599_v27 = vadd.f32 %v1774_v52, %v8567_v32  ;;  %v3174_v37 = vunpack.c.l.b16 %v2947_v55 }
 0x1a9   :  { %2807 = vst [vmem:[#allocation2 + $0x1c] sm:$0x1] %v2806_v26  ;;  %v2652_v51 = vshrl.u32 %v2614_v14, 16  ;;  %v2429_v10 = vmul.f32 %v8455_v25, %v2409_v35  ;;  %v2960_v41 = vrot.slane %v2958_v17, 5  ;;  %v6474_v11 = vrot.slane %v8585_v53, 9  ;;  %v1585_v26 = vpop.f32.mrf.mxu1 }
 0x1aa   :  { %v2655_v28 = vshll.u32 %v2614_v14, 16  ;;  %3860 = vmatmul.bf16.vlgmr.msrb.gmra.mxu0 %v6523_v8  ;;  %v2956_v15 = vrot.slane %v2955_v29, 4  ;;  %v2514_v20 = vsel %vm8362_vm6, 0, %v2513_v34  ;;  %v2575_v19 = vld [vmem:[#allocation2 + $0x44] sm:$0x1]  ;;  %v3509_v9 = vrot.slane %v8591_v49, 5 }
 0x1ab   :  { %v2654_v24 = vrot.slane %v2652_v51, 7  ;;  %v2449_v17 = vadd.f32 %v8467_v45, %v2429_v10  ;;  %v2888_v32 = vld [vmem:[#allocation2 + $0x10] sm:$0xf]  ;;  %2515 = vst [vmem:[#allocation2 + $0x40] sm:$0x1] %v2514_v20  ;;  %v2576_v22 = vsel %vm8369_vm7, 0, %v2575_v19 }
 0x1ac   :  { %v1960_v52 = vpop.f32.mrf.mxu3  ;;  %v2961_v30 = vsel %vm7309_vm2, %v2956_v15, %v2960_v41  ;;  %v2963_v21 = vshrl.u32 %v2888_v32, 16  ;;  %2577 = vst [vmem:[#allocation2 + $0x44] sm:$0x1] %v2576_v22  ;;  %v2966_v48 = vshll.u32 %v2888_v32, 16  ;;  %v2972_v53 = vshll.u32 %v8591_v49, 16 }
 0x1ad   :  { %v2657_v5 = vor.u32 %v2655_v28, %v2654_v24  ;;  %v2658_v16 = vrot.slane %v2654_v24, 4  ;;  %v2465_v57 = vmax.f32 %v2449_v17, 0.0  ;;  %v1993_v46 = vadd.f32 %v1960_v52, %v8550_v7  ;;  %v6414_v51 = vld [vmem:[#allocation2 + $0x10] sm:$0xf] }
 0x1ae   :  { %v3175_v14 = vunpack.c.l.b16 %v2961_v30  ;;  %v2380_v35 = vpop.f32.mrf.mxu0  ;;  %v2965_v63 = vrot.slane %v2963_v21, 4  ;;  %v2968_v34 = vrot.slane %v2966_v48, 5  ;;  %v8620_v24 = vadd.f32 %v1585_v26, %v8306_v62  ;;  %v7014_v62 = vld [vmem:[%s9565_s4 + $0x130] sm:$0xff]  ;;  %v2814_v21 = vld [vmem:[#allocation2 + $0x28] sm:$0xf] }
 0x1af   :  { %v2809_v8 = vsel %vm8509_vm9, %v2657_v5, %v2808_v3  ;;  %v2812_v55 = vsel %vm8362_vm6, %v2658_v16, %v2811_v43  ;;  %v2615_v29 = vpack.c.bf16 %v2465_v57, %v2465_v57  ;;  %v2410_v4 = vadd.f32 %v2377_v42, %v1993_v46  ;;  %v6961_v10 = vld [vmem:[#allocation2 + $0x14] sm:$0xf0]  ;;  %4270 = vmatpush.bf16.msrb.mxu1 %v7014_v62 }
 0x1b0   :  { %v3451_v41 = vld [vmem:[#allocation2 + $0x18] sm:$0xe]  ;;  %2810 = vst [vmem:[#allocation2 + $0x20] sm:$0xf] %v2809_v8  ;;  %v3190_v7 = vpack.c.b16 %v3175_v14, %v3174_v37  ;;  %v6415_v40 = vor.u32 %v6961_v10, %v6414_v51  ;;  %v2921_v28 = vld [vmem:[#allocation2 + $0x1c] sm:$0x1]  ;;  %v3510_v43 = vsel %vm8541_vm12, %v6474_v11, %v3509_v9  ;;  %v1000_v42 = vadd.f32 %v8323_v2, %v8500_v44  ;;  %v8638_v10 = vpop.f32.mrf.mxu2 }
 0x1b1   :  { %v6475_v15 = vrot.slane %v3451_v41, 9  ;;  %2813 = vst [vmem:[#allocation2 + $0x24] sm:$0x1] %v2812_v55  ;;  %v2660_v49 = vshrl.u32 %v2615_v29, 16  ;;  %v2430_v3 = vmul.f32 %v8455_v25, %v2410_v4  ;;  %v2663_v17 = vshll.u32 %v2615_v29, 16 }
 0x1b2   :  { %3262 = vmatmul.bf16.vlgmr.msra.gmra.mxu1 %v3190_v7  ;;  %3412 = vmatmul.bf16.gmra.mxu2 %v6415_v40  ;;  %v3513_v37 = vrot.slane %v2921_v28, 5  ;;  %v2889_v20 = vld [vmem:[#allocation2 + $0x18] sm:$0xf]  ;;  %v2969_v19 = vor.u32 %v2968_v34, %v2965_v63  ;;  %v2817_v11 = vld [vmem:[#allocation2 + $0x2c] sm:$0x1]  ;;  %v3581_v44 = vunpack.c.l.b16 %v3510_v43  ;;  %v8633_v5 = vrot.slane %v2972_v53, 5 }
 0x1b3   :  { %v2662_v32 = vrot.slane %v2660_v49, 7  ;;  %v2450_v52 = vadd.f32 %v8467_v45, %v2430_v3  ;;  %v2977_v30 = vshrl.u32 %v2889_v20, 16  ;;  %v2980_v22 = vshll.u32 %v2889_v20, 16  ;;  %v6526_v63 = vld [vmem:[#allocation2 + $0x18] sm:$0xf] }
 0x1b4   :  { %v1963_v9 = vpop.f32.mrf.mxu3  ;;  %v3514_v2 = vsel %vm8541_vm12, %v6475_v15, %v3513_v37  ;;  %v2986_v16 = vshll.u32 %v2921_v28, 16  ;;  %v2970_v55 = vrot.slane %v2969_v19, 4  ;;  %v2522_v51 = vld [vmem:[#allocation2 + $0x58] sm:$0x1]  ;;  %v8647_v34 = vadd.f32 %v8304_v54, %v1000_v42  ;;  %v7021_v54 = vld [vmem:[%s9565_s4 + $0x168] sm:$0xff] }
 0x1b5   :  { %v2665_v57 = vor.u32 %v2663_v17, %v2662_v32  ;;  %v2666_v46 = vrot.slane %v2662_v32, 4  ;;  %v2466_v26 = vmax.f32 %v2450_v52, 0.0  ;;  %v1994_v14 = vadd.f32 %v1963_v9, %v8555_v1  ;;  %v2584_v1 = vld [vmem:[#allocation2 + $0x5c] sm:$0x1]  ;;  %v2820_v32 = vld [vmem:[#allocation2 + $0x30] sm:$0xf]  ;;  %4544 = vmatpush.bf16.msrb.mxu2 %v7021_v54 }
 0x1b6   :  { %v8636_v48 = vpop.f32.mrf.mxu0  ;;  %v3582_v8 = vunpack.c.l.b16 %v3514_v2  ;;  %v2979_v29 = vrot.slane %v2977_v30, 4  ;;  %v2982_v4 = vrot.slane %v2980_v22, 5  ;;  %v2988_v62 = vrot.slane %v2986_v16, 5  ;;  %v2823_v52 = vld [vmem:[#allocation2 + $0x34] sm:$0x1] }
 0x1b7   :  { %v2815_v53 = vsel %vm8509_vm9, %v2665_v57, %v2814_v21  ;;  %v2818_v41 = vsel %vm8362_vm6, %v2666_v46, %v2817_v11  ;;  %v2616_v7 = vpack.c.bf16 %v2466_v26, %v2466_v26  ;;  %v2411_v40 = vadd.f32 %v2380_v35, %v1994_v14  ;;  %v6993_v28 = vld [vmem:[#allocation2 + $0x1c] sm:$0xf0] }
 0x1b8   :  { %v8644_v15 = vld [vmem:[#allocation2 + $0x20] sm:$0xe]  ;;  %2816 = vst [vmem:[#allocation2 + $0x28] sm:$0xf] %v2815_v53  ;;  %v3596_v49 = vpack.c.b16 %v3582_v8, %v3581_v44  ;;  %v6527_v3 = vor.u32 %v6993_v28, %v6526_v63  ;;  %v2983_v43 = vor.u32 %v2982_v4, %v2979_v29  ;;  %v8649_v17 = vld [vmem:[#allocation2 + $0x24] sm:$0x1]  ;;  %v2975_v2 = vsel %vm7309_vm2, %v2970_v55, %v8633_v5  ;;  %v1587_v29 = vpop.f32.mrf.mxu1 }
 0x1b9   :  { %v2890_v37 = vld [vmem:[#allocation2 + $0x20] sm:$0xf]  ;;  %2819 = vst [vmem:[#allocation2 + $0x2c] sm:$0x1] %v2818_v41  ;;  %v2668_v20 = vshrl.u32 %v2616_v7, 16  ;;  %v2431_v19 = vmul.f32 %v8455_v25, %v2411_v40  ;;  %v2523_v35 = vsel %vm8362_vm6, 0, %v2522_v51  ;;  %v3176_v55 = vunpack.c.l.b16 %v2975_v2 }
 0x1ba   :  { %v2671_v42 = vshll.u32 %v2616_v7, 16  ;;  %3672 = vmatmul.bf16.gmra.mxu3 %v3596_v49  ;;  %3865 = vmatmul.bf16.gmra.mxu0 %v6527_v3  ;;  %v2984_v30 = vrot.slane %v2983_v43, 4  ;;  %2524 = vst [vmem:[#allocation2 + $0x58] sm:$0x1] %v2523_v35  ;;  %v2585_v22 = vsel %vm8369_vm7, 0, %v2584_v1  ;;  %v6476_v21 = vrot.slane %v8644_v15, 9 }
 0x1bb   :  { %v2670_v11 = vrot.slane %v2668_v20, 7  ;;  %v2451_v9 = vadd.f32 %v8467_v45, %v2431_v19  ;;  %2586 = vst [vmem:[#allocation2 + $0x5c] sm:$0x1] %v2585_v22  ;;  %v2525_v44 = vld [vmem:[#allocation2 + $0x60] sm:$0x1]  ;;  %v2991_v16 = vshrl.u32 %v2890_v37, 16  ;;  %v8690_v22 = vadd.f32 %v8638_v10, %v8620_v24 }
 0x1bc   :  { %v1965_v57 = vpop.f32.mrf.mxu3  ;;  %v2989_v46 = vsel %vm7309_vm2, %v2984_v30, %v2988_v62  ;;  %v3517_v26 = vrot.slane %v8649_v17, 5  ;;  %v2526_v14 = vsel %vm8362_vm6, 0, %v2525_v44  ;;  %v2587_v63 = vld [vmem:[#allocation2 + $0x64] sm:$0x1]  ;;  %v2994_v8 = vshll.u32 %v2890_v37, 16  ;;  %v7013_v24 = vld [vmem:[%s9565_s4 + $0x128] sm:$0xff] }
 0x1bd   :  { %v2673_v4 = vor.u32 %v2671_v42, %v2670_v11  ;;  %v2674_v51 = vrot.slane %v2670_v11, 4  ;;  %v2467_v53 = vmax.f32 %v2451_v9, 0.0  ;;  %v1995_v5 = vadd.f32 %v1965_v57, %v8564_v38  ;;  %2527 = vst [vmem:[#allocation2 + $0x60] sm:$0x1] %v2526_v14  ;;  %v6418_v43 = vld [vmem:[#allocation2 + $0x20] sm:$0xf]  ;;  %4271 = vmatpush.bf16.msrb.mxu1 %v7013_v24 }
 0x1be   :  { %v3177_v41 = vunpack.c.l.b16 %v2989_v46  ;;  %v2385_v7 = vpop.f32.mrf.mxu0  ;;  %v2588_v40 = vsel %vm8369_vm7, 0, %v2587_v63  ;;  %v2993_v28 = vrot.slane %v2991_v16, 4  ;;  %v2996_v54 = vrot.slane %v2994_v8, 5  ;;  %v2826_v10 = vld [vmem:[#allocation2 + $0x38] sm:$0xf] }
 0x1bf   :  { %v2821_v1 = vsel %vm8509_vm9, %v2673_v4, %v2820_v32  ;;  %v2824_v15 = vsel %vm8362_vm6, %v2674_v51, %v2823_v52  ;;  %v2617_v49 = vpack.c.bf16 %v2467_v53, %v2467_v53  ;;  %v2412_v3 = vadd.f32 %v8636_v48, %v1995_v5  ;;  %v6962_v37 = vld [vmem:[#allocation2 + $0x24] sm:$0xf0]  ;;  %v8683_v32 = vpop.f32.mrf.mxu2  ;;  %2589 = vst [vmem:[#allocation2 + $0x64] sm:$0x1] %v2588_v40  ;;  %v2531_v24 = vld [vmem:[#allocation2 + $0x70] sm:$0x1] }
 0x1c0   :  { %v3453_v38 = vld [vmem:[#allocation2 + $0x28] sm:$0xe]  ;;  %2822 = vst [vmem:[#allocation2 + $0x30] sm:$0xf] %v2821_v1  ;;  %v3191_v20 = vpack.c.b16 %v3177_v41, %v3176_v55  ;;  %v6419_v19 = vor.u32 %v6962_v37, %v6418_v43  ;;  %v8677_v62 = vld [vmem:[#allocation2 + $0x2c] sm:$0x1]  ;;  %v8681_v42 = vadd.f32 %v8611_v33, %v8601_v47  ;;  %v3518_v30 = vsel %vm8541_vm12, %v6476_v21, %v3517_v26  ;;  %v1590_v1 = vpop.f32.mrf.mxu1 }
 0x1c1   :  { %v6477_v35 = vrot.slane %v3453_v38, 9  ;;  %2825 = vst [vmem:[#allocation2 + $0x34] sm:$0x1] %v2824_v15  ;;  %v2676_v52 = vshrl.u32 %v2617_v49, 16  ;;  %v2432_v48 = vmul.f32 %v8455_v25, %v2412_v3  ;;  %v3521_v11 = vrot.slane %v8677_v62, 5 }
 0x1c2   :  { %3267 = vmatmul.bf16.gmra.mxu1 %v3191_v20  ;;  %3417 = vmatmul.bf16.gmra.mxu2 %v6419_v19  ;;  %v2997_v47 = vor.u32 %v2996_v54, %v2993_v28  ;;  %v3000_v33 = vshll.u32 %v8649_v17, 16  ;;  %v1611_v9 = vadd.f32 %v1587_v29, %v8647_v34  ;;  %v2679_v44 = vshll.u32 %v2617_v49, 16  ;;  %v2891_v57 = vld [vmem:[#allocation2 + $0x28] sm:$0xf]  ;;  %v2829_v21 = vld [vmem:[#allocation2 + $0x3c] sm:$0x1] }
 0x1c3   :  { %v2678_v2 = vrot.slane %v2676_v52, 7  ;;  %v2452_v16 = vadd.f32 %v8467_v45, %v2432_v48  ;;  %v3522_v26 = vsel %vm8541_vm12, %v6477_v35, %v3521_v11  ;;  %v3583_v14 = vunpack.c.l.b16 %v3518_v30  ;;  %v6530_v51 = vld [vmem:[#allocation2 + $0x28] sm:$0xf] }
 0x1c4   :  { %v1968_v46 = vpop.f32.mrf.mxu3  ;;  %v8701_v63 = vrot.slane %v2997_v47, 4  ;;  %v3005_v17 = vshrl.u32 %v2891_v57, 16  ;;  %v3584_v5 = vunpack.c.l.b16 %v3522_v26  ;;  %v3002_v55 = vrot.slane %v3000_v33, 5  ;;  %v2528_v28 = vld [vmem:[#allocation2 + $0x68] sm:$0x1] }
 0x1c5   :  { %v2681_v34 = vor.u32 %v2679_v44, %v2678_v2  ;;  %v2682_v8 = vrot.slane %v2678_v2, 4  ;;  %v2468_v29 = vmax.f32 %v2452_v16, 0.0  ;;  %v1996_v4 = vadd.f32 %v1968_v46, %v8599_v27  ;;  %v2590_v27 = vld [vmem:[#allocation2 + $0x6c] sm:$0x1]  ;;  %v2832_v47 = vld [vmem:[#allocation2 + $0x40] sm:$0xf] }
 0x1c6   :  { %v8704_v53 = vpop.f32.mrf.mxu0  ;;  %v3007_v41 = vrot.slane %v3005_v17, 4  ;;  %v3008_v40 = vshll.u32 %v2891_v57, 16  ;;  %v3597_v20 = vpack.c.b16 %v3584_v5, %v3583_v14  ;;  %v3014_v54 = vshll.u32 %v8677_v62, 16  ;;  %v2835_v33 = vld [vmem:[#allocation2 + $0x44] sm:$0x1] }
 0x1c7   :  { %v2827_v15 = vsel %vm8509_vm9, %v2681_v34, %v2826_v10  ;;  %v2830_v49 = vsel %vm8362_vm6, %v2682_v8, %v2829_v21  ;;  %v2618_v3 = vpack.c.bf16 %v2468_v29, %v2468_v29  ;;  %v2413_v43 = vadd.f32 %v2385_v7, %v1996_v4  ;;  %v6994_v37 = vld [vmem:[#allocation2 + $0x2c] sm:$0xf0]  ;;  %v7020_v57 = vld [vmem:[%s9565_s4 + $0x160] sm:$0xff]  ;;  %v1784_v10 = vpop.f32.mrf.mxu2  ;;  %v2593_v4 = vld [vmem:[#allocation2 + $0x74] sm:$0x1] }
 0x1c8   :  { %v3454_v38 = vld [vmem:[#allocation2 + $0x30] sm:$0xe]  ;;  %2828 = vst [vmem:[#allocation2 + $0x38] sm:$0xf] %v2827_v15  ;;  %v6531_v19 = vor.u32 %v6994_v37, %v6530_v51  ;;  %v3010_v35 = vrot.slane %v3008_v40, 5  ;;  %v3003_v7 = vsel %vm7309_vm2, %v8701_v63, %v3002_v55  ;;  %v2529_v44 = vsel %vm8362_vm6, 0, %v2528_v28  ;;  %4545 = vmatpush.bf16.msrb.mxu2 %v7020_v57 }
 0x1c9   :  { %v8711_v52 = vld [vmem:[#allocation2 + $0x34] sm:$0x1]  ;;  %2831 = vst [vmem:[#allocation2 + $0x3c] sm:$0x1] %v2830_v49  ;;  %v2684_v48 = vshrl.u32 %v2618_v3, 16  ;;  %v2687_v30 = vshll.u32 %v2618_v3, 16  ;;  %v2433_v11 = vmul.f32 %v8455_v25, %v2413_v43  ;;  %v8729_v63 = vadd.f32 %v8683_v32, %v1611_v9 }
 0x1ca   :  { %3677 = vmatmul.bf16.gmra.mxu3 %v3597_v20  ;;  %3870 = vmatmul.bf16.gmra.mxu0 %v6531_v19  ;;  %v3011_v2 = vor.u32 %v3010_v35, %v3007_v41  ;;  %v2591_v62 = vsel %vm8369_vm7, 0, %v2590_v27  ;;  %v6478_v16 = vrot.slane %v3454_v38, 9  ;;  %2530 = vst [vmem:[#allocation2 + $0x68] sm:$0x1] %v2529_v44  ;;  %v3525_v26 = vrot.slane %v8711_v52, 5 }
 0x1cb   :  { %v2686_v21 = vrot.slane %v2684_v48, 7  ;;  %v2453_v46 = vadd.f32 %v8467_v45, %v2433_v11  ;;  %v2532_v14 = vsel %vm8362_vm6, 0, %v2531_v24  ;;  %v1612_v17 = vadd.f32 %v1590_v1, %v8341_v23  ;;  %2592 = vst [vmem:[#allocation2 + $0x6c] sm:$0x1] %v2591_v62  ;;  %v2892_v40 = vld [vmem:[#allocation2 + $0x30] sm:$0xf] }
 0x1cc   :  { %v1970_v34 = vpop.f32.mrf.mxu3  ;;  %v3012_v8 = vrot.slane %v3011_v2, 4  ;;  %v3016_v29 = vrot.slane %v3014_v54, 5  ;;  %2533 = vst [vmem:[#allocation2 + $0x70] sm:$0x1] %v2532_v14  ;;  %v3178_v32 = vunpack.c.l.b16 %v3003_v7  ;;  %v3526_v23 = vsel %vm8541_vm12, %v6478_v16, %v3525_v26  ;;  %v6422_v43 = vld [vmem:[#allocation2 + $0x30] sm:$0xf] }
 0x1cd   :  { %v2689_v51 = vor.u32 %v2687_v30, %v2686_v21  ;;  %v2690_v5 = vrot.slane %v2686_v21, 4  ;;  %v2469_v55 = vmax.f32 %v2453_v46, 0.0  ;;  %v1997_v41 = vadd.f32 %v1970_v34, %v8681_v42  ;;  %v8748_v30 = vpop.f32.mrf.mxu1  ;;  %v2841_v26 = vld [vmem:[#allocation2 + $0x5c] sm:$0x1] }
 0x1ce   :  { %v3017_v28 = vsel %vm7309_vm2, %v3012_v8, %v3016_v29  ;;  %v2390_v9 = vpop.f32.mrf.mxu0  ;;  %v2594_v1 = vsel %vm8369_vm7, 0, %v2593_v4  ;;  %v3019_v54 = vshrl.u32 %v2892_v40, 16  ;;  %v8746_v48 = vadd.f32 %v1784_v10, %v1612_v17  ;;  %v2838_v10 = vld [vmem:[#allocation2 + $0x58] sm:$0xf] }
 0x1cf   :  { %v2833_v15 = vsel %vm8509_vm9, %v2689_v51, %v2832_v47  ;;  %v2836_v49 = vsel %vm8362_vm6, %v2690_v5, %v2835_v33  ;;  %v2619_v42 = vpack.c.bf16 %v2469_v55, %v2469_v55  ;;  %v2414_v3 = vadd.f32 %v8704_v53, %v1997_v41  ;;  %v6963_v37 = vld [vmem:[#allocation2 + $0x34] sm:$0xf0]  ;;  %v7012_v47 = vld [vmem:[%s9565_s4 + $0x120] sm:$0xff]  ;;  %2595 = vst [vmem:[#allocation2 + $0x74] sm:$0x1] %v2594_v1  ;;  %v8761_v8 = vpop.f32.mrf.mxu2 }
 0x1d0   :  { %v3455_v27 = vld [vmem:[#allocation2 + $0x38] sm:$0xe]  ;;  %2834 = vst [vmem:[#allocation2 + $0x40] sm:$0xf] %v2833_v15  ;;  %v3179_v38 = vunpack.c.l.b16 %v3017_v28  ;;  %v6423_v20 = vor.u32 %v6963_v37, %v6422_v43  ;;  %v8744_v19 = vld [vmem:[#allocation2 + $0x3c] sm:$0x1]  ;;  %v1002_v33 = vadd.f32 %v8360_v58, %v8528_v18  ;;  %v3585_v44 = vunpack.c.l.b16 %v3526_v23  ;;  %4272 = vmatpush.bf16.msrb.mxu1 %v7012_v47 }
 0x1d1   :  { %v6479_v35 = vrot.slane %v3455_v27, 9  ;;  %2837 = vst [vmem:[#allocation2 + $0x44] sm:$0x1] %v2836_v49  ;;  %v2692_v11 = vshrl.u32 %v2619_v42, 16  ;;  %v2434_v7 = vmul.f32 %v8455_v25, %v2414_v3  ;;  %v3529_v53 = vrot.slane %v8744_v19, 5 }
 0x1d2   :  { %v3192_v2 = vpack.c.b16 %v3179_v38, %v3178_v32  ;;  %3422 = vmatmul.bf16.gmra.mxu2 %v6423_v20  ;;  %v2893_v62 = vld [vmem:[#allocation2 + $0x38] sm:$0xf]  ;;  %v3028_v16 = vshll.u32 %v8711_v52, 16  ;;  %v2695_v24 = vshll.u32 %v2619_v42, 16  ;;  %v3021_v18 = vrot.slane %v3019_v54, 4 }
 0x1d3   :  { %v2694_v57 = vrot.slane %v2692_v11, 7  ;;  %v2454_v21 = vadd.f32 %v8467_v45, %v2434_v7  ;;  %v3530_v46 = vsel %vm8541_vm12, %v6479_v35, %v3529_v53  ;;  %v3022_v17 = vshll.u32 %v2892_v40, 16  ;;  %v2519_v23 = vld [vmem:[#allocation2 + $0x50] sm:$0x1]  ;;  %v6534_v42 = vld [vmem:[#allocation2 + $0x38] sm:$0xf] }
 0x1d4   :  { %3272 = vmatmul.bf16.gmra.mxu1 %v3192_v2  ;;  %v1973_v14 = vpop.f32.mrf.mxu3  ;;  %v3586_v58 = vunpack.c.l.b16 %v3530_v46  ;;  %v3033_v34 = vshrl.u32 %v2893_v62, 16  ;;  %v3036_v32 = vshll.u32 %v2893_v62, 16  ;;  %v2534_v43 = vld [vmem:[#allocation2 + $0x78] sm:$0x1]  ;;  %v3042_v38 = vshll.u32 %v8744_v19, 16 }
 0x1d5   :  { %v2697_v29 = vor.u32 %v2695_v24, %v2694_v57  ;;  %v2698_v52 = vrot.slane %v2694_v57, 4  ;;  %v2470_v4 = vmax.f32 %v2454_v21, 0.0  ;;  %v1998_v51 = vadd.f32 %v1973_v14, %v8690_v22  ;;  %v2596_v20 = vld [vmem:[#allocation2 + $0x7c] sm:$0x1]  ;;  %v2581_v53 = vld [vmem:[#allocation2 + $0x54] sm:$0x1] }
 0x1d6   :  { %v8764_v5 = vpop.f32.mrf.mxu0  ;;  %v3598_v55 = vpack.c.b16 %v3586_v58, %v3585_v44  ;;  %v3024_v41 = vrot.slane %v3022_v17, 5  ;;  %v3035_v28 = vrot.slane %v3033_v34, 4  ;;  %v3038_v27 = vrot.slane %v3036_v32, 5  ;;  %v2847_v2 = vld [vmem:[#allocation2 + $0x64] sm:$0x1] }
 0x1d7   :  { %v2839_v1 = vsel %vm8509_vm9, %v2697_v29, %v2838_v10  ;;  %v2842_v40 = vsel %vm8362_vm6, %v2698_v52, %v2841_v26  ;;  %v2620_v15 = vpack.c.bf16 %v2470_v4, %v2470_v4  ;;  %v2415_v49 = vadd.f32 %v2390_v9, %v1998_v51  ;;  %v6995_v3 = vld [vmem:[#allocation2 + $0x3c] sm:$0xf0]  ;;  %v2599_v29 = vld [vmem:[#allocation2 + $0x84] sm:$0x1] }
 0x1d8   :  { %2840 = vst [vmem:[#allocation2 + $0x58] sm:$0xf] %v2839_v1  ;;  %v6535_v22 = vor.u32 %v6995_v3, %v6534_v42  ;;  %v3025_v37 = vor.u32 %v3024_v41, %v3021_v18  ;;  %v1196_v35 = vadd.f32 %v8333_v0, %v1002_v33  ;;  %v3030_v7 = vrot.slane %v3028_v16, 5  ;;  %v2844_v9 = vld [vmem:[#allocation2 + $0x60] sm:$0xf]  ;;  %v7019_v0 = vld [vmem:[%s9565_s4 + $0x158] sm:$0xff]  ;;  %v1595_v33 = vpop.f32.mrf.mxu1  ;;  %v1789_v41 = vpop.f32.mrf.mxu2 }
 0x1d9   :  { %2843 = vst [vmem:[#allocation2 + $0x5c] sm:$0x1] %v2842_v40  ;;  %v2700_v54 = vshrl.u32 %v2620_v15, 16  ;;  %v2435_v11 = vmul.f32 %v8455_v25, %v2415_v49  ;;  %v2703_v47 = vshll.u32 %v2620_v15, 16  ;;  %v3039_v62 = vor.u32 %v3038_v27, %v3035_v28  ;;  %v2537_v19 = vld [vmem:[#allocation2 + $0x80] sm:$0x1]  ;;  %4546 = vmatpush.bf16.msrb.mxu2 %v7019_v0 }
 0x1da   :  { %3682 = vmatmul.bf16.gmra.mxu3 %v3598_v55  ;;  %3875 = vmatmul.bf16.gmra.mxu0 %v6535_v22  ;;  %v3026_v44 = vrot.slane %v3025_v37, 4  ;;  %v2520_v57 = vsel %vm8362_vm6, 0, %v2519_v23  ;;  %v2535_v16 = vsel %vm8362_vm6, 0, %v2534_v43  ;;  %v2597_v10 = vsel %vm8369_vm7, 0, %v2596_v20  ;;  %v3456_v1 = vld [vmem:[#allocation2 + $0x50] sm:$0xe] }
 0x1db   :  { %v2702_v24 = vrot.slane %v2700_v54, 7  ;;  %v2455_v25 = vadd.f32 %v8467_v45, %v2435_v11  ;;  %2521 = vst [vmem:[#allocation2 + $0x50] sm:$0x1] %v2520_v57  ;;  %v3040_v26 = vrot.slane %v3039_v62, 4  ;;  %v3044_v14 = vrot.slane %v3042_v38, 5  ;;  %v7011_v20 = vld [vmem:[%s9565_s4 + $0x118] sm:$0xff] }
 0x1dc   :  { %v1975_v21 = vpop.f32.mrf.mxu3  ;;  %v3031_v46 = vsel %vm7309_vm2, %v3026_v44, %v3030_v7  ;;  %2536 = vst [vmem:[#allocation2 + $0x78] sm:$0x1] %v2535_v16  ;;  %v2582_v58 = vsel %vm8369_vm7, 0, %v2581_v53  ;;  %v1613_v52 = vadd.f32 %v8748_v30, %v1196_v35  ;;  %v1614_v4 = vadd.f32 %v1595_v33, %v8394_v61  ;;  %v8823_v44 = vld [vmem:[%s9564_s3] ss:$0 sm:$0xff]  ;;  %4273 = vmatpush.bf16.msrb.mxu1 %v7011_v20 }
 0x1dd   :  { %v2705_v18 = vor.u32 %v2703_v47, %v2702_v24  ;;  %v2706_v45 = vrot.slane %v2702_v24, 4  ;;  %v2471_v17 = vmax.f32 %v2455_v25, 0.0  ;;  %v1999_v34 = vadd.f32 %v1975_v21, %v8729_v63  ;;  %2598 = vst [vmem:[#allocation2 + $0x7c] sm:$0x1] %v2597_v10 }
 0x1de   :  { %v3045_v51 = vsel %vm7309_vm2, %v3040_v26, %v3044_v14  ;;  %2583 = vst [vmem:[#allocation2 + $0x54] sm:$0x1] %v2582_v58  ;;  %v2538_v55 = vsel %vm8362_vm6, 0, %v2537_v19  ;;  %v3180_v40 = vunpack.c.l.b16 %v3031_v46  ;;  %v2395_v49 = vpop.f32.mrf.mxu0  ;;  %v2600_v43 = vsel %vm8369_vm7, 0, %v2599_v29 }
 0x1df   :  { %v2845_v28 = vsel %vm8509_vm9, %v2705_v18, %v2844_v9  ;;  %v2848_v63 = vsel %vm8362_vm6, %v2706_v45, %v2847_v2  ;;  %v2621_v32 = vpack.c.bf16 %v2471_v17, %v2471_v17  ;;  %v2416_v23 = vadd.f32 %v8764_v5, %v1999_v34  ;;  %v6964_v30 = vld [vmem:[#allocation2 + $0x54] sm:$0xf0]  ;;  %v8806_v5 = vld [vmem:[%s9563_s2] ss:$0 sm:$0xff]  ;;  %2539 = vst [vmem:[#allocation2 + $0x80] sm:$0x1] %v2538_v55 }
 0x1e0   :  { %v3457_v61 = vld [vmem:[#allocation2 + $0x58] sm:$0xe]  ;;  %2846 = vst [vmem:[#allocation2 + $0x60] sm:$0xf] %v2845_v28  ;;  %v3181_v15 = vunpack.c.l.b16 %v3045_v51  ;;  %v8799_v42 = vld [vmem:[#allocation2 + $0x5c] sm:$0x1]  ;;  %v8814_v35 = vadd.f32 %v8761_v8, %v1613_v52  ;;  %v8816_v54 = vadd.f32 %v1789_v41, %v1614_v4  ;;  %v1004_v11 = vadd.f32 %v8423_v12, %v8546_v50 }
 0x1e1   :  { %v6481_v3 = vrot.slane %v3457_v61, 9  ;;  %2849 = vst [vmem:[#allocation2 + $0x64] sm:$0x1] %v2848_v63  ;;  %v2708_v22 = vshrl.u32 %v2621_v32, 16  ;;  %v2711_v37 = vshll.u32 %v2621_v32, 16  ;;  %v2436_v27 = vmul.f32 %v8806_v5, %v2416_v23 }
 0x1e2   :  { %v3537_v38 = vrot.slane %v8799_v42, 5  ;;  %v3193_v7 = vpack.c.b16 %v3181_v15, %v3180_v40  ;;  %v6426_v53 = vld [vmem:[#allocation2 + $0x50] sm:$0xf]  ;;  %v2850_v2 = vld [vmem:[#allocation2 + $0x68] sm:$0xf]  ;;  %v6480_v0 = vrot.slane %v3456_v1, 9 }
 0x1e3   :  { %v2894_v47 = vld [vmem:[#allocation2 + $0x50] sm:$0xf]  ;;  %v2710_v9 = vrot.slane %v2708_v22, 7  ;;  %v2456_v62 = vadd.f32 %v8823_v44, %v2436_v27  ;;  %v6427_v8 = vor.u32 %v6964_v30, %v6426_v53  ;;  %2601 = vst [vmem:[#allocation2 + $0x84] sm:$0x1] %v2600_v43  ;;  %v3070_v43 = vshll.u32 %v8799_v42, 16 }
 0x1e4   :  { %v3538_v57 = vsel %vm8541_vm12, %v6481_v3, %v3537_v38  ;;  %v2853_v12 = vld [vmem:[#allocation2 + $0x6c] sm:$0x1]  ;;  %3277 = vmatmul.bf16.gmra.mxu1 %v3193_v7  ;;  %v1978_v50 = vpop.f32.mrf.mxu3  ;;  %v3047_v33 = vshrl.u32 %v2894_v47, 16  ;;  %v3050_v24 = vshll.u32 %v2894_v47, 16  ;;  %v6538_v52 = vld [vmem:[#allocation2 + $0x58] sm:$0xf]  ;;  %v1198_v47 = vadd.f32 %v8392_v59, %v1004_v11 }
 0x1e5   :  { %v3588_v19 = vunpack.c.l.b16 %v3538_v57  ;;  %v2713_v25 = vor.u32 %v2711_v37, %v2710_v9  ;;  %v2714_v16 = vrot.slane %v2710_v9, 4  ;;  %v2472_v10 = vmax.f32 %v2456_v62, 0.0  ;;  %3427 = vmatmul.bf16.gmra.mxu2 %v6427_v8  ;;  %v2926_v46 = vld [vmem:[#allocation2 + $0x54] sm:$0x1]  ;;  %v2895_v51 = vld [vmem:[#allocation2 + $0x58] sm:$0xf]  ;;  %v1597_v57 = vpop.f32.mrf.mxu1 }
 0x1e6   :  { %v2000_v21 = vadd.f32 %v1978_v50, %v8746_v48  ;;  %v3533_v26 = vrot.slane %v2926_v46, 5  ;;  %v3049_v14 = vrot.slane %v3047_v33, 4  ;;  %v3052_v58 = vrot.slane %v3050_v24, 5  ;;  %v2540_v63 = vld [vmem:[#allocation2 + $0x88] sm:$0x1]  ;;  %v2397_v40 = vpop.f32.mrf.mxu0  ;;  %v7018_v53 = vld [vmem:[%s9565_s4 + $0x150] sm:$0xff] }
 0x1e7   :  { %v3056_v18 = vshll.u32 %v2926_v46, 16  ;;  %v2851_v45 = vsel %vm8509_vm9, %v2713_v25, %v2850_v2  ;;  %v2854_v17 = vsel %vm8362_vm6, %v2714_v16, %v2853_v12  ;;  %v2622_v34 = vpack.c.bf16 %v2472_v10, %v2472_v10  ;;  %v6996_v4 = vld [vmem:[#allocation2 + $0x5c] sm:$0xf0]  ;;  %v2856_v61 = vld [vmem:[#allocation2 + $0x70] sm:$0xf]  ;;  %4547 = vmatpush.bf16.msrb.mxu2 %v7018_v53  ;;  %v7017_v53 = vld [vmem:[%s9565_s4 + $0x148] sm:$0xff] }
 0x1e8   :  { %v2417_v29 = vadd.f32 %v2395_v49, %v2000_v21  ;;  %2852 = vst [vmem:[#allocation2 + $0x68] sm:$0xf] %v2851_v45  ;;  %v3534_v48 = vsel %vm8541_vm12, %v6480_v0, %v3533_v26  ;;  %v6539_v55 = vor.u32 %v6996_v4, %v6538_v52  ;;  %v3053_v41 = vor.u32 %v3052_v58, %v3049_v14  ;;  %v2602_v22 = vld [vmem:[#allocation2 + $0x8c] sm:$0x1]  ;;  %v3458_v7 = vld [vmem:[#allocation2 + $0x60] sm:$0xe] }
 0x1e9   :  { %v3058_v28 = vrot.slane %v3056_v18, 5  ;;  %2855 = vst [vmem:[#allocation2 + $0x6c] sm:$0x1] %v2854_v17  ;;  %v2716_v32 = vshrl.u32 %v2622_v34, 16  ;;  %v2719_v23 = vshll.u32 %v2622_v34, 16  ;;  %v3587_v1 = vunpack.c.l.b16 %v3534_v48 }
 0x1ea   :  { %v2437_v30 = vmul.f32 %v8806_v5, %v2417_v29  ;;  %3880 = vmatmul.bf16.gmra.mxu0 %v6539_v55  ;;  %v3054_v15 = vrot.slane %v3053_v41, 4  ;;  %v3061_v49 = vshrl.u32 %v2895_v51, 16  ;;  %v3064_v3 = vshll.u32 %v2895_v51, 16  ;;  %v2859_v9 = vld [vmem:[#allocation2 + $0x74] sm:$0x1] }
 0x1eb   :  { %v2718_v37 = vrot.slane %v2716_v32, 7  ;;  %v3599_v38 = vpack.c.b16 %v3588_v19, %v3587_v1  ;;  %v2541_v20 = vsel %vm8362_vm6, 0, %v2540_v63  ;;  %v8847_v33 = vld [vmem:[#allocation2 + $0x64] sm:$0x1]  ;;  %v3072_v59 = vrot.slane %v3070_v43, 5  ;;  %v7039_v43 = vld [vmem:[%s9565_s4 + $0x1b8] sm:$0xff]  ;;  %4548 = vmatpush.bf16.msrb.mxu2 %v7017_v53 }
 0x1ec   :  { %v2457_v27 = vadd.f32 %v8823_v44, %v2437_v30  ;;  %v1980_v2 = vpop.f32.mrf.mxu3  ;;  %v3059_v42 = vsel %vm7309_vm2, %v3054_v15, %v3058_v28  ;;  %v3063_v62 = vrot.slane %v3061_v49, 4  ;;  %v3066_v8 = vrot.slane %v3064_v3, 5  ;;  %2542 = vst [vmem:[#allocation2 + $0x88] sm:$0x1] %v2541_v20  ;;  %v6430_v11 = vld [vmem:[#allocation2 + $0x60] sm:$0xf]  ;;  %4736 = vmatpush.bf16.msra.mxu3 %v7039_v43 }
 0x1ed   :  { %v2721_v12 = vor.u32 %v2719_v23, %v2718_v37  ;;  %v2722_v50 = vrot.slane %v2718_v37, 4  ;;  %3687 = vmatmul.bf16.gmra.mxu3 %v3599_v38  ;;  %v2001_v19 = vadd.f32 %v1980_v2, %v8814_v35  ;;  %v2603_v25 = vsel %vm8369_vm7, 0, %v2602_v22  ;;  %v2543_v10 = vld [vmem:[#allocation2 + $0x90] sm:$0x1]  ;;  %v2605_v18 = vld [vmem:[#allocation2 + $0x94] sm:$0x1] }
 0x1ee   :  { %v2473_v0 = vmax.f32 %v2457_v27, 0.0  ;;  %v3067_v24 = vor.u32 %v3066_v8, %v3063_v62  ;;  %v6482_v16 = vrot.slane %v3458_v7, 9  ;;  %2604 = vst [vmem:[#allocation2 + $0x8c] sm:$0x1] %v2603_v25  ;;  %v2896_v45 = vld [vmem:[#allocation2 + $0x60] sm:$0xf]  ;;  %v8855_v17 = vadd.f32 %v1597_v57, %v1198_v47  ;;  %v2400_v22 = vpop.f32.mrf.mxu0 }
 0x1ef   :  { %v2857_v21 = vsel %vm8509_vm9, %v2721_v12, %v2856_v61  ;;  %v2860_v46 = vsel %vm8362_vm6, %v2722_v50, %v2859_v9  ;;  %v2418_v14 = vadd.f32 %v2397_v40, %v2001_v19  ;;  %v6965_v35 = vld [vmem:[#allocation2 + $0x64] sm:$0xf0]  ;;  %v3182_v29 = vunpack.c.l.b16 %v3059_v42  ;;  %v7010_v28 = vld [vmem:[%s9565_s4 + $0x110] sm:$0xff]  ;;  %v2862_v32 = vld [vmem:[#allocation2 + $0x78] sm:$0xf] }
 0x1f0   :  { %v2623_v26 = vpack.c.bf16 %v2473_v0, %v2473_v0  ;;  %v3459_v58 = vld [vmem:[#allocation2 + $0x68] sm:$0xe]  ;;  %2858 = vst [vmem:[#allocation2 + $0x70] sm:$0xf] %v2857_v21  ;;  %v3068_v34 = vrot.slane %v3067_v24, 4  ;;  %v3541_v4 = vrot.slane %v8847_v33, 5  ;;  %v6431_v55 = vor.u32 %v6965_v35, %v6430_v11  ;;  %4274 = vmatpush.bf16.msrb.mxu1 %v7010_v28  ;;  %v1791_v24 = vpop.f32.mrf.mxu2 }
 0x1f1   :  { %v8857_v52 = vld [vmem:[#allocation2 + $0x6c] sm:$0x1]  ;;  %2861 = vst [vmem:[#allocation2 + $0x74] sm:$0x1] %v2860_v46  ;;  %v2438_v48 = vmul.f32 %v8806_v5, %v2418_v14  ;;  %v6483_v41 = vrot.slane %v3459_v58, 9  ;;  %v2544_v1 = vsel %vm8362_vm6, 0, %v2543_v10 }
 0x1f2   :  { %v2724_v51 = vshrl.u32 %v2623_v26, 16  ;;  %v2727_v63 = vshll.u32 %v2623_v26, 16  ;;  %v3073_v23 = vsel %vm7309_vm2, %v3068_v34, %v3072_v59  ;;  %v3545_v30 = vrot.slane %v8857_v52, 5  ;;  %v2865_v40 = vld [vmem:[#allocation2 + $0x7c] sm:$0x1]  ;;  %v7038_v8 = vld [vmem:[%s9565_s4 + $0x1b0] sm:$0xff] }
 0x1f3   :  { %v2458_v15 = vadd.f32 %v8823_v44, %v2438_v48  ;;  %v3183_v49 = vunpack.c.l.b16 %v3073_v23  ;;  %v3542_v3 = vsel %vm8541_vm12, %v6482_v16, %v3541_v4  ;;  %2545 = vst [vmem:[#allocation2 + $0x90] sm:$0x1] %v2544_v1  ;;  %v2606_v38 = vsel %vm8369_vm7, 0, %v2605_v18  ;;  %v7047_v47 = vld [vmem:[%s9565_s4 + $0x1f8] sm:$0xff]  ;;  %v2897_v50 = vld [vmem:[#allocation2 + $0x68] sm:$0xf]  ;;  %4737 = vmatpush.bf16.msra.mxu3 %v7038_v8 }
 0x1f4   :  { %v2726_v61 = vrot.slane %v2724_v51, 7  ;;  %v1983_v37 = vpop.f32.mrf.mxu3  ;;  %v3546_v27 = vsel %vm8541_vm12, %v6483_v41, %v3545_v30  ;;  %v3075_v20 = vshrl.u32 %v2896_v45, 16  ;;  %v3078_v7 = vshll.u32 %v2896_v45, 16  ;;  %2607 = vst [vmem:[#allocation2 + $0x94] sm:$0x1] %v2606_v38  ;;  %5153 = vmatpush.bf16.msra.mxu0 %v7047_v47  ;;  %v7045_v43 = vld [vmem:[%s9565_s4 + $0x1e8] sm:$0xff] }
 0x1f5   :  { %v2474_v42 = vmax.f32 %v2458_v15, 0.0  ;;  %v3194_v62 = vpack.c.b16 %v3183_v49, %v3182_v29  ;;  %3432 = vmatmul.bf16.gmra.mxu2 %v6431_v55  ;;  %v2002_v57 = vadd.f32 %v1983_v37, %v8816_v54  ;;  %v3590_v12 = vunpack.c.l.b16 %v3546_v27  ;;  %v6542_v10 = vld [vmem:[#allocation2 + $0x68] sm:$0xf]  ;;  %v2868_v4 = vld [vmem:[#allocation2 + $0x80] sm:$0xf] }
 0x1f6   :  { %v2729_v9 = vor.u32 %v2727_v63, %v2726_v61  ;;  %v2730_v2 = vrot.slane %v2726_v61, 4  ;;  %v3077_v0 = vrot.slane %v3075_v20, 4  ;;  %v3080_v19 = vrot.slane %v3078_v7, 5  ;;  %v7009_v54 = vld [vmem:[%s9565_s4 + $0x108] sm:$0xff]  ;;  %v2871_v51 = vld [vmem:[#allocation2 + $0x84] sm:$0x1]  ;;  %v2402_v20 = vpop.f32.mrf.mxu0 }
 0x1f7   :  { %v2624_v25 = vpack.c.bf16 %v2474_v42, %v2474_v42  ;;  %3282 = vmatmul.bf16.gmra.mxu1 %v3194_v62  ;;  %v3589_v16 = vunpack.c.l.b16 %v3542_v3  ;;  %v6997_v21 = vld [vmem:[#allocation2 + $0x6c] sm:$0xf0]  ;;  %v2419_v46 = vadd.f32 %v2400_v22, %v2002_v57  ;;  %v3084_v35 = vshll.u32 %v8847_v33, 16  ;;  %v7037_v3 = vld [vmem:[%s9565_s4 + $0x1a8] sm:$0xff]  ;;  %v7016_v42 = vld [vmem:[%s9565_s4 + $0x140] sm:$0xff] }
 0x1f8   :  { %v2863_v59 = vsel %vm8509_vm9, %v2729_v9, %v2862_v32  ;;  %v2866_v11 = vsel %vm8362_vm6, %v2730_v2, %v2865_v40  ;;  %v6543_v26 = vor.u32 %v6997_v21, %v6542_v10  ;;  %v3081_v14 = vor.u32 %v3080_v19, %v3077_v0  ;;  %v8897_v34 = vld [vmem:[#allocation2 + $0x70] sm:$0xe]  ;;  %4275 = vmatpush.bf16.msrb.mxu1 %v7009_v54  ;;  %v8901_v28 = vld [vmem:[#allocation2 + $0x74] sm:$0x1]  ;;  %v7036_v2 = vld [vmem:[%s9565_s4 + $0x1a0] sm:$0xff] }
 0x1f9   :  { %2864 = vst [vmem:[#allocation2 + $0x78] sm:$0xf] %v2863_v59  ;;  %v2732_v58 = vshrl.u32 %v2624_v25, 16  ;;  %v3600_v18 = vpack.c.b16 %v3590_v12, %v3589_v16  ;;  %v3089_v45 = vshrl.u32 %v2897_v50, 16  ;;  %v1809_v29 = vadd.f32 %v1791_v24, %v8855_v17  ;;  %v7046_v33 = vld [vmem:[%s9565_s4 + $0x1f0] sm:$0xff]  ;;  %4738 = vmatpush.bf16.msra.mxu3 %v7037_v3  ;;  %v7044_v19 = vld [vmem:[%s9565_s4 + $0x1e0] sm:$0xff]  ;;  %4549 = vmatpush.bf16.msrb.mxu2 %v7016_v42 }
 0x1fa   :  { %2867 = vst [vmem:[#allocation2 + $0x7c] sm:$0x1] %v2866_v11  ;;  %v2439_v48 = vmul.f32 %v8806_v5, %v2419_v46  ;;  %3885 = vmatmul.bf16.gmra.mxu0 %v6543_v26  ;;  %v3082_v55 = vrot.slane %v3081_v14, 4  ;;  %v3092_v41 = vshll.u32 %v2897_v50, 16  ;;  %v2735_v32 = vshll.u32 %v2624_v25, 16 }
 0x1fb   :  { %v2734_v63 = vrot.slane %v2732_v58, 7  ;;  %v3091_v23 = vrot.slane %v3089_v45, 4  ;;  %v3098_v30 = vshll.u32 %v8857_v52, 16  ;;  %v2898_v1 = vld [vmem:[#allocation2 + $0x70] sm:$0xf]  ;;  %v3086_v40 = vrot.slane %v3084_v35, 5  ;;  %5154 = vmatpush.bf16.msra.mxu0 %v7046_v33 }
 0x1fc   :  { %v2459_v17 = vadd.f32 %v8823_v44, %v2439_v48  ;;  %v1985_v61 = vpop.f32.mrf.mxu3  ;;  %v3094_v15 = vrot.slane %v3092_v41, 5  ;;  %v6484_v49 = vrot.slane %v8897_v34, 9  ;;  %v3549_v27 = vrot.slane %v8901_v28, 5  ;;  %v6434_v47 = vld [vmem:[#allocation2 + $0x70] sm:$0xf]  ;;  %v7043_v41 = vld [vmem:[%s9565_s4 + $0x1d8] sm:$0xff] }
 0x1fd   :  { %v2737_v22 = vor.u32 %v2735_v32, %v2734_v63  ;;  %v2738_v37 = vrot.slane %v2734_v63, 4  ;;  %3692 = vmatmul.bf16.gmra.mxu3 %v3600_v18  ;;  %v2003_v52 = vadd.f32 %v1985_v61, %v1809_v29  ;;  %v3087_v7 = vsel %vm7309_vm2, %v3082_v55, %v3086_v40  ;;  %v7035_v18 = vld [vmem:[%s9565_s4 + $0x198] sm:$0xff]  ;;  %v2874_v33 = vld [vmem:[#allocation2 + $0x88] sm:$0xf]  ;;  %v2877_v63 = vld [vmem:[#allocation2 + $0x8c] sm:$0x1] }
 0x1fe   :  { %v2475_v38 = vmax.f32 %v2459_v17, 0.0  ;;  %v3095_v53 = vor.u32 %v3094_v15, %v3091_v23  ;;  %v3103_v9 = vshrl.u32 %v2898_v1, 16  ;;  %v3100_v12 = vrot.slane %v3098_v30, 5  ;;  %4739 = vmatpush.bf16.msra.mxu3 %v7036_v2 }
 0x1ff   :  { %v2869_v62 = vsel %vm8509_vm9, %v2737_v22, %v2868_v4  ;;  %v2872_v8 = vsel %vm8362_vm6, %v2738_v37, %v2871_v51  ;;  %v2420_v57 = vadd.f32 %v2402_v20, %v2003_v52  ;;  %5155 = vmatpush.bf16.msra.mxu0 %v7045_v43  ;;  %v3184_v10 = vunpack.c.l.b16 %v3087_v7 }
 0x200   :  { %v6966_v50 = vld [vmem:[#allocation2 + $0x74] sm:$0xf0]  ;;  %2870 = vst [vmem:[#allocation2 + $0x80] sm:$0xf] %v2869_v62  ;;  %v2625_v24 = vpack.c.bf16 %v2475_v38, %v2475_v38  ;;  %v3096_v59 = vrot.slane %v3095_v53, 4  ;;  %v3105_v35 = vrot.slane %v3103_v9, 4 }
 0x201   :  { %v3461_v0 = vld [vmem:[#allocation2 + $0x78] sm:$0xe]  ;;  %v8931_v11 = vld [vmem:[#allocation2 + $0x7c] sm:$0x1]  ;;  %2873 = vst [vmem:[#allocation2 + $0x84] sm:$0x1] %v2872_v8  ;;  %v2440_v16 = vmul.f32 %v8806_v5, %v2420_v57  ;;  %v6435_v21 = vor.u32 %v6966_v50, %v6434_v47  ;;  %v3550_v5 = vsel %vm8541_vm12, %v6484_v49, %v3549_v27 }
 0x202   :  { %v6485_v25 = vrot.slane %v3461_v0, 9  ;;  %v3553_v54 = vrot.slane %v8931_v11, 5  ;;  %v2899_v46 = vld [vmem:[#allocation2 + $0x78] sm:$0xf]  ;;  %v2740_v26 = vshrl.u32 %v2625_v24, 16  ;;  %v3101_v14 = vsel %vm7309_vm2, %v3096_v59, %v3100_v12  ;;  %4740 = vmatpush.bf16.msra.mxu3 %v7035_v18  ;;  %v7034_v49 = vld [vmem:[%s9565_s4 + $0x190] sm:$0xff] }
 0x203   :  { %v3106_v58 = vshll.u32 %v2898_v1, 16  ;;  %v2460_v45 = vadd.f32 %v8823_v44, %v2440_v16  ;;  %v3185_v34 = vunpack.c.l.b16 %v3101_v14  ;;  %v2743_v51 = vshll.u32 %v2625_v24, 16  ;;  %5156 = vmatpush.bf16.msra.mxu0 %v7044_v19  ;;  %v6546_v40 = vld [vmem:[#allocation2 + $0x78] sm:$0xf]  ;;  %v7008_v27 = vld [vmem:[%s9565_s4 + $0x100] sm:$0xff]  ;;  %v7042_v47 = vld [vmem:[%s9565_s4 + $0x1d0] sm:$0xff] }
 0x204   :  { %v3554_v29 = vsel %vm8541_vm12, %v6485_v25, %v3553_v54  ;;  %v2742_v4 = vrot.slane %v2740_v26, 7  ;;  %v3117_v55 = vshrl.u32 %v2899_v46, 16  ;;  %v3120_v30 = vshll.u32 %v2899_v46, 16  ;;  %4276 = vmatpush.bf16.msrb.mxu1 %v7008_v27  ;;  %v2880_v57 = vld [vmem:[#allocation2 + $0x90] sm:$0xf] }
 0x205   :  { %v3108_v48 = vrot.slane %v3106_v58, 5  ;;  %v2476_v32 = vmax.f32 %v2460_v45, 0.0  ;;  %v3195_v44 = vpack.c.b16 %v3185_v34, %v3184_v10  ;;  %3437 = vmatmul.bf16.gmra.mxu2 %v6435_v21  ;;  %v3592_v23 = vunpack.c.l.b16 %v3554_v29  ;;  %v7041_v10 = vld [vmem:[%s9565_s4 + $0x1c8] sm:$0xff]  ;;  %v8973_v14 = vld [vmem:[#allocation2 + $0x10] sm:$0xe]  ;;  %v7032_v34 = vld [vmem:[%s9565_s4 + $0x180] sm:$0xff] }
 0x206   :  { %v2745_v1 = vor.u32 %v2743_v51, %v2742_v4  ;;  %v2746_v17 = vrot.slane %v2742_v4, 4  ;;  %v3591_v61 = vunpack.c.l.b16 %v3550_v5  ;;  %v3119_v22 = vrot.slane %v3117_v55, 4  ;;  %4741 = vmatpush.bf16.msra.mxu3 %v7034_v49  ;;  %v4801_v5 = vld [vmem:[#allocation2 + $0x10] sm:$0xf] }
 0x207   :  { %v3109_v15 = vor.u32 %v3108_v48, %v3105_v35  ;;  %v2626_v3 = vpack.c.bf16 %v2476_v32, %v2476_v32  ;;  %3287 = vmatmul.bf16.gmra.mxu1 %v3195_v44  ;;  %v6998_v43 = vld [vmem:[#allocation2 + $0x7c] sm:$0xf0]  ;;  %v3122_v37 = vrot.slane %v3120_v30, 5  ;;  %v3126_v52 = vshll.u32 %v8931_v11, 16  ;;  %5157 = vmatpush.bf16.msra.mxu0 %v7043_v41  ;;  %v2883_v11 = vld [vmem:[#allocation2 + $0x94] sm:$0x1] }
 0x208   :  { %v2875_v38 = vsel %vm8509_vm9, %v2745_v1, %v2874_v33  ;;  %v2878_v20 = vsel %vm8362_vm6, %v2746_v17, %v2877_v63  ;;  %v6547_v7 = vor.u32 %v6998_v43, %v6546_v40  ;;  %v3112_v53 = vshll.u32 %v8901_v28, 16  ;;  %v8963_v62 = vld [vmem:[#allocation2 + $0x84] sm:$0x1]  ;;  %v7033_v28 = vld [vmem:[%s9565_s4 + $0x188] sm:$0xff]  ;;  %v3462_v24 = vld [vmem:[#allocation2 + $0x80] sm:$0xe] }
 0x209   :  { %2876 = vst [vmem:[#allocation2 + $0x88] sm:$0xf] %v2875_v38  ;;  %v2748_v9 = vshrl.u32 %v2626_v3, 16  ;;  %v3601_v2 = vpack.c.b16 %v3592_v23, %v3591_v61  ;;  %v3123_v42 = vor.u32 %v3122_v37, %v3119_v22  ;;  %v2751_v8 = vshll.u32 %v2626_v3, 16  ;;  %v2900_v59 = vld [vmem:[#allocation2 + $0x80] sm:$0xf] }
 0x20a   :  { %2879 = vst [vmem:[#allocation2 + $0x8c] sm:$0x1] %v2878_v20  ;;  %3890 = vmatmul.bf16.gmra.mxu0 %v6547_v7  ;;  %v3110_v12 = vrot.slane %v3109_v15, 4  ;;  %v3128_v50 = vrot.slane %v3126_v52, 5  ;;  %v3114_v25 = vrot.slane %v3112_v53, 5  ;;  %v3131_v16 = vshrl.u32 %v2900_v59, 16  ;;  %4742 = vmatpush.bf16.msra.mxu3 %v7033_v28 }
 0x20b   :  { %v2750_v0 = vrot.slane %v2748_v9, 7  ;;  %v3124_v19 = vrot.slane %v3123_v42, 4  ;;  %5158 = vmatpush.bf16.msra.mxu0 %v7042_v47  ;;  %v3134_v26 = vshll.u32 %v2900_v59, 16  ;;  %v7063_v35 = vld [vmem:[%s9566_s7 + $0x38] sm:$0xff]  ;;  %v6486_v18 = vrot.slane %v3462_v24, 9  ;;  %v7040_v33 = vld [vmem:[%s9565_s4 + $0x1c0] sm:$0xff] }
 0x20c   :  { %v3115_v58 = vsel %vm7309_vm2, %v3110_v12, %v3114_v25  ;;  %v3557_v45 = vrot.slane %v8963_v62, 5  ;;  %v6438_v48 = vld [vmem:[#allocation2 + $0x80] sm:$0xf]  ;;  %v3133_v55 = vrot.slane %v3131_v16, 4  ;;  %v8988_v41 = vld [vmem:[#allocation2 + $0x14] sm:$0x1]  ;;  %5595 = vmatpush.bf16.msra.mxu2 %v7063_v35 }
 0x20d   :  { %v2753_v21 = vor.u32 %v2751_v8, %v2750_v0  ;;  %v2754_v54 = vrot.slane %v2750_v0, 4  ;;  %3697 = vmatmul.bf16.gmra.mxu3 %v3601_v2  ;;  %v3129_v46 = vsel %vm7309_vm2, %v3124_v19, %v3128_v50  ;;  %v4803_v63 = vld [vmem:[#allocation2 + $0x18] sm:$0xf]  ;;  %v3186_v13 = vunpack.c.l.b16 %v3115_v58  ;;  %v8998_v38 = vld [vmem:[#allocation2 + $0xc] sm:$0x1] }
 0x20e   :  { %v3187_v51 = vunpack.c.l.b16 %v3129_v46  ;;  %v3136_v17 = vrot.slane %v3134_v26, 5  ;;  %v6617_v15 = vrot.slane %v8973_v14, 9  ;;  %4743 = vmatpush.bf16.msra.mxu3 %v7032_v34  ;;  %v4834_v49 = vshrl.u32 %v4801_v5, 16  ;;  %v4334_v42 = vld [vmem:[#allocation2 + $0x8] sm:$0xe]  ;;  %v7055_v16 = vld [vmem:[%s9565_s4 + $0x238] sm:$0xff] }
 0x20f   :  { %v2881_v29 = vsel %vm8509_vm9, %v2753_v21, %v2880_v57  ;;  %v2884_v4 = vsel %vm8362_vm6, %v2754_v54, %v2883_v11  ;;  %5159 = vmatpush.bf16.msra.mxu0 %v7041_v10  ;;  %v4837_v37 = vshll.u32 %v4801_v5, 16  ;;  %v3558_v52 = vsel %vm8541_vm12, %v6486_v18, %v3557_v45  ;;  %v3917_v8 = vld [vmem:[#allocation2 + $0x8] sm:$0xf]  ;;  %v4802_v46 = vld [vmem:[#allocation2 + $0x14] sm:$0x1]  ;;  %5426 = vmatpush.bf16.msra.mxu1 %v7055_v16 }
 0x210   :  { %2882 = vst [vmem:[#allocation2 + $0x90] sm:$0xf] %v2881_v29  ;;  %v6967_v32 = vld [vmem:[#allocation2 + $0x84] sm:$0xf0]  ;;  %v3196_v3 = vpack.c.b16 %v3187_v51, %v3186_v13  ;;  %v4388_v20 = vrot.slane %v8988_v41, 5  ;;  %v4848_v7 = vshrl.u32 %v4803_v63, 16  ;;  %v3137_v47 = vor.u32 %v3136_v17, %v3133_v55 }
 0x211   :  { %v3463_v44 = vld [vmem:[#allocation2 + $0x88] sm:$0xe]  ;;  %2885 = vst [vmem:[#allocation2 + $0x94] sm:$0x1] %v2884_v4  ;;  %v6439_v23 = vor.u32 %v6967_v32, %v6438_v48  ;;  %v2933_v30 = vld [vmem:[#allocation2 + $0x8c] sm:$0x1]  ;;  %v3593_v19 = vunpack.c.l.b16 %v3558_v52 }
 0x212   :  { %v6487_v1 = vrot.slane %v3463_v44, 9  ;;  %v3561_v61 = vrot.slane %v2933_v30, 5  ;;  %v2901_v40 = vld [vmem:[#allocation2 + $0x88] sm:$0xf]  ;;  %v3140_v12 = vshll.u32 %v8963_v62, 16  ;;  %v3154_v50 = vshll.u32 %v2933_v30, 16 }
 0x213   :  { %v3145_v43 = vshrl.u32 %v2901_v40, 16  ;;  %v3148_v22 = vshll.u32 %v2901_v40, 16  ;;  %5160 = vmatpush.bf16.msra.mxu0 %v7040_v33  ;;  %v6550_v57 = vld [vmem:[#allocation2 + $0x88] sm:$0xf]  ;;  %v4836_v28 = vrot.slane %v4834_v49, 4  ;;  %v4839_v0 = vrot.slane %v4837_v37, 5 }
 0x214   :  { %v3562_v27 = vsel %vm8541_vm12, %v6487_v1, %v3561_v61  ;;  %v4850_v11 = vrot.slane %v4848_v7, 4  ;;  %v4851_v25 = vshll.u32 %v4803_v63, 16  ;;  %v6616_v21 = vrot.slane %v4334_v42, 9  ;;  %v4804_v26 = vld [vmem:[#allocation2 + $0x1c] sm:$0x1]  ;;  %v7062_v1 = vld [vmem:[%s9566_s7 + $0x30] sm:$0xff] }
 0x215   :  { %3442 = vmatmul.bf16.gmra.mxu2 %v6439_v23  ;;  %v3594_v53 = vunpack.c.l.b16 %v3562_v27  ;;  %v3147_v9 = vrot.slane %v3145_v43, 4  ;;  %v3150_v2 = vrot.slane %v3148_v22, 5  ;;  %v4384_v54 = vrot.slane %v8998_v38, 5  ;;  %v3919_v45 = vld [vmem:[#allocation2 + $0x10] sm:$0xf] }
 0x216   :  { %v4389_v62 = vsel %vm8541_vm12, %v6617_v15, %v4388_v20  ;;  %v3138_v35 = vrot.slane %v3137_v47, 4  ;;  %v4853_v18 = vrot.slane %v4851_v25, 5  ;;  %v3156_v34 = vrot.slane %v3154_v50, 5  ;;  %5596 = vmatpush.bf16.msra.mxu2 %v7062_v1  ;;  %v4805_v43 = vld [vmem:[#allocation2 + $0x20] sm:$0xf] }
 0x217   :  { %3292 = vmatmul.bf16.gmra.mxu1 %v3196_v3  ;;  %v6999_v24 = vld [vmem:[#allocation2 + $0x8c] sm:$0xf0]  ;;  %v3151_v59 = vor.u32 %v3150_v2, %v3147_v9  ;;  %v3602_v14 = vpack.c.b16 %v3594_v53, %v3593_v19  ;;  %v4840_v5 = vor.u32 %v4839_v0, %v4836_v28  ;;  %v3950_v29 = vshrl.u32 %v3917_v8, 16  ;;  %v4807_v20 = vld [vmem:[#allocation2 + $0x28] sm:$0xf] }
 0x218   :  { %v6551_v10 = vor.u32 %v6999_v24, %v6550_v57  ;;  %v3953_v4 = vshll.u32 %v3917_v8, 16  ;;  %v3142_v51 = vrot.slane %v3140_v12, 5  ;;  %v4854_v48 = vor.u32 %v4853_v18, %v4850_v11  ;;  %v9021_v42 = vld [vmem:[#allocation2 + $0x1c] sm:$0x1]  ;;  %v4336_v57 = vld [vmem:[#allocation2 + $0x18] sm:$0xe] }
 0x219   :  { %v3152_v58 = vrot.slane %v3151_v59, 4  ;;  %v4857_v55 = vshll.u32 %v4804_v26, 16  ;;  %v4843_v63 = vshll.u32 %v4802_v46, 16  ;;  %v3964_v32 = vshrl.u32 %v3919_v45, 16  ;;  %v9024_v59 = vld [vmem:[#allocation2 + $0x24] sm:$0x1] }
 0x21a   :  { %3895 = vmatmul.bf16.gmra.mxu0 %v6551_v10  ;;  %v3967_v44 = vshll.u32 %v3919_v45, 16  ;;  %v4385_v13 = vsel %vm8541_vm12, %v6616_v21, %v4384_v54  ;;  %v4463_v23 = vunpack.c.l.b16 %v4389_v62  ;;  %v4855_v30 = vrot.slane %v4854_v48, 4  ;;  %v4337_v11 = vld [vmem:[#allocation2 + $0x20] sm:$0xe]  ;;  %v7024_v62 = vld [vmem:[#allocation2 + $0x14] sm:$0xf0] }
 0x21b   :  { %v3157_v33 = vsel %vm7309_vm2, %v3152_v58, %v3156_v34  ;;  %v3143_v17 = vsel %vm7309_vm2, %v3138_v35, %v3142_v51  ;;  %v4841_v61 = vrot.slane %v4840_v5, 4  ;;  %v3952_v40 = vrot.slane %v3950_v29, 4  ;;  %v7054_v34 = vld [vmem:[%s9565_s4 + $0x230] sm:$0xff]  ;;  %v4806_v48 = vld [vmem:[#allocation2 + $0x24] sm:$0x1] }
 0x21c   :  { %v3955_v15 = vrot.slane %v3953_v4, 5  ;;  %v3189_v49 = vunpack.c.l.b16 %v3157_v33  ;;  %v4859_v3 = vrot.slane %v4857_v55, 5  ;;  %v4462_v22 = vunpack.c.l.b16 %v4385_v13  ;;  %v4808_v4 = vld [vmem:[#allocation2 + $0x2c] sm:$0x1]  ;;  %v6666_v51 = vld [vmem:[#allocation2 + $0x10] sm:$0xf]  ;;  %5427 = vmatpush.bf16.msra.mxu1 %v7054_v34 }
 0x21d   :  { %3702 = vmatmul.bf16.gmra.mxu3 %v3602_v14  ;;  %v4845_v37 = vrot.slane %v4843_v63, 5  ;;  %v3966_v52 = vrot.slane %v3964_v32, 4  ;;  %v3969_v27 = vrot.slane %v3967_v44, 5  ;;  %v3188_v7 = vunpack.c.l.b16 %v3143_v17  ;;  %v3923_v33 = vld [vmem:[#allocation2 + $0x20] sm:$0xf] }
 0x21e   :  { %v4860_v53 = vsel %vm7309_vm2, %v4855_v30, %v4859_v3  ;;  %v4478_v47 = vpack.c.b16 %v4463_v23, %v4462_v22  ;;  %v3956_v2 = vor.u32 %v3955_v15, %v3952_v40  ;;  %v4862_v12 = vshrl.u32 %v4805_v43, 16  ;;  %v3921_v13 = vld [vmem:[#allocation2 + $0x18] sm:$0xf]  ;;  %v4338_v34 = vld [vmem:[#allocation2 + $0x28] sm:$0xe] }
 0x21f   :  { %v4846_v9 = vsel %vm7309_vm2, %v4841_v61, %v4845_v37  ;;  %v3197_v8 = vpack.c.b16 %v3189_v49, %v3188_v7  ;;  %v4865_v50 = vshll.u32 %v4805_v43, 16  ;;  %v4876_v28 = vshrl.u32 %v4807_v20, 16 }
 0x220   :  { %v5074_v0 = vunpack.c.l.b16 %v4860_v53  ;;  %v3959_v19 = vshll.u32 %v8998_v38, 16  ;;  %v3970_v24 = vor.u32 %v3969_v27, %v3966_v52  ;;  %v4879_v25 = vshll.u32 %v4807_v20, 16  ;;  %v7061_v27 = vld [vmem:[%s9566_s7 + $0x28] sm:$0xff]  ;;  %v4809_v53 = vld [vmem:[#allocation2 + $0x30] sm:$0xf] }
 0x221   :  { %v5073_v10 = vunpack.c.l.b16 %v4846_v9  ;;  %v3973_v21 = vshll.u32 %v8988_v41, 16  ;;  %v4878_v54 = vrot.slane %v4876_v28, 4  ;;  %v3957_v46 = vrot.slane %v3956_v2, 4  ;;  %5597 = vmatpush.bf16.msra.mxu2 %v7061_v27 }
 0x222   :  { %v6618_v26 = vrot.slane %v4336_v57, 9  ;;  %v4392_v14 = vrot.slane %v9021_v42, 5  ;;  %v4881_v35 = vrot.slane %v4879_v25, 5  ;;  %v6619_v58 = vrot.slane %v4337_v11, 9 }
 0x223   :  { %v4396_v38 = vrot.slane %v9024_v59, 5  ;;  %v4864_v18 = vrot.slane %v4862_v12, 4  ;;  %v4867_v45 = vrot.slane %v4865_v50, 5  ;;  %v5089_v5 = vpack.c.b16 %v5074_v0, %v5073_v10  ;;  %v4811_v12 = vld [vmem:[#allocation2 + $0x38] sm:$0xf] }
 0x224   :  { %v3961_v29 = vrot.slane %v3959_v19, 5  ;;  %v3971_v41 = vrot.slane %v3970_v24, 4  ;;  %v4882_v55 = vor.u32 %v4881_v35, %v4878_v54  ;;  %v6667_v63 = vor.u32 %v7024_v62, %v6666_v51 }
 0x225   :  { %4550 = vmatmul.bf16.vlgmr.msrb.gmra.mxu2 %v4478_v47  ;;  %v3408_v16 = vpop.f32.mrf.mxu2  ;;  %v3975_v44 = vrot.slane %v3973_v21, 5  ;;  %v4393_v30 = vsel %vm8541_vm12, %v6618_v26, %v4392_v14  ;;  %v4397_v1 = vsel %vm8541_vm12, %v6619_v58, %v4396_v38  ;;  %v4868_v17 = vor.u32 %v4867_v45, %v4864_v18  ;;  %v9051_v45 = vld [vmem:[#allocation2 + $0x34] sm:$0x1] }
 0x226   :  { %v3962_v32 = vsel %vm7309_vm2, %v3957_v46, %v3961_v29  ;;  %v4885_v61 = vshll.u32 %v4808_v4, 16  ;;  %v4871_v15 = vshll.u32 %v4806_v48, 16  ;;  %v3992_v49 = vshrl.u32 %v3923_v33, 16 }
 0x227   :  { %3297 = vmatmul.bf16.gmra.mxu1 %v3197_v8  ;;  %v3976_v40 = vsel %vm7309_vm2, %v3971_v41, %v3975_v44  ;;  %v3995_v3 = vshll.u32 %v3923_v33, 16  ;;  %v4883_v22 = vrot.slane %v4882_v55, 4  ;;  %v3978_v37 = vshrl.u32 %v3921_v13, 16  ;;  %v6670_v55 = vld [vmem:[#allocation2 + $0x20] sm:$0xf] }
 0x228   :  { %v3981_v52 = vshll.u32 %v3921_v13, 16  ;;  %v4189_v20 = vunpack.c.l.b16 %v3962_v32  ;;  %v4464_v7 = vunpack.c.l.b16 %v4393_v30  ;;  %v4190_v9 = vunpack.c.l.b16 %v3976_v40  ;;  %v7025_v33 = vld [vmem:[#allocation2 + $0x24] sm:$0xf0]  ;;  %v4810_v40 = vld [vmem:[#allocation2 + $0x34] sm:$0x1] }
 0x229   :  { %v4465_v2 = vunpack.c.l.b16 %v4397_v1  ;;  %v4869_v8 = vrot.slane %v4868_v17, 4  ;;  %v4887_v57 = vrot.slane %v4885_v61, 5  ;;  %v4873_v28 = vrot.slane %v4871_v15, 5 }
 0x22a   :  { %5161 = vmatmul.bf16.vlgmr.msra.gmra.mxu0 %v5089_v5  ;;  %v3994_v0 = vrot.slane %v3992_v49, 4  ;;  %v3997_v19 = vrot.slane %v3995_v3, 5  ;;  %v3980_v11 = vrot.slane %v3978_v37, 4  ;;  %v3983_v25 = vrot.slane %v3981_v52, 5  ;;  %v4339_v5 = vld [vmem:[#allocation2 + $0x30] sm:$0xe] }
 0x22b   :  { %v3668_v23 = vpop.f32.mrf.mxu3  ;;  %v4888_v24 = vsel %vm7309_vm2, %v4883_v22, %v4887_v57  ;;  %v4890_v10 = vshrl.u32 %v4809_v53, 16  ;;  %v4893_v54 = vshll.u32 %v4809_v53, 16  ;;  %v4904_v62 = vshrl.u32 %v4811_v12, 16  ;;  %v4812_v22 = vld [vmem:[#allocation2 + $0x3c] sm:$0x1] }
 0x22c   :  { %v4907_v46 = vshll.u32 %v4811_v12, 16  ;;  %v4479_v14 = vpack.c.b16 %v4465_v2, %v4464_v7  ;;  %v4874_v35 = vsel %vm7309_vm2, %v4869_v8, %v4873_v28  ;;  %v4205_v58 = vpack.c.b16 %v4190_v9, %v4189_v20  ;;  %v3927_v20 = vld [vmem:[#allocation2 + $0x30] sm:$0xf]  ;;  %v2578_v7 = vld [vmem:[#allocation2 + $0x4c] sm:$0x1] }
 0x22d   :  { %4744 = vmatmul.bf16.vlgmr.msra.gmra.mxu3 %v6667_v63  ;;  %v3410_v43 = vpop.f32.mrf.mxu2  ;;  %v5076_v38 = vunpack.c.l.b16 %v4888_v24  ;;  %v3998_v18 = vor.u32 %v3997_v19, %v3994_v0  ;;  %v3984_v41 = vor.u32 %v3983_v25, %v3980_v11  ;;  %v3987_v4 = vshll.u32 %v9021_v42, 16  ;;  %v7053_v42 = vld [vmem:[%s9565_s4 + $0x228] sm:$0xff] }
 0x22e   :  { %v4906_v51 = vrot.slane %v4904_v62, 4  ;;  %v4909_v48 = vrot.slane %v4907_v46, 5  ;;  %v5075_v63 = vunpack.c.l.b16 %v4874_v35  ;;  %v4001_v32 = vshll.u32 %v9024_v59, 16  ;;  %v2516_v59 = vld [vmem:[#allocation2 + $0x48] sm:$0x1]  ;;  %5428 = vmatpush.bf16.msra.mxu1 %v7053_v42  ;;  %v7060_v46 = vld [vmem:[%s9566_s7 + $0x20] sm:$0xff] }
 0x22f   :  { %v3263_v47 = vpop.f32.mrf.mxu1  ;;  %v4892_v44 = vrot.slane %v4890_v10, 4  ;;  %v4895_v13 = vrot.slane %v4893_v54, 5  ;;  %v6620_v30 = vrot.slane %v4338_v34, 9  ;;  %v6621_v17 = vrot.slane %v4339_v5, 9  ;;  %v3925_v12 = vld [vmem:[#allocation2 + $0x28] sm:$0xf]  ;;  %5598 = vmatpush.bf16.msra.mxu2 %v7060_v46 }
 0x230   :  { %v3409_v50 = vadd.f32 %v3408_v16, %v3263_v47  ;;  %v9049_v16 = vld [vmem:[#allocation2 + $0x2c] sm:$0x1]  ;;  %v4404_v61 = vrot.slane %v9051_v45, 5  ;;  %v5090_v49 = vpack.c.b16 %v5076_v38, %v5075_v63  ;;  %v3999_v3 = vrot.slane %v3998_v18, 4  ;;  %v4341_v42 = vld [vmem:[#allocation2 + $0x40] sm:$0xe] }
 0x231   :  { %v4400_v1 = vrot.slane %v9049_v16, 5  ;;  %v6671_v37 = vor.u32 %v7025_v33, %v6670_v55  ;;  %v3985_v52 = vrot.slane %v3984_v41, 4  ;;  %v4910_v27 = vor.u32 %v4909_v48, %v4906_v51 }
 0x232   :  { %v9045_v21 = vadd.f32 %v3668_v23, %v3409_v50  ;;  %v3989_v47 = vrot.slane %v3987_v4, 5  ;;  %v4003_v9 = vrot.slane %v4001_v32, 5  ;;  %v4896_v2 = vor.u32 %v4895_v13, %v4892_v44 }
 0x233   :  { %v3670_v26 = vpop.f32.mrf.mxu3  ;;  %v4401_v8 = vsel %vm8541_vm12, %v6620_v30, %v4400_v1  ;;  %v4913_v57 = vshll.u32 %v4812_v22, 16  ;;  %v2517_v50 = vsel %vm8362_vm6, 0, %v2516_v59  ;;  %v4899_v0 = vshll.u32 %v4810_v40, 16  ;;  %v9086_v1 = vld [vmem:[#allocation2 + $0x44] sm:$0x1] }
 0x234   :  { %v4004_v28 = vsel %vm7309_vm2, %v3999_v3, %v4003_v9  ;;  %v4020_v19 = vshrl.u32 %v3927_v20, 16  ;;  %2518 = vst [vmem:[#allocation2 + $0x48] sm:$0x1] %v2517_v50  ;;  %v2579_v24 = vsel %vm8369_vm7, 0, %v2578_v7  ;;  %v3990_v10 = vsel %vm7309_vm2, %v3985_v52, %v3989_v47  ;;  %v4340_v22 = vld [vmem:[#allocation2 + $0x38] sm:$0xe] }
 0x235   :  { %4555 = vmatmul.bf16.gmra.mxu2 %v4479_v14  ;;  %v9053_v29 = vpop.f32.mrf.mxu2  ;;  %v4911_v54 = vrot.slane %v4910_v27, 4  ;;  %v4023_v62 = vshll.u32 %v3927_v20, 16  ;;  %2580 = vst [vmem:[#allocation2 + $0x4c] sm:$0x1] %v2579_v24  ;;  %v4897_v35 = vrot.slane %v4896_v2, 4  ;;  %v4192_v18 = vunpack.c.l.b16 %v4004_v28 }
 0x236   :  { %v4915_v34 = vrot.slane %v4913_v57, 5  ;;  %v4006_v5 = vshrl.u32 %v3925_v12, 16  ;;  %v4009_v41 = vshll.u32 %v3925_v12, 16  ;;  %v4191_v51 = vunpack.c.l.b16 %v3990_v10  ;;  %v6674_v20 = vld [vmem:[#allocation2 + $0x30] sm:$0xf]  ;;  %v7052_v10 = vld [vmem:[%s9565_s4 + $0x220] sm:$0xff] }
 0x237   :  { %4277 = vmatmul.bf16.vlgmr.msrb.gmra.mxu1 %v4205_v58  ;;  %v3265_v23 = vpop.f32.mrf.mxu1  ;;  %v4813_v58 = vld [vmem:[#allocation2 + $0x40] sm:$0xf]  ;;  %v4901_v48 = vrot.slane %v4899_v0, 5  ;;  %v4022_v55 = vrot.slane %v4020_v19, 4  ;;  %v4025_v63 = vrot.slane %v4023_v62, 5  ;;  %v4029_v3 = vshll.u32 %v9051_v45, 16 }
 0x238   :  { %v3411_v15 = vadd.f32 %v3410_v43, %v3265_v23  ;;  %v4405_v43 = vsel %vm8541_vm12, %v6621_v17, %v4404_v61  ;;  %v4916_v33 = vsel %vm7309_vm2, %v4911_v54, %v4915_v34  ;;  %v4918_v32 = vshrl.u32 %v4813_v58, 16  ;;  %v7026_v23 = vld [vmem:[#allocation2 + $0x34] sm:$0xf0]  ;;  %v9091_v9 = vld [vmem:[#allocation2 + $0x3c] sm:$0x1]  ;;  %5429 = vmatpush.bf16.msra.mxu1 %v7052_v10 }
 0x239   :  { %v4467_v14 = vunpack.c.l.b16 %v4405_v43  ;;  %v4921_v44 = vshll.u32 %v4813_v58, 16  ;;  %v4902_v30 = vsel %vm7309_vm2, %v4897_v35, %v4901_v48  ;;  %v4206_v17 = vpack.c.b16 %v4192_v18, %v4191_v51  ;;  %v3929_v45 = vld [vmem:[#allocation2 + $0x38] sm:$0xf]  ;;  %v3931_v35 = vld [vmem:[#allocation2 + $0x40] sm:$0xf] }
 0x23a   :  { %v9062_v53 = vadd.f32 %v3670_v26, %v3411_v15  ;;  %5166 = vmatmul.bf16.gmra.mxu0 %v5090_v49  ;;  %v4466_v26 = vunpack.c.l.b16 %v4401_v8  ;;  %v4011_v40 = vrot.slane %v4009_v41, 5  ;;  %v5078_v49 = vunpack.c.l.b16 %v4916_v33 }
 0x23b   :  { %v4815_v15 = vld [vmem:[#allocation2 + $0x48] sm:$0xf]  ;;  %v5077_v7 = vunpack.c.l.b16 %v4902_v30  ;;  %v4026_v47 = vor.u32 %v4025_v63, %v4022_v55  ;;  %v4920_v2 = vrot.slane %v4918_v32, 4  ;;  %v4923_v8 = vrot.slane %v4921_v44, 5 }
 0x23c   :  { %v4480_v61 = vpack.c.b16 %v4467_v14, %v4466_v26  ;;  %v4932_v59 = vshrl.u32 %v4815_v15, 16  ;;  %v6623_v43 = vrot.slane %v4341_v42, 9  ;;  %v4412_v57 = vrot.slane %v9086_v1, 5  ;;  %v9101_v14 = vld [vmem:[#allocation2 + $0x4c] sm:$0x1] }
 0x23d   :  { %4749 = vmatmul.bf16.gmra.mxu3 %v6671_v37  ;;  %v3673_v11 = vpop.f32.mrf.mxu3  ;;  %v3415_v25 = vpop.f32.mrf.mxu2  ;;  %v4935_v37 = vshll.u32 %v4815_v15, 16  ;;  %v6675_v0 = vor.u32 %v7026_v23, %v6674_v20  ;;  %v4015_v19 = vshll.u32 %v9049_v16, 16  ;;  %v6622_v24 = vrot.slane %v4340_v22, 9 }
 0x23e   :  { %v4934_v12 = vrot.slane %v4932_v59, 4  ;;  %v5091_v62 = vpack.c.b16 %v5078_v49, %v5077_v7  ;;  %v4408_v26 = vrot.slane %v9091_v9, 5  ;;  %v4027_v58 = vrot.slane %v4026_v47, 4  ;;  %v4819_v49 = vld [vmem:[#allocation2 + $0x68] sm:$0xf] }
 0x23f   :  { %v3268_v38 = vpop.f32.mrf.mxu1  ;;  %v4937_v50 = vrot.slane %v4935_v37, 5  ;;  %v4941_v16 = vshll.u32 %v9101_v14, 16  ;;  %v4037_v51 = vshll.u32 %v3929_v45, 16  ;;  %v4048_v48 = vshrl.u32 %v3931_v35, 16 }
 0x240   :  { %v3414_v4 = vadd.f32 %v9053_v29, %v3268_v38  ;;  %v4008_v29 = vrot.slane %v4006_v5, 4  ;;  %v4924_v38 = vor.u32 %v4923_v8, %v4920_v2  ;;  %v4031_v5 = vrot.slane %v4029_v3, 5 }
 0x241   :  { %v4938_v18 = vor.u32 %v4937_v50, %v4934_v12  ;;  %v4051_v55 = vshll.u32 %v3931_v35, 16  ;;  %v4409_v63 = vsel %vm8541_vm12, %v6622_v24, %v4408_v26  ;;  %v4039_v22 = vrot.slane %v4037_v51, 5  ;;  %v9129_v35 = vld [vmem:[#allocation2 + $0x5c] sm:$0x1] }
 0x242   :  { %v9082_v13 = vadd.f32 %v3673_v11, %v3414_v4  ;;  %v9095_v11 = vld [vmem:[#allocation2 + $0x44] sm:$0x1]  ;;  %v4012_v46 = vor.u32 %v4011_v40, %v4008_v29  ;;  %v4034_v4 = vshrl.u32 %v3929_v45, 16  ;;  %v4032_v23 = vsel %vm7309_vm2, %v4027_v58, %v4031_v5  ;;  %v7059_v29 = vld [vmem:[%s9566_s7 + $0x18] sm:$0xff] }
 0x243   :  { %v4927_v41 = vshll.u32 %v9095_v11, 16  ;;  %v4925_v30 = vrot.slane %v4924_v38, 4  ;;  %v4017_v40 = vrot.slane %v4015_v19, 5  ;;  %v4050_v59 = vrot.slane %v4048_v48, 4  ;;  %5599 = vmatpush.bf16.msra.mxu2 %v7059_v29  ;;  %v9131_v58 = vld [vmem:[#allocation2 + $0x64] sm:$0x1] }
 0x244   :  { %v4013_v33 = vrot.slane %v4012_v46, 4  ;;  %v4036_v3 = vrot.slane %v4034_v4, 4  ;;  %v4053_v37 = vrot.slane %v4051_v55, 5  ;;  %v4194_v7 = vunpack.c.l.b16 %v4032_v23  ;;  %v4342_v48 = vld [vmem:[#allocation2 + $0x58] sm:$0xe] }
 0x245   :  { %v3675_v52 = vpop.f32.mrf.mxu3  ;;  %4560 = vmatmul.bf16.gmra.mxu2 %v4480_v61  ;;  %v9089_v27 = vpop.f32.mrf.mxu2  ;;  %v4943_v61 = vrot.slane %v4941_v16, 5  ;;  %v4929_v15 = vrot.slane %v4927_v41, 5  ;;  %v4468_v47 = vunpack.c.l.b16 %v4409_v63  ;;  %v4963_v12 = vshll.u32 %v4819_v49, 16  ;;  %v6678_v16 = vld [vmem:[#allocation2 + $0x40] sm:$0xf] }
 0x246   :  { %v4018_v20 = vsel %vm7309_vm2, %v4013_v33, %v4017_v40  ;;  %v4040_v10 = vor.u32 %v4039_v22, %v4036_v3  ;;  %v4057_v5 = vshll.u32 %v9086_v1, 16  ;;  %v4043_v51 = vshll.u32 %v9091_v9, 16  ;;  %v7027_v63 = vld [vmem:[#allocation2 + $0x44] sm:$0xf0]  ;;  %v9141_v29 = vld [vmem:[#allocation2 + $0x6c] sm:$0x1] }
 0x247   :  { %4282 = vmatmul.bf16.gmra.mxu1 %v4206_v17  ;;  %v3270_v28 = vpop.f32.mrf.mxu1  ;;  %v4939_v17 = vrot.slane %v4938_v18, 4  ;;  %v4930_v8 = vsel %vm7309_vm2, %v4925_v30, %v4929_v15  ;;  %v4193_v19 = vunpack.c.l.b16 %v4018_v20  ;;  %v4965_v4 = vrot.slane %v4963_v12, 5  ;;  %v7051_v30 = vld [vmem:[%s9565_s4 + $0x218] sm:$0xff]  ;;  %v3935_v40 = vld [vmem:[#allocation2 + $0x60] sm:$0xf] }
 0x248   :  { %v3416_v54 = vadd.f32 %v3415_v25, %v3270_v28  ;;  %v4413_v25 = vsel %vm8541_vm12, %v6623_v43, %v4412_v57  ;;  %v4960_v57 = vshrl.u32 %v4819_v49, 16  ;;  %v5079_v46 = vunpack.c.l.b16 %v4930_v8  ;;  %v3933_v22 = vld [vmem:[#allocation2 + $0x58] sm:$0xf]  ;;  %5430 = vmatpush.bf16.msra.mxu1 %v7051_v30  ;;  %v9145_v20 = vld [vmem:[#allocation2 + $0x64] sm:$0x1] }
 0x249   :  { %v4469_v42 = vunpack.c.l.b16 %v4413_v25  ;;  %v4944_v43 = vsel %vm7309_vm2, %v4939_v17, %v4943_v61  ;;  %v4207_v38 = vpack.c.b16 %v4194_v7, %v4193_v19  ;;  %v4343_v25 = vld [vmem:[#allocation2 + $0x60] sm:$0xe]  ;;  %v4420_v1 = vrot.slane %v9131_v58, 5 }
 0x24a   :  { %v9104_v34 = vadd.f32 %v3675_v52, %v3416_v54  ;;  %5171 = vmatmul.bf16.gmra.mxu0 %v5091_v62  ;;  %v4817_v52 = vld [vmem:[#allocation2 + $0x60] sm:$0xf]  ;;  %v4054_v54 = vor.u32 %v4053_v37, %v4050_v59  ;;  %v5080_v26 = vunpack.c.l.b16 %v4944_v43  ;;  %v4962_v41 = vrot.slane %v4960_v57, 4 }
 0x24b   :  { %v4946_v45 = vshrl.u32 %v4817_v52, 16  ;;  %v4949_v28 = vshll.u32 %v4817_v52, 16  ;;  %v4481_v24 = vpack.c.b16 %v4469_v42, %v4468_v47  ;;  %v6625_v61 = vrot.slane %v4343_v25, 9 }
 0x24c   :  { %v4055_v23 = vrot.slane %v4054_v54, 4  ;;  %v5092_v17 = vpack.c.b16 %v5080_v26, %v5079_v46  ;;  %v4059_v9 = vrot.slane %v4057_v5, 5  ;;  %v6624_v15 = vrot.slane %v4342_v48, 9 }
 0x24d   :  { %4754 = vmatmul.bf16.gmra.mxu3 %v6675_v0  ;;  %v3678_v32 = vpop.f32.mrf.mxu3  ;;  %v9111_v44 = vpop.f32.mrf.mxu2  ;;  %v4948_v55 = vrot.slane %v4946_v45, 4  ;;  %v4951_v33 = vrot.slane %v4949_v28, 5  ;;  %v4416_v49 = vrot.slane %v9129_v35, 5  ;;  %v4966_v3 = vor.u32 %v4965_v4, %v4962_v41  ;;  %v7058_v4 = vld [vmem:[%s9566_s7 + $0x10] sm:$0xff] }
 0x24e   :  { %v9125_v0 = vpop.f32.mrf.mxu0  ;;  %v6679_v37 = vor.u32 %v7027_v63, %v6678_v16  ;;  %v4045_v52 = vrot.slane %v4043_v51, 5  ;;  %v4060_v47 = vsel %vm7309_vm2, %v4055_v23, %v4059_v9  ;;  %v4076_v8 = vshrl.u32 %v3935_v40, 16  ;;  %v4821_v51 = vld [vmem:[#allocation2 + $0x70] sm:$0xf]  ;;  %5600 = vmatpush.bf16.msra.mxu2 %v7058_v4 }
 0x24f   :  { %v4952_v7 = vor.u32 %v4951_v33, %v4948_v55  ;;  %v4079_v43 = vshll.u32 %v3935_v40, 16  ;;  %v4421_v12 = vsel %vm8541_vm12, %v6625_v61, %v4420_v1  ;;  %v4967_v54 = vrot.slane %v4966_v3, 4  ;;  %v9169_v40 = vld [vmem:[#allocation2 + $0x74] sm:$0x1] }
 0x250   :  { %v4196_v26 = vunpack.c.l.b16 %v4060_v47  ;;  %v4471_v16 = vunpack.c.l.b16 %v4421_v12  ;;  %v4078_v25 = vrot.slane %v4076_v8, 4  ;;  %v4974_v9 = vshrl.u32 %v4821_v51, 16  ;;  %v7028_v8 = vld [vmem:[#allocation2 + $0x64] sm:$0xf0] }
 0x251   :  { %v3273_v2 = vpop.f32.mrf.mxu1  ;;  %v4081_v41 = vrot.slane %v4079_v43, 5  ;;  %v4085_v47 = vshll.u32 %v9131_v58, 16  ;;  %v4428_v12 = vrot.slane %v9169_v40, 5  ;;  %v4071_v58 = vshll.u32 %v9129_v35, 16 }
 0x252   :  { %v3419_v50 = vadd.f32 %v9089_v27, %v3273_v2  ;;  %v4969_v2 = vshll.u32 %v9141_v29, 16 }
 0x254   :  { %v9127_v62 = vadd.f32 %v3678_v32, %v3419_v50  ;;  %v4041_v32 = vrot.slane %v4040_v10, 4  ;;  %v4062_v50 = vshrl.u32 %v3933_v22, 16  ;;  %v4955_v10 = vshll.u32 %v9145_v20, 16 }
 0x255   :  { %v3680_v18 = vpop.f32.mrf.mxu3  ;;  %4565 = vmatmul.bf16.gmra.mxu2 %v4481_v24  ;;  %v9133_v27 = vpop.f32.mrf.mxu2  ;;  %v4417_v24 = vsel %vm8541_vm12, %v6624_v15, %v4416_v49  ;;  %v4971_v5 = vrot.slane %v4969_v2, 5  ;;  %v4977_v15 = vshll.u32 %v4821_v51, 16  ;;  %v9176_v2 = vld [vmem:[#allocation2 + $0x6c] sm:$0x1] }
 0x256   :  { %v9154_v45 = vpop.f32.mrf.mxu0  ;;  %v4046_v19 = vsel %vm7309_vm2, %v4041_v32, %v4045_v52  ;;  %v4470_v55 = vunpack.c.l.b16 %v4417_v24  ;;  %v4064_v33 = vrot.slane %v4062_v50, 4  ;;  %v4957_v23 = vrot.slane %v4955_v10, 5  ;;  %v6682_v24 = vld [vmem:[#allocation2 + $0x60] sm:$0xf] }
 0x257   :  { %4287 = vmatmul.bf16.gmra.mxu1 %v4207_v38  ;;  %v4953_v38 = vrot.slane %v4952_v7, 4  ;;  %v4195_v48 = vunpack.c.l.b16 %v4046_v19  ;;  %v4972_v30 = vsel %vm7309_vm2, %v4967_v54, %v4971_v5  ;;  %v4976_v54 = vrot.slane %v4974_v9, 4 }
 0x258   :  { %v4482_v3 = vpack.c.b16 %v4471_v16, %v4470_v55  ;;  %v5082_v52 = vunpack.c.l.b16 %v4972_v30  ;;  %v4424_v5 = vrot.slane %v9176_v2, 5  ;;  %v6683_v4 = vor.u32 %v7028_v8, %v6682_v24  ;;  %v3939_v30 = vld [vmem:[#allocation2 + $0x70] sm:$0xf] }
 0x259   :  { %v3275_v42 = vpop.f32.mrf.mxu1  ;;  %v4208_v49 = vpack.c.b16 %v4196_v26, %v4195_v48  ;;  %v3937_v26 = vld [vmem:[#allocation2 + $0x68] sm:$0xf]  ;;  %v9188_v48 = vld [vmem:[#allocation2 + $0x7c] sm:$0x1]  ;;  %v4073_v9 = vrot.slane %v4071_v58, 5 }
 0x25a   :  { %v3421_v59 = vadd.f32 %v9111_v44, %v3275_v42  ;;  %5176 = vmatmul.bf16.gmra.mxu0 %v5092_v17  ;;  %v4065_v44 = vshll.u32 %v3933_v22, 16  ;;  %v4345_v42 = vld [vmem:[#allocation2 + $0x70] sm:$0xe]  ;;  %v4958_v22 = vsel %vm7309_vm2, %v4953_v38, %v4957_v23 }
 0x25b   :  { %v6627_v43 = vrot.slane %v4345_v42, 9  ;;  %v5081_v10 = vunpack.c.l.b16 %v4958_v22  ;;  %v4093_v42 = vshll.u32 %v3937_v26, 16 }
 0x25c   :  { %v9150_v57 = vadd.f32 %v3680_v18, %v3421_v59  ;;  %v4823_v18 = vld [vmem:[#allocation2 + $0x78] sm:$0xf]  ;;  %v4067_v63 = vrot.slane %v4065_v44, 5  ;;  %v4082_v59 = vor.u32 %v4081_v41, %v4078_v25  ;;  %v7050_v25 = vld [vmem:[%s9565_s4 + $0x210] sm:$0xff] }
 0x25d   :  { %4759 = vmatmul.bf16.gmra.mxu3 %v6679_v37  ;;  %v3683_v28 = vpop.f32.mrf.mxu3  ;;  %v9161_v46 = vpop.f32.mrf.mxu2  ;;  %v4988_v17 = vshrl.u32 %v4823_v18, 16  ;;  %v4991_v61 = vshll.u32 %v4823_v18, 16  ;;  %v5093_v51 = vpack.c.b16 %v5082_v52, %v5081_v10  ;;  %v4429_v35 = vsel %vm8541_vm12, %v6627_v43, %v4428_v12  ;;  %5431 = vmatpush.bf16.msra.mxu1 %v7050_v25 }
 0x25e   :  { %v4068_v7 = vor.u32 %v4067_v63, %v4064_v33  ;;  %v9179_v38 = vpop.f32.mrf.mxu0  ;;  %v4083_v18 = vrot.slane %v4082_v59, 4  ;;  %v4087_v63 = vrot.slane %v4085_v47, 5  ;;  %v4104_v52 = vshrl.u32 %v3939_v30, 16 }
 0x25f   :  { %v4990_v50 = vrot.slane %v4988_v17, 4  ;;  %v4993_v44 = vrot.slane %v4991_v61, 5  ;;  %v4473_v47 = vunpack.c.l.b16 %v4429_v35 }
 0x260   :  { %v4069_v33 = vrot.slane %v4068_v7, 4  ;;  %v4107_v7 = vshll.u32 %v3939_v30, 16 }
 0x261   :  { %v3278_v32 = vpop.f32.mrf.mxu1  ;;  %v4994_v23 = vor.u32 %v4993_v44, %v4990_v50  ;;  %v4095_v50 = vrot.slane %v4093_v42, 5  ;;  %v4827_v44 = vld [vmem:[#allocation2 + $0x88] sm:$0xf]  ;;  %v4099_v42 = vshll.u32 %v9176_v2, 16  ;;  %v7029_v2 = vld [vmem:[#allocation2 + $0x74] sm:$0xf0] }
 0x262   :  { %v3424_v1 = vadd.f32 %v9133_v27, %v3278_v32  ;;  %v4344_v27 = vld [vmem:[#allocation2 + $0x68] sm:$0xe]  ;;  %v9192_v32 = vld [vmem:[#allocation2 + $0x74] sm:$0x1] }
 0x263   :  { %v6626_v16 = vrot.slane %v4344_v27, 9  ;;  %v4983_v59 = vshll.u32 %v9192_v32, 16  ;;  %v4995_v27 = vrot.slane %v4994_v23, 4 }
 0x264   :  { %v9173_v37 = vadd.f32 %v3683_v28, %v3424_v1  ;;  %v4979_v28 = vrot.slane %v4977_v15, 5  ;;  %v4090_v1 = vshrl.u32 %v3937_v26, 16  ;;  %v4088_v15 = vsel %vm7309_vm2, %v4083_v18, %v4087_v63  ;;  %v2608_v63 = vld [vmem:[#allocation2 + $0x9c] sm:$0x1] }
 0x265   :  { %4570 = vmatmul.bf16.gmra.mxu2 %v4482_v3  ;;  %v3685_v19 = vpop.f32.mrf.mxu3  ;;  %v4997_v3 = vshll.u32 %v9188_v48, 16  ;;  %v4198_v8 = vunpack.c.l.b16 %v4088_v15  ;;  %v4985_v58 = vrot.slane %v4983_v59, 5  ;;  %v4106_v18 = vrot.slane %v4104_v52, 4  ;;  %v4347_v15 = vld [vmem:[#allocation2 + $0x80] sm:$0xe] }
 0x266   :  { %v4980_v61 = vor.u32 %v4979_v28, %v4976_v54  ;;  %v4092_v12 = vrot.slane %v4090_v1, 4  ;;  %v9210_v25 = vpop.f32.mrf.mxu0  ;;  %v4346_v1 = vld [vmem:[#allocation2 + $0x78] sm:$0xe] }
 0x267   :  { %4292 = vmatmul.bf16.gmra.mxu1 %v4208_v49  ;;  %v4425_v49 = vsel %vm8541_vm12, %v6626_v16, %v4424_v5  ;;  %v4999_v10 = vrot.slane %v4997_v3, 5  ;;  %v4109_v16 = vrot.slane %v4107_v7, 5  ;;  %v4825_v5 = vld [vmem:[#allocation2 + $0x80] sm:$0xf] }
 0x268   :  { %v9186_v41 = vpop.f32.mrf.mxu2  ;;  %v4981_v43 = vrot.slane %v4980_v61, 4  ;;  %v4472_v24 = vunpack.c.l.b16 %v4425_v49  ;;  %v9216_v61 = vld [vmem:[#allocation2 + $0x7c] sm:$0x1]  ;;  %v5002_v49 = vshrl.u32 %v4825_v5, 16  ;;  %v5005_v3 = vshll.u32 %v4825_v5, 16 }
 0x269   :  { %v3280_v55 = vpop.f32.mrf.mxu1  ;;  %v4110_v7 = vor.u32 %v4109_v16, %v4106_v18  ;;  %v4101_v5 = vrot.slane %v4099_v42, 5 }
 0x26a   :  { %v3426_v17 = vadd.f32 %v9161_v46, %v3280_v55  ;;  %5181 = vmatmul.bf16.gmra.mxu0 %v5093_v51  ;;  %v4074_v46 = vsel %vm7309_vm2, %v4069_v33, %v4073_v9  ;;  %v5016_v51 = vshrl.u32 %v4827_v44, 16  ;;  %v5019_v55 = vshll.u32 %v4827_v44, 16  ;;  %v2546_v33 = vld [vmem:[#allocation2 + $0x98] sm:$0x1] }
 0x26b   :  { %v4197_v26 = vunpack.c.l.b16 %v4074_v46  ;;  %v4483_v23 = vpack.c.b16 %v4473_v47, %v4472_v24  ;;  %v4986_v30 = vsel %vm7309_vm2, %v4981_v43, %v4985_v58  ;;  %v4113_v9 = vshll.u32 %v9169_v40, 16  ;;  %v9220_v46 = vld [vmem:[#allocation2 + $0x84] sm:$0x1] }
 0x26c   :  { %v9200_v22 = vadd.f32 %v3685_v19, %v3426_v17  ;;  %v7057_v19 = vld [vmem:[%s9566_s7 + $0x8] sm:$0xff]  ;;  %v4096_v17 = vor.u32 %v4095_v50, %v4092_v12  ;;  %v2547_v47 = vsel %vm8362_vm6, 0, %v2546_v33  ;;  %v5083_v43 = vunpack.c.l.b16 %v4986_v30 }
 0x26d   :  { %4764 = vmatmul.bf16.gmra.mxu3 %v6683_v4  ;;  %v5000_v4 = vsel %vm7309_vm2, %v4995_v27, %v4999_v10  ;;  %5601 = vmatpush.bf16.msra.mxu2 %v7057_v19  ;;  %v4209_v35 = vpack.c.b16 %v4198_v8, %v4197_v26  ;;  %v2609_v27 = vsel %vm8369_vm7, 0, %v2608_v63  ;;  %v5018_v40 = vrot.slane %v5016_v51, 4  ;;  %2548 = vst [vmem:[#allocation2 + $0x98] sm:$0x1] %v2547_v47  ;;  %v9234_v51 = vld [vmem:[#allocation2 + $0x8c] sm:$0x1] }
 0x26e   :  { %v5084_v52 = vunpack.c.l.b16 %v5000_v4  ;;  %v5021_v12 = vrot.slane %v5019_v55, 5  ;;  %v4097_v50 = vrot.slane %v4096_v17, 4  ;;  %v6628_v44 = vrot.slane %v4346_v1, 9  ;;  %2610 = vst [vmem:[#allocation2 + $0x9c] sm:$0x1] %v2609_v27  ;;  %v9240_v30 = vpop.f32.mrf.mxu0 }
 0x26f   :  { %v4432_v24 = vrot.slane %v9216_v61, 5  ;;  %v6629_v10 = vrot.slane %v4347_v15, 9  ;;  %v4436_v60 = vrot.slane %v9220_v46, 5  ;;  %v5004_v6 = vrot.slane %v5002_v49, 4  ;;  %v6686_v55 = vld [vmem:[#allocation2 + $0x70] sm:$0xf] }
 0x270   :  { %v3688_v54 = vpop.f32.mrf.mxu3  ;;  %v9208_v28 = vpop.f32.mrf.mxu2  ;;  %v5007_v26 = vrot.slane %v5005_v3, 5  ;;  %v5094_v16 = vpack.c.b16 %v5084_v52, %v5083_v43  ;;  %v4111_v4 = vrot.slane %v4110_v7, 4  ;;  %v5022_v33 = vor.u32 %v5021_v12, %v5018_v40  ;;  %v3943_v49 = vld [vmem:[#allocation2 + $0x80] sm:$0xf]  ;;  %v3941_v27 = vld [vmem:[#allocation2 + $0x78] sm:$0xf] }
 0x271   :  { %v6687_v63 = vor.u32 %v7029_v2, %v6686_v55  ;;  %v4433_v17 = vsel %vm8541_vm12, %v6628_v44, %v4432_v24  ;;  %v4437_v1 = vsel %vm8541_vm12, %v6629_v10, %v4436_v60  ;;  %v5025_v15 = vshll.u32 %v9234_v51, 16 }
 0x272   :  { %v5008_v42 = vor.u32 %v5007_v26, %v5004_v6  ;;  %v5023_v47 = vrot.slane %v5022_v33, 4  ;;  %v4474_v2 = vunpack.c.l.b16 %v4433_v17  ;;  %v4475_v43 = vunpack.c.l.b16 %v4437_v1  ;;  %v7056_v6 = vld [vmem:[%s9566_s7] sm:$0xff] }
 0x273   :  { %v4132_v40 = vshrl.u32 %v3943_v49, 16  ;;  %v4135_v12 = vshll.u32 %v3943_v49, 16  ;;  %v5027_v60 = vrot.slane %v5025_v15, 5  ;;  %5602 = vmatpush.bf16.msra.mxu2 %v7056_v6  ;;  %v4141_v6 = vshll.u32 %v9220_v46, 16 }
 0x274   :  { %v3283_v59 = vpop.f32.mrf.mxu1  ;;  %v5009_v10 = vrot.slane %v5008_v42, 4  ;;  %v4484_v1 = vpack.c.b16 %v4475_v43, %v4474_v2 }
 0x275   :  { %v3429_v8 = vadd.f32 %v9186_v41, %v3283_v59  ;;  %4575 = vmatmul.bf16.gmra.mxu2 %v4483_v23  ;;  %v7049_v41 = vld [vmem:[%s9565_s4 + $0x208] sm:$0xff]  ;;  %v4115_v23 = vrot.slane %v4113_v9, 5  ;;  %v5028_v55 = vsel %vm7309_vm2, %v5023_v47, %v5027_v60  ;;  %v4127_v60 = vshll.u32 %v9216_v61, 16 }
 0x276   :  { %5432 = vmatpush.bf16.msra.mxu1 %v7049_v41  ;;  %v5086_v49 = vunpack.c.l.b16 %v5028_v55 }
 0x277   :  { %v9228_v19 = vadd.f32 %v3688_v54, %v3429_v8  ;;  %4297 = vmatmul.bf16.gmra.mxu1 %v4209_v35  ;;  %v9236_v54 = vld [vmem:[#allocation2 + $0x84] sm:$0x1]  ;;  %v4102_v35 = vsel %vm7309_vm2, %v4097_v50, %v4101_v5  ;;  %v4116_v59 = vsel %vm7309_vm2, %v4111_v4, %v4115_v23  ;;  %v4829_v8 = vld [vmem:[#allocation2 + $0x90] sm:$0xf]  ;;  %v4831_v50 = vld [vmem:[#allocation2 + $0x98] sm:$0xf] }
 0x278   :  { %v3690_v58 = vpop.f32.mrf.mxu3  ;;  %v3433_v18 = vpop.f32.mrf.mxu2  ;;  %v5011_v52 = vshll.u32 %v9236_v54, 16  ;;  %v4199_v7 = vunpack.c.l.b16 %v4102_v35  ;;  %v4200_v24 = vunpack.c.l.b16 %v4116_v59  ;;  %v4121_v5 = vshll.u32 %v3941_v27, 16 }
 0x279   :  { %v5030_v4 = vshrl.u32 %v4829_v8, 16  ;;  %v5044_v33 = vshrl.u32 %v4831_v50, 16  ;;  %v4134_v35 = vrot.slane %v4132_v40, 4  ;;  %v4137_v23 = vrot.slane %v4135_v12, 5 }
 0x27a   :  { %5186 = vmatmul.bf16.gmra.mxu0 %v5094_v16  ;;  %v5013_v41 = vrot.slane %v5011_v52, 5  ;;  %v4118_v16 = vshrl.u32 %v3941_v27, 16  ;;  %v4210_v17 = vpack.c.b16 %v4200_v24, %v4199_v7  ;;  %v4123_v59 = vrot.slane %v4121_v5, 5  ;;  %v9262_v52 = vld [vmem:[#allocation2 + $0x94] sm:$0x1]  ;;  %v9264_v27 = vpop.f32.mrf.mxu0 }
 0x27b   :  { %v5046_v40 = vrot.slane %v5044_v33, 4  ;;  %v7030_v7 = vld [vmem:[#allocation2 + $0x84] sm:$0xf0]  ;;  %v4138_v43 = vor.u32 %v4137_v23, %v4134_v35  ;;  %v9266_v24 = vld [vmem:[#allocation2 + $0x8c] sm:$0x1]  ;;  %v4444_v33 = vrot.slane %v9262_v52, 5 }
 0x27c   :  { %v3285_v3 = vpop.f32.mrf.mxu1  ;;  %v5014_v42 = vsel %vm7309_vm2, %v5009_v10, %v5013_v41  ;;  %v4348_v41 = vld [vmem:[#allocation2 + $0x88] sm:$0xe]  ;;  %v6690_v23 = vld [vmem:[#allocation2 + $0x80] sm:$0xf] }
 0x27d   :  { %v3431_v9 = vadd.f32 %v9208_v28, %v3285_v3  ;;  %4769 = vmatmul.bf16.gmra.mxu3 %v6687_v63  ;;  %v5047_v63 = vshll.u32 %v4831_v50, 16  ;;  %v4120_v3 = vrot.slane %v4118_v16, 4  ;;  %v5085_v2 = vunpack.c.l.b16 %v5014_v42 }
 0x27e   :  { %v4440_v42 = vrot.slane %v9266_v24, 5 }
 0x27f   :  { %v9251_v44 = vadd.f32 %v3690_v58, %v3431_v9  ;;  %v5033_v58 = vshll.u32 %v4829_v8, 16  ;;  %v5032_v9 = vrot.slane %v5030_v4, 4  ;;  %v4349_v8 = vld [vmem:[#allocation2 + $0x90] sm:$0xe]  ;;  %v5049_v12 = vrot.slane %v5047_v63, 5 }
 0x280   :  { %v3693_v28 = vpop.f32.mrf.mxu3  ;;  %v9256_v26 = vpop.f32.mrf.mxu2  ;;  %v5095_v4 = vpack.c.b16 %v5086_v49, %v5085_v2  ;;  %v4124_v55 = vor.u32 %v4123_v59, %v4120_v3  ;;  %v9276_v63 = vld [vmem:[#allocation2 + $0x94] sm:$0x1]  ;;  %v3947_v3 = vld [vmem:[#allocation2 + $0x90] sm:$0xf]  ;;  %v4143_v2 = vrot.slane %v4141_v6, 5 }
 0x281   :  { %v5035_v50 = vrot.slane %v5033_v58, 5  ;;  %v6631_v58 = vrot.slane %v4349_v8, 9  ;;  %9596 = vst [vmem:[#allocation9_spill] sm:$0xff] %v9276_v63  ;;  %v5050_v61 = vor.u32 %v5049_v12, %v5046_v40  ;;  %v5039_v49 = vshll.u32 %v9276_v63, 16 }
 0x282   :  { %v4129_v8 = vrot.slane %v4127_v60, 5  ;;  %v9290_v60 = vpop.f32.mrf.mxu0 }
 0x283   :  { %v5036_v35 = vor.u32 %v5035_v50, %v5032_v9  ;;  %v4445_v9 = vsel %vm8541_vm12, %v6631_v58, %v4444_v33  ;;  %v5051_v12 = vrot.slane %v5050_v61, 4  ;;  %v5041_v33 = vrot.slane %v5039_v49, 5 }
 0x284   :  { %v3288_v15 = vpop.f32.mrf.mxu1  ;;  %v4477_v58 = vunpack.c.l.b16 %v4445_v9 }
 0x285   :  { %v3434_v47 = vadd.f32 %v3433_v18, %v3288_v15  ;;  %4580 = vmatmul.bf16.gmra.mxu2 %v4484_v1  ;;  %v7048_v18 = vld [vmem:[%s9565_s4 + $0x200] sm:$0xff]  ;;  %v6630_v1 = vrot.slane %v4348_v41, 9  ;;  %v6691_v15 = vor.u32 %v7030_v7, %v6690_v23  ;;  %v5037_v40 = vrot.slane %v5036_v35, 4  ;;  %v3945_v41 = vld [vmem:[#allocation2 + $0x88] sm:$0xf] }
 0x286   :  { %5433 = vmatpush.bf16.msra.mxu1 %v7048_v18  ;;  %v4146_v61 = vshrl.u32 %v3945_v41, 16 }
 0x287   :  { %v9268_v10 = vadd.f32 %v3693_v28, %v3434_v47  ;;  %4302 = vmatmul.bf16.gmra.mxu1 %v4210_v17  ;;  %v9278_v28 = vld [vmem:[#allocation2 + $0x9c] sm:$0x1]  ;;  %v4139_v17 = vrot.slane %v4138_v43, 4  ;;  %v4125_v47 = vrot.slane %v4124_v55, 4  ;;  %v4441_v18 = vsel %vm8541_vm12, %v6630_v1, %v4440_v42 }
 0x288   :  { %v3695_v16 = vpop.f32.mrf.mxu3  ;;  %v3438_v5 = vpop.f32.mrf.mxu2  ;;  %9597 = vst [vmem:[#allocation10_spill] sm:$0xff] %v9278_v28  ;;  %v5053_v46 = vshll.u32 %v9278_v28, 16  ;;  %v4163_v55 = vshll.u32 %v3947_v3, 16  ;;  %v5042_v1 = vsel %vm7309_vm2, %v5037_v40, %v5041_v33  ;;  %v4148_v28 = vrot.slane %v4146_v61, 4  ;;  %v7031_v33 = vld [vmem:[#allocation2 + $0x94] sm:$0xf0] }
 0x289   :  { %v4144_v7 = vsel %vm7309_vm2, %v4139_v17, %v4143_v2  ;;  %v4130_v35 = vsel %vm7309_vm2, %v4125_v47, %v4129_v8  ;;  %v4476_v17 = vunpack.c.l.b16 %v4441_v18  ;;  %v5087_v9 = vunpack.c.l.b16 %v5042_v1  ;;  %v6694_v18 = vld [vmem:[#allocation2 + $0x90] sm:$0xf] }
 0x28a   :  { %5191 = vmatmul.bf16.gmra.mxu0 %v5095_v4  ;;  %v5055_v43 = vrot.slane %v5053_v46, 5  ;;  %v4160_v4 = vshrl.u32 %v3947_v3, 16  ;;  %v4149_v46 = vshll.u32 %v3945_v41, 16  ;;  %v6695_v61 = vor.u32 %v7031_v33, %v6694_v18 }
 0x28b   :  { %v4485_v2 = vpack.c.b16 %v4477_v58, %v4476_v17 }
 0x28c   :  { %v3290_v59 = vpop.f32.mrf.mxu1  ;;  %v5056_v42 = vsel %vm7309_vm2, %v5051_v12, %v5055_v43  ;;  %v4162_v3 = vrot.slane %v4160_v4, 4  ;;  %v4151_v63 = vrot.slane %v4149_v46, 5  ;;  %v4169_v4 = vshll.u32 %v9262_v52, 16 }
 0x28d   :  { %v3436_v50 = vadd.f32 %v9256_v26, %v3290_v59  ;;  %4774 = vmatmul.bf16.gmra.mxu3 %v6691_v15  ;;  %v4202_v15 = vunpack.c.l.b16 %v4144_v7  ;;  %v4201_v59 = vunpack.c.l.b16 %v4130_v35  ;;  %v4155_v35 = vshll.u32 %v9266_v24, 16 }
 0x28e   :  { %v4152_v43 = vor.u32 %v4151_v63, %v4148_v28 }
 0x28f   :  { %v9292_v6 = vadd.f32 %v3695_v16, %v3436_v50  ;;  %v4165_v16 = vrot.slane %v4163_v55, 5  ;;  %v5088_v50 = vunpack.c.l.b16 %v5056_v42  ;;  %v4211_v8 = vpack.c.b16 %v4202_v15, %v4201_v59  ;;  %v9303_v55 = vpop.f32.mrf.mxu0 }
 0x290   :  { %v3698_v26 = vpop.f32.mrf.mxu3  ;;  %v3440_v23 = vpop.f32.mrf.mxu2  ;;  %v4153_v15 = vrot.slane %v4152_v43, 4  ;;  %v4157_v1 = vrot.slane %v4155_v35, 5 }
 0x291   :  { %v4166_v41 = vor.u32 %v4165_v16, %v4162_v3  ;;  %v5096_v12 = vpack.c.b16 %v5088_v50, %v5087_v9  ;;  %v5219_v9 = vld [vmem:[#allocation2 + $0x18] sm:$0xe] }
 0x292   :  { %v4158_v28 = vsel %vm7309_vm2, %v4153_v15, %v4157_v1 }
 0x293   :  { %v4203_v16 = vunpack.c.l.b16 %v4158_v28 }
 0x294   :  { %v3293_v49 = vpop.f32.mrf.mxu1 }
 0x295   :  { %v3439_v47 = vadd.f32 %v3438_v5, %v3293_v49  ;;  %4585 = vmatmul.bf16.gmra.mxu2 %v4485_v2  ;;  %v4167_v5 = vrot.slane %v4166_v41, 4  ;;  %v7144_v41 = vld [vmem:[#allocation2 + $0x1c] sm:$0x1] }
 0x296   :  { %v5272_v18 = vrot.slane %v7144_v41, 5 }
 0x297   :  { %v9300_v7 = vadd.f32 %v3698_v26, %v3439_v47  ;;  %4307 = vmatmul.bf16.gmra.mxu1 %v4211_v8  ;;  %v4171_v26 = vrot.slane %v4169_v4, 5  ;;  %v5218_v47 = vld [vmem:[#allocation2 + $0x10] sm:$0xe]  ;;  %v6761_v8 = vrot.slane %v5219_v9, 9 }
 0x298   :  { %v3443_v40 = vpop.f32.mrf.mxu2  ;;  %v3700_v58 = vpop.f32.mrf.mxu3  ;;  %v6760_v39 = vrot.slane %v5218_v47, 9 }
 0x299   :  { %v4172_v42 = vsel %vm7309_vm2, %v4167_v5, %v4171_v26 }
 0x29a   :  { %5196 = vmatmul.bf16.gmra.mxu0 %v5096_v12  ;;  %v4204_v3 = vunpack.c.l.b16 %v4172_v42  ;;  %v7145_v12 = vld [vmem:[#allocation2 + $0x14] sm:$0x1] }
 0x29b   :  { %v5268_v43 = vrot.slane %v7145_v12, 5 }
 0x29c   :  { %v3295_v46 = vpop.f32.mrf.mxu1  ;;  %v4212_v49 = vpack.c.b16 %v4204_v3, %v4203_v16  ;;  %v5220_v3 = vld [vmem:[#allocation2 + $0x20] sm:$0xe] }
 0x29d   :  { %v3441_v17 = vadd.f32 %v3440_v23, %v3295_v46  ;;  %4779 = vmatmul.bf16.gmra.mxu3 %v6695_v61  ;;  %v5269_v5 = vsel %vm8541_vm12, %v6760_v39, %v5268_v43  ;;  %v3901_v46 = vadd.f32 %v9125_v0, %v9045_v21  ;;  %v6762_v21 = vrot.slane %v5220_v3, 9  ;;  %v7147_v0 = vld [vmem:[#allocation2 + $0x24] sm:$0x1] }
 0x29e   :  { %v5346_v15 = vunpack.c.l.b16 %v5269_v5  ;;  %v5276_v9 = vrot.slane %v7147_v0, 5  ;;  %v5222_v5 = vld [vmem:[#allocation2 + $0x30] sm:$0xe] }
 0x29f   :  { %v9308_v63 = vadd.f32 %v3700_v58, %v3441_v17 }
 0x2a0   :  { %v3445_v52 = vpop.f32.mrf.mxu2  ;;  %v3703_v59 = vpop.f32.mrf.mxu3  ;;  %v5277_v41 = vsel %vm8541_vm12, %v6762_v21, %v5276_v9  ;;  %v9599_v9 = vld [vmem:[#allocation4_spill] sm:$0xff] }
 0x2a4   :  { %v3298_v24 = vpop.f32.mrf.mxu1 }
 0x2a5   :  { %v3444_v2 = vadd.f32 %v3443_v40, %v3298_v24  ;;  %5603 = vmatmul.bf16.vlgmr.msra.gmra.mxu2 %v7718_v56  ;;  %v5273_v40 = vsel %vm8541_vm12, %v6761_v8, %v5272_v18  ;;  %v7146_v24 = vld [vmem:[#allocation2 + $0x2c] sm:$0x1] }
 0x2a6   :  { %v5347_v61 = vunpack.c.l.b16 %v5273_v40  ;;  %v5223_v40 = vld [vmem:[#allocation2 + $0x38] sm:$0xe] }
 0x2a7   :  { %v9313_v23 = vadd.f32 %v3703_v59, %v3444_v2  ;;  %4312 = vmatmul.bf16.gmra.mxu1 %v4212_v49  ;;  %v5280_v59 = vrot.slane %v7146_v24, 5  ;;  %v3902_v2 = vadd.f32 %v9154_v45, %v9062_v53  ;;  %v3903_v53 = vadd.f32 %v9179_v38, %v9082_v13  ;;  %v7149_v38 = vld [vmem:[#allocation2 + $0x34] sm:$0x1] }
 0x2a8   :  { %v4551_v50 = vpop.f32.mrf.mxu2  ;;  %v3705_v58 = vpop.f32.mrf.mxu3  ;;  %v5362_v1 = vpack.c.b16 %v5347_v61, %v5346_v15  ;;  %v5348_v45 = vunpack.c.l.b16 %v5277_v41  ;;  %v6765_v61 = vrot.slane %v5223_v40, 9  ;;  %v6764_v13 = vrot.slane %v5222_v5, 9  ;;  %v5225_v41 = vld [vmem:[#allocation2 + $0x48] sm:$0xe] }
 0x2ac   :  { %v3300_v33 = vpop.f32.mrf.mxu1 }
 0x2ad   :  { %v3446_v4 = vadd.f32 %v3445_v52, %v3300_v33  ;;  %v5221_v52 = vld [vmem:[#allocation2 + $0x28] sm:$0xe]  ;;  %v9334_v33 = vpop.f32.mrf.mxu0 }
 0x2ae   :  { %v6763_v16 = vrot.slane %v5221_v52, 9 }
 0x2af   :  { %v9317_v35 = vadd.f32 %v3705_v58, %v3446_v4  ;;  %v9598_v4 = vld [vmem:[#allocation3_spill] sm:$0xff] }
 0x2b0   :  { %v4553_v56 = vpop.f32.mrf.mxu2 }
 0x2b4   :  { %v4278_v26 = vpop.f32.mrf.mxu1 }
 0x2b5   :  { %v4318_v17 = vadd.f32 %v4278_v26, %v3901_v46  ;;  %5608 = vmatmul.bf16.gmra.mxu2 %v7767_v31  ;;  %v5281_v31 = vsel %vm8541_vm12, %v6763_v16, %v5280_v59  ;;  %v7148_v46 = vld [vmem:[#allocation2 + $0x3c] sm:$0x1]  ;;  %v3904_v26 = vadd.f32 %v9210_v25, %v9104_v34  ;;  %v9343_v52 = vpop.f32.mrf.mxu0  ;;  %v3905_v34 = vadd.f32 %v9240_v30, %v9127_v62 }
 0x2b6   :  { %v5349_v18 = vunpack.c.l.b16 %v5281_v31  ;;  %v5288_v15 = vrot.slane %v7148_v46, 5  ;;  %v5296_v62 = vrot.slane %v9101_v14, 5  ;;  %v3906_v30 = vadd.f32 %v9264_v27, %v9150_v57 }
 0x2b7   :  { %v9324_v42 = vadd.f32 %v4551_v50, %v4318_v17  ;;  %5434 = vmatmul.bf16.vlgmr.msra.gmra.mxu1 %v5362_v1  ;;  %v5284_v1 = vrot.slane %v7149_v38, 5  ;;  %v3907_v14 = vadd.f32 %v9290_v60, %v9173_v37  ;;  %v5300_v60 = vrot.slane %v9145_v20, 5 }
 0x2b8   :  { %v4556_v28 = vpop.f32.mrf.mxu2  ;;  %v5363_v43 = vpack.c.b16 %v5349_v18, %v5348_v45  ;;  %v5292_v45 = vrot.slane %v9095_v11, 5 }
 0x2b9   :  { %v5285_v59 = vsel %vm8541_vm12, %v6764_v13, %v5284_v1  ;;  %v5227_v13 = vld [vmem:[#allocation2 + $0x68] sm:$0xe]  ;;  %v5226_v1 = vld [vmem:[#allocation2 + $0x60] sm:$0xe] }
 0x2ba   :  { %v5350_v25 = vunpack.c.l.b16 %v5285_v59  ;;  %v3908_v59 = vadd.f32 %v9303_v55, %v9200_v22  ;;  %v6768_v37 = vrot.slane %v5226_v1, 9 }
 0x2bc   :  { %v4280_v49 = vpop.f32.mrf.mxu1 }
 0x2bd   :  { %v4319_v47 = vadd.f32 %v4280_v49, %v3902_v2 }
 0x2bf   :  { %v9330_v50 = vadd.f32 %v4553_v56, %v4319_v47  ;;  %v9354_v47 = vpop.f32.mrf.mxu0 }
 0x2c0   :  { %v4558_v8 = vpop.f32.mrf.mxu2 }
 0x2c4   :  { %v4283_v39 = vpop.f32.mrf.mxu1 }
 0x2c5   :  { %v4320_v12 = vadd.f32 %v4283_v39, %v3903_v53  ;;  %5613 = vmatmul.bf16.gmra.mxu2 %v9598_v4  ;;  %v6767_v39 = vrot.slane %v5225_v41, 9 }
 0x2c7   :  { %v9339_v58 = vadd.f32 %v4556_v28, %v4320_v12  ;;  %5439 = vmatmul.bf16.gmra.mxu1 %v5363_v43  ;;  %v5289_v28 = vsel %vm8541_vm12, %v6765_v61, %v5288_v15  ;;  %v5297_v40 = vsel %vm8541_vm12, %v6767_v39, %v5296_v62  ;;  %v9368_v61 = vpop.f32.mrf.mxu0  ;;  %v5228_v62 = vld [vmem:[#allocation2 + $0x70] sm:$0xe] }
 0x2c8   :  { %v4561_v56 = vpop.f32.mrf.mxu2  ;;  %v5351_v2 = vunpack.c.l.b16 %v5289_v28  ;;  %v5353_v46 = vunpack.c.l.b16 %v5297_v40  ;;  %v5304_v28 = vrot.slane %v9141_v29, 5  ;;  %v3909_v29 = vadd.f32 %v9334_v33, %v9228_v19 }
 0x2c9   :  { %v3910_v19 = vadd.f32 %v9343_v52, %v9251_v44 }
 0x2ca   :  { %v5364_v0 = vpack.c.b16 %v5351_v2, %v5350_v25 }
 0x2cc   :  { %v4285_v17 = vpop.f32.mrf.mxu1 }
 0x2cd   :  { %v4321_v3 = vadd.f32 %v4285_v17, %v3904_v26  ;;  %v9600_v26 = vld [vmem:[#allocation5_spill] sm:$0xff] }
 0x2cf   :  { %v9347_v16 = vadd.f32 %v4558_v8, %v4321_v3  ;;  %v5224_v8 = vld [vmem:[#allocation2 + $0x40] sm:$0xe]  ;;  %v6769_v3 = vrot.slane %v5227_v13, 9 }
 0x2d0   :  { %v4563_v24 = vpop.f32.mrf.mxu2  ;;  %v6766_v53 = vrot.slane %v5224_v8, 9 }
 0x2d1   :  { %v5305_v25 = vsel %vm8541_vm12, %v6769_v3, %v5304_v28  ;;  %v5230_v28 = vld [vmem:[#allocation2 + $0x80] sm:$0xe] }
 0x2d2   :  { %v5293_v4 = vsel %vm8541_vm12, %v6766_v53, %v5292_v45  ;;  %v5229_v45 = vld [vmem:[#allocation2 + $0x78] sm:$0xe] }
 0x2d3   :  { %v5352_v11 = vunpack.c.l.b16 %v5293_v4  ;;  %v5308_v4 = vrot.slane %v9192_v32, 5  ;;  %v9602_v32 = vld [vmem:[#allocation7_spill] sm:$0xff] }
 0x2d4   :  { %v4288_v49 = vpop.f32.mrf.mxu1 }
 0x2d5   :  { %v4322_v21 = vadd.f32 %v4288_v49, %v3905_v34  ;;  %5618 = vmatmul.bf16.gmra.mxu2 %v9599_v9  ;;  %v5365_v27 = vpack.c.b16 %v5353_v46, %v5352_v11  ;;  %v5355_v9 = vunpack.c.l.b16 %v5305_v25 }
 0x2d7   :  { %v9356_v31 = vadd.f32 %v4561_v56, %v4322_v21  ;;  %5444 = vmatmul.bf16.gmra.mxu1 %v5364_v0  ;;  %v5301_v0 = vsel %vm8541_vm12, %v6768_v37, %v5300_v60  ;;  %v3912_v37 = vadd.f32 %v9368_v61, %v9292_v6  ;;  %v5316_v60 = vrot.slane %v9236_v54, 5  ;;  %v9603_v54 = vld [vmem:[#allocation8_spill] sm:$0xff] }
 0x2d8   :  { %v4566_v18 = vpop.f32.mrf.mxu2  ;;  %v5354_v8 = vunpack.c.l.b16 %v5301_v0  ;;  %v4745_v0 = vpop.f32.mrf.mxu3 }
 0x2da   :  { %v5366_v20 = vpack.c.b16 %v5355_v9, %v5354_v8 }
 0x2dc   :  { %v4290_v12 = vpop.f32.mrf.mxu1 }
 0x2dd   :  { %v4323_v43 = vadd.f32 %v4290_v12, %v3906_v30  ;;  %v6771_v30 = vrot.slane %v5229_v45, 9  ;;  %v5312_v12 = vrot.slane %v9188_v48, 5  ;;  %v3911_v48 = vadd.f32 %v9354_v47, %v9268_v10  ;;  %v5232_v45 = vld [vmem:[#allocation2 + $0x90] sm:$0xe] }
 0x2de   :  { %v6772_v47 = vrot.slane %v5230_v28, 9 }
 0x2df   :  { %v9366_v56 = vadd.f32 %v4563_v24, %v4323_v43  ;;  %v3891_v24 = vpop.f32.mrf.mxu0  ;;  %v6770_v43 = vrot.slane %v5228_v62, 9 }
 0x2e0   :  { %v4568_v5 = vpop.f32.mrf.mxu2 }
 0x2e4   :  { %v4293_v15 = vpop.f32.mrf.mxu1 }
 0x2e5   :  { %v4324_v57 = vadd.f32 %v4293_v15, %v3907_v14  ;;  %5623 = vmatmul.bf16.gmra.mxu2 %v9600_v26  ;;  %v5309_v15 = vsel %vm8541_vm12, %v6770_v43, %v5308_v4  ;;  %v9605_v4 = vld [vmem:[#allocation10_spill] sm:$0xff] }
 0x2e6   :  { %v5356_v44 = vunpack.c.l.b16 %v5309_v15 }
 0x2e7   :  { %v9373_v17 = vadd.f32 %v4566_v18, %v4324_v57  ;;  %5449 = vmatmul.bf16.gmra.mxu1 %v5365_v27  ;;  %v9387_v55 = vpop.f32.mrf.mxu0  ;;  %v9601_v18 = vld [vmem:[#allocation6_spill] sm:$0xff] }
 0x2e8   :  { %v4571_v38 = vpop.f32.mrf.mxu2 }
 0x2ec   :  { %v4295_v2 = vpop.f32.mrf.mxu1 }
 0x2ed   :  { %v4325_v34 = vadd.f32 %v4295_v2, %v3908_v59  ;;  %v5320_v2 = vrot.slane %v9234_v51, 5 }
 0x2ef   :  { %v9381_v49 = vadd.f32 %v4568_v5, %v4325_v34  ;;  %v5313_v5 = vsel %vm8541_vm12, %v6771_v30, %v5312_v12  ;;  %v3896_v11 = vpop.f32.mrf.mxu0  ;;  %v4747_v30 = vpop.f32.mrf.mxu3  ;;  %v6774_v12 = vrot.slane %v5232_v45, 9 }
 0x2f0   :  { %v4573_v21 = vpop.f32.mrf.mxu2  ;;  %v5357_v57 = vunpack.c.l.b16 %v5313_v5 }
 0x2f2   :  { %v5367_v26 = vpack.c.b16 %v5357_v57, %v5356_v44 }
 0x2f4   :  { %v4298_v22 = vpop.f32.mrf.mxu1 }
 0x2f5   :  { %v4326_v41 = vadd.f32 %v4298_v22, %v3909_v29  ;;  %5628 = vmatmul.bf16.gmra.mxu2 %v9601_v18  ;;  %v5317_v29 = vsel %vm8541_vm12, %v6772_v47, %v5316_v60  ;;  %v3913_v22 = vadd.f32 %v3891_v24, %v9300_v7  ;;  %v3914_v7 = vadd.f32 %v9387_v55, %v9308_v63 }
 0x2f6   :  { %v5358_v6 = vunpack.c.l.b16 %v5317_v29  ;;  %v4785_v47 = vadd.f32 %v4745_v0, %v9324_v42 }
 0x2f7   :  { %v9390_v53 = vadd.f32 %v4571_v38, %v4326_v41  ;;  %5454 = vmatmul.bf16.gmra.mxu1 %v5366_v20  ;;  %v5231_v38 = vld [vmem:[#allocation2 + $0x88] sm:$0xe]  ;;  %v3898_v3 = vpop.f32.mrf.mxu0 }
 0x2f8   :  { %v4576_v39 = vpop.f32.mrf.mxu2  ;;  %v6773_v59 = vrot.slane %v5231_v38, 9 }
 0x2fa   :  { %v5321_v25 = vsel %vm8541_vm12, %v6773_v59, %v5320_v2  ;;  %v3916_v2 = vadd.f32 %v3898_v3, %v9317_v35  ;;  %v9446_v35 = vld [vmem:[%s9569_s5] ss:$0 sm:$0xff]  ;;  %v4786_v3 = vadd.f32 %v4747_v30, %v9330_v50 }
 0x2fb   :  { %v5359_v8 = vunpack.c.l.b16 %v5321_v25 }
 0x2fc   :  { %v4300_v33 = vpop.f32.mrf.mxu1 }
 0x2fd   :  { %v4327_v40 = vadd.f32 %v4300_v33, %v3910_v19  ;;  %v5368_v20 = vpack.c.b16 %v5359_v8, %v5358_v6  ;;  %v9604_v19 = vld [vmem:[#allocation9_spill] sm:$0xff]  ;;  %v9459_v6 = vld [vmem:[%s9570_s6] ss:$0 sm:$0xff] }
 0x2fe   :  { %v5324_v33 = vrot.slane %v9604_v19, 5 }
 0x2ff   :  { %v9398_v46 = vadd.f32 %v4573_v21, %v4327_v40  ;;  %v5162_v51 = vpop.f32.mrf.mxu0  ;;  %v5328_v40 = vrot.slane %v9605_v4, 5 }
 0x300   :  { %v4578_v14 = vpop.f32.mrf.mxu2  ;;  %v5325_v15 = vsel %vm8541_vm12, %v6774_v12, %v5324_v33 }
 0x304   :  { %v4303_v52 = vpop.f32.mrf.mxu1 }
 0x305   :  { %v4328_v27 = vadd.f32 %v4303_v52, %v3911_v48  ;;  %5633 = vmatmul.bf16.gmra.mxu2 %v9602_v32  ;;  %v5360_v52 = vunpack.c.l.b16 %v5325_v15  ;;  %v4750_v32 = vpop.f32.mrf.mxu3 }
 0x307   :  { %v9405_v13 = vadd.f32 %v4576_v39, %v4328_v27  ;;  %5459 = vmatmul.bf16.gmra.mxu1 %v5367_v26  ;;  %v5233_v39 = vld [vmem:[#allocation2 + $0x98] sm:$0xe]  ;;  %v5164_v5 = vpop.f32.mrf.mxu0  ;;  %v3915_v26 = vadd.f32 %v3896_v11, %v9313_v23  ;;  %v5202_v11 = vadd.f32 %v5162_v51, %v4785_v47  ;;  %v9453_v51 = vld [vmem:[%s9568_s9] ss:$0 sm:$0xff] }
 0x308   :  { %v4581_v1 = vpop.f32.mrf.mxu2  ;;  %v6775_v43 = vrot.slane %v5233_v39, 9 }
 0x30a   :  { %v5329_v57 = vsel %vm8541_vm12, %v6775_v43, %v5328_v40 }
 0x30b   :  { %v5361_v27 = vunpack.c.l.b16 %v5329_v57 }
 0x30c   :  { %v4305_v10 = vpop.f32.mrf.mxu1 }
 0x30d   :  { %v4329_v34 = vadd.f32 %v4305_v10, %v3912_v37  ;;  %v5369_v63 = vpack.c.b16 %v5361_v27, %v5360_v52  ;;  %v4752_v10 = vpop.f32.mrf.mxu3 }
 0x30f   :  { %v9413_v21 = vadd.f32 %v4578_v14, %v4329_v34  ;;  %v5167_v55 = vpop.f32.mrf.mxu0 }
 0x310   :  { %v4583_v9 = vpop.f32.mrf.mxu2 }
 0x314   :  { %v4308_v61 = vpop.f32.mrf.mxu1 }
 0x315   :  { %v4330_v41 = vadd.f32 %v4308_v61, %v3913_v22  ;;  %5638 = vmatmul.bf16.gmra.mxu2 %v9603_v54  ;;  %v4755_v42 = vpop.f32.mrf.mxu3 }
 0x317   :  { %v9419_v18 = vadd.f32 %v4581_v1, %v4330_v41  ;;  %5464 = vmatmul.bf16.gmra.mxu1 %v5368_v20  ;;  %v5169_v23 = vpop.f32.mrf.mxu0  ;;  %v5203_v41 = vadd.f32 %v5164_v5, %v4786_v3 }
 0x318   :  { %v4586_v62 = vpop.f32.mrf.mxu2 }
 0x31c   :  { %v4310_v24 = vpop.f32.mrf.mxu1 }
 0x31d   :  { %v4331_v14 = vadd.f32 %v4310_v24, %v3914_v7  ;;  %v4757_v4 = vpop.f32.mrf.mxu3 }
 0x31f   :  { %v9429_v48 = vadd.f32 %v4583_v9, %v4331_v14  ;;  %v9441_v9 = vld [vmem:[%s9567_s8] ss:$0 sm:$0xff]  ;;  %v5172_v61 = vpop.f32.mrf.mxu0 }
 0x320   :  { %v4588_v44 = vpop.f32.mrf.mxu2 }
 0x324   :  { %v4313_v38 = vpop.f32.mrf.mxu1 }
 0x325   :  { %v4332_v1 = vadd.f32 %v4313_v38, %v3915_v26  ;;  %v4760_v38 = vpop.f32.mrf.mxu3 }
 0x327   :  { %v9432_v28 = vadd.f32 %v4586_v62, %v4332_v1  ;;  %5469 = vmatmul.bf16.gmra.mxu1 %v5369_v63  ;;  %v4787_v62 = vadd.f32 %v4750_v32, %v9339_v58  ;;  %v5174_v5 = vpop.f32.mrf.mxu0 }
 0x328   :  { %v5604_v59 = vpop.f32.mrf.mxu2 }
 0x329   :  { %v5648_v8 = vmul.f32 %v9441_v9, %v5604_v59  ;;  %v5204_v7 = vadd.f32 %v5167_v55, %v4787_v62 }
 0x32b   :  { %v5668_v50 = vadd.f32 %v9453_v51, %v5648_v8 }
 0x32c   :  { %v4315_v36 = vpop.f32.mrf.mxu1 }
 0x32d   :  { %v4333_v37 = vadd.f32 %v4315_v36, %v3916_v2  ;;  %v4789_v2 = vadd.f32 %v4755_v42, %v9356_v31 }
 0x32f   :  { %v9436_v60 = vadd.f32 %v4588_v44, %v4333_v37  ;;  %v4788_v44 = vadd.f32 %v4752_v10, %v9347_v16  ;;  %v5177_v36 = vpop.f32.mrf.mxu0 }
 0x330   :  { %v5606_v34 = vpop.f32.mrf.mxu2 }
 0x331   :  { %v5649_v45 = vmul.f32 %v9441_v9, %v5606_v34  ;;  %v5205_v32 = vadd.f32 %v5169_v23, %v4788_v44 }
 0x333   :  { %v5669_v33 = vadd.f32 %v9453_v51, %v5649_v45 }
 0x334   :  { %v5435_v25 = vpop.f32.mrf.mxu1 }
 0x335   :  { %v5475_v29 = vadd.f32 %v5435_v25, %v5202_v11  ;;  %v5206_v25 = vadd.f32 %v5172_v61, %v4789_v2 }
 0x337   :  { %v5495_v22 = vmul.f32 %v9446_v35, %v5475_v29  ;;  %v5179_v42 = vpop.f32.mrf.mxu0 }
 0x338   :  { %v5609_v0 = vpop.f32.mrf.mxu2 }
 0x339   :  { %v5515_v54 = vadd.f32 %v9459_v6, %v5495_v22  ;;  %v5650_v27 = vmul.f32 %v9441_v9, %v5609_v0  ;;  %v4762_v22 = vpop.f32.mrf.mxu3 }
 0x33b   :  { %v5684_v19 = vadd.f32 %v5668_v50, %v5515_v54  ;;  %v5670_v63 = vadd.f32 %v9453_v51, %v5650_v27 }
 0x33c   :  { %v5437_v20 = vpop.f32.mrf.mxu1 }
 0x33d   :  { %v5476_v39 = vadd.f32 %v5437_v20, %v5203_v41  ;;  %v5700_v14 = vmax.f32 %v5684_v19, 0.0  ;;  %v4790_v41 = vadd.f32 %v4757_v4, %v9366_v56 }
 0x33f   :  { %v5496_v30 = vmul.f32 %v9446_v35, %v5476_v39  ;;  %v5207_v45 = vadd.f32 %v5174_v5, %v4790_v41 }
 0x340   :  { %v5611_v12 = vpop.f32.mrf.mxu2 }
 0x341   :  { %v5516_v43 = vadd.f32 %v9459_v6, %v5496_v30  ;;  %v5651_v59 = vmul.f32 %v9441_v9, %v5611_v12  ;;  %v4791_v12 = vadd.f32 %v4760_v38, %v9373_v17 }
 0x343   :  { %v5685_v40 = vadd.f32 %v5669_v33, %v5516_v43  ;;  %v5671_v34 = vadd.f32 %v9453_v51, %v5651_v59  ;;  %v4765_v33 = vpop.f32.mrf.mxu3 }
 0x344   :  { %v5440_v24 = vpop.f32.mrf.mxu1 }
 0x345   :  { %v5701_v15 = vmax.f32 %v5685_v40, 0.0  ;;  %v5477_v57 = vadd.f32 %v5440_v24, %v5204_v7  ;;  %v5182_v24 = vpop.f32.mrf.mxu0 }
 0x347   :  { %v7067_v52 = vpack.c.bf16 %v5701_v15, %v5700_v14  ;;  %v5497_v26 = vmul.f32 %v9446_v35, %v5477_v57  ;;  %v5208_v14 = vadd.f32 %v5177_v36, %v4791_v12  ;;  %v4793_v36 = vadd.f32 %v4765_v33, %v9390_v53 }
 0x348   :  { %v5614_v58 = vpop.f32.mrf.mxu2 }
 0x349   :  { %7068 = vst [vmem:[%s9571_s10] sm:$0xff] %v7067_v52   ;;  %v5517_v55 = vadd.f32 %v9459_v6, %v5497_v26  ;;  %v5652_v50 = vmul.f32 %v9441_v9, %v5614_v58  ;;  %v4792_v58 = vadd.f32 %v4762_v22, %v9381_v49 }
 0x34b   :  { %v5686_v47 = vadd.f32 %v5670_v63, %v5517_v55  ;;  %v5672_v39 = vadd.f32 %v9453_v51, %v5652_v50  ;;  %v4767_v38 = vpop.f32.mrf.mxu3 }
 0x34c   :  { %v5442_v1 = vpop.f32.mrf.mxu1  ;;  %v4794_v41 = vadd.f32 %v4767_v38, %v9398_v46 }
 0x34d   :  { %v5478_v16 = vadd.f32 %v5442_v1, %v5205_v32  ;;  %v5702_v3 = vmax.f32 %v5686_v47, 0.0  ;;  %v5209_v1 = vadd.f32 %v5179_v42, %v4792_v58  ;;  %v5184_v55 = vpop.f32.mrf.mxu0 }
 0x34f   :  { %v5498_v37 = vmul.f32 %v9446_v35, %v5478_v16 }
 0x350   :  { %v5616_v10 = vpop.f32.mrf.mxu2 }
 0x351   :  { %v5518_v23 = vadd.f32 %v9459_v6, %v5498_v37  ;;  %v5653_v30 = vmul.f32 %v9441_v9, %v5616_v10 }
 0x353   :  { %v5687_v11 = vadd.f32 %v5671_v34, %v5518_v23  ;;  %v5673_v40 = vadd.f32 %v9453_v51, %v5653_v30 }
 0x354   :  { %v5445_v29 = vpop.f32.mrf.mxu1 }
 0x355   :  { %v5703_v0 = vmax.f32 %v5687_v11, 0.0  ;;  %v5479_v8 = vadd.f32 %v5445_v29, %v5206_v25  ;;  %v5210_v25 = vadd.f32 %v5182_v24, %v4793_v36  ;;  %v4770_v29 = vpop.f32.mrf.mxu3 }
 0x357   :  { %v7072_v20 = vpack.c.bf16 %v5703_v0, %v5702_v3  ;;  %v5499_v54 = vmul.f32 %v9446_v35, %v5479_v8 }
 0x358   :  { %v5619_v31 = vpop.f32.mrf.mxu2 }
 0x359   :  { %7104 = vst [vmem:[%s9571_s10 + $0x8] sm:$0xff] %v7072_v20   ;;  %v5519_v62 = vadd.f32 %v9459_v6, %v5499_v54  ;;  %v5654_v26 = vmul.f32 %v9441_v9, %v5619_v31  ;;  %v5187_v20 = vpop.f32.mrf.mxu0  ;;  %v5211_v54 = vadd.f32 %v5184_v55, %v4794_v41 }
 0x35b   :  { %v5688_v4 = vadd.f32 %v5672_v39, %v5519_v62  ;;  %v5674_v59 = vadd.f32 %v9453_v51, %v5654_v26 }
 0x35c   :  { %v5447_v61 = vpop.f32.mrf.mxu1 }
 0x35d   :  { %v5480_v56 = vadd.f32 %v5447_v61, %v5207_v45  ;;  %v5704_v57 = vmax.f32 %v5688_v4, 0.0  ;;  %v4772_v30 = vpop.f32.mrf.mxu3 }
 0x35f   :  { %v5500_v19 = vmul.f32 %v9446_v35, %v5480_v56  ;;  %v4795_v56 = vadd.f32 %v4770_v29, %v9405_v13 }
 0x360   :  { %v5621_v43 = vpop.f32.mrf.mxu2 }
 0x361   :  { %v5520_v7 = vadd.f32 %v9459_v6, %v5500_v19  ;;  %v5655_v49 = vmul.f32 %v9441_v9, %v5621_v43  ;;  %v5189_v19 = vpop.f32.mrf.mxu0  ;;  %v5212_v24 = vadd.f32 %v5187_v20, %v4795_v56 }
 0x363   :  { %v5689_v5 = vadd.f32 %v5673_v40, %v5520_v7  ;;  %v5675_v34 = vadd.f32 %v9453_v51, %v5655_v49 }
 0x364   :  { %v5450_v15 = vpop.f32.mrf.mxu1 }
 0x365   :  { %v5705_v44 = vmax.f32 %v5689_v5, 0.0  ;;  %v5481_v52 = vadd.f32 %v5450_v15, %v5208_v14  ;;  %v4775_v58 = vpop.f32.mrf.mxu3 }
 0x367   :  { %v7077_v27 = vpack.c.bf16 %v5705_v44, %v5704_v57  ;;  %v5501_v32 = vmul.f32 %v9446_v35, %v5481_v52  ;;  %v4796_v44 = vadd.f32 %v4772_v30, %v9413_v21 }
 0x368   :  { %v5624_v17 = vpop.f32.mrf.mxu2 }
 0x369   :  { %7105 = vst [vmem:[%s9571_s10 + $0x10] sm:$0xff] %v7077_v27   ;;  %v5521_v16 = vadd.f32 %v9459_v6, %v5501_v32  ;;  %v5656_v42 = vmul.f32 %v9441_v9, %v5624_v17  ;;  %v5192_v17 = vpop.f32.mrf.mxu0  ;;  %v5213_v26 = vadd.f32 %v5189_v19, %v4796_v44 }
 0x36b   :  { %v5690_v47 = vadd.f32 %v5674_v59, %v5521_v16  ;;  %v5676_v61 = vadd.f32 %v9453_v51, %v5656_v42  ;;  %v4797_v59 = vadd.f32 %v4775_v58, %v9419_v18 }
 0x36c   :  { %v5452_v63 = vpop.f32.mrf.mxu1 }
 0x36d   :  { %v5482_v2 = vadd.f32 %v5452_v63, %v5209_v1  ;;  %v5706_v0 = vmax.f32 %v5690_v47, 0.0  ;;  %v5214_v47 = vadd.f32 %v5192_v17, %v4797_v59 }
 0x36f   :  { %v5502_v37 = vmul.f32 %v9446_v35, %v5482_v2 }
 0x370   :  { %v5626_v10 = vpop.f32.mrf.mxu2 }
 0x371   :  { %v5522_v23 = vadd.f32 %v9459_v6, %v5502_v37  ;;  %v5657_v62 = vmul.f32 %v9441_v9, %v5626_v10  ;;  %v4777_v37 = vpop.f32.mrf.mxu3  ;;  %v5194_v29 = vpop.f32.mrf.mxu0 }
 0x373   :  { %v5691_v11 = vadd.f32 %v5675_v34, %v5522_v23  ;;  %v5677_v43 = vadd.f32 %v9453_v51, %v5657_v62 }
 0x374   :  { %v5455_v3 = vpop.f32.mrf.mxu1 }
 0x375   :  { %v5707_v8 = vmax.f32 %v5691_v11, 0.0  ;;  %v5483_v22 = vadd.f32 %v5455_v3, %v5210_v25 }
 0x377   :  { %v7082_v31 = vpack.c.bf16 %v5707_v8, %v5706_v0  ;;  %v5503_v50 = vmul.f32 %v9446_v35, %v5483_v22  ;;  %v4798_v0 = vadd.f32 %v4777_v37, %v9429_v48 }
 0x378   :  { %v5629_v53 = vpop.f32.mrf.mxu2 }
 0x379   :  { %7106 = vst [vmem:[%s9571_s10 + $0x18] sm:$0xff] %v7082_v31   ;;  %v5523_v39 = vadd.f32 %v9459_v6, %v5503_v50  ;;  %v5658_v13 = vmul.f32 %v9441_v9, %v5629_v53  ;;  %v5215_v41 = vadd.f32 %v5194_v29, %v4798_v0  ;;  %v4780_v20 = vpop.f32.mrf.mxu3 }
 0x37a   :  { %v4799_v48 = vadd.f32 %v4780_v20, %v9432_v28 }
 0x37b   :  { %v5692_v33 = vadd.f32 %v5676_v61, %v5523_v39  ;;  %v5678_v1 = vadd.f32 %v9453_v51, %v5658_v13  ;;  %v5197_v61 = vpop.f32.mrf.mxu0 }
 0x37c   :  { %v5457_v45 = vpop.f32.mrf.mxu1 }
 0x37d   :  { %v5484_v46 = vadd.f32 %v5457_v45, %v5211_v54  ;;  %v5708_v14 = vmax.f32 %v5692_v33, 0.0 }
 0x37f   :  { %v5504_v12 = vmul.f32 %v9446_v35, %v5484_v46 }
 0x380   :  { %v5631_v40 = vpop.f32.mrf.mxu2 }
 0x381   :  { %v5524_v4 = vadd.f32 %v9459_v6, %v5504_v12  ;;  %v5659_v21 = vmul.f32 %v9441_v9, %v5631_v40  ;;  %v5216_v12 = vadd.f32 %v5197_v61, %v4799_v48  ;;  %v4782_v40 = vpop.f32.mrf.mxu3 }
 0x383   :  { %v5693_v7 = vadd.f32 %v5677_v43, %v5524_v4  ;;  %v5679_v2 = vadd.f32 %v9453_v51, %v5659_v21 }
 0x384   :  { %v5460_v5 = vpop.f32.mrf.mxu1 }
 0x385   :  { %v5709_v15 = vmax.f32 %v5693_v7, 0.0  ;;  %v5485_v57 = vadd.f32 %v5460_v5, %v5212_v24  ;;  %v4800_v7 = vadd.f32 %v4782_v40, %v9436_v60 }
 0x387   :  { %v7087_v52 = vpack.c.bf16 %v5709_v15, %v5708_v14  ;;  %v5505_v27 = vmul.f32 %v9446_v35, %v5485_v57  ;;  %v5199_v14 = vpop.f32.mrf.mxu0 }
 0x388   :  { %v5634_v38 = vpop.f32.mrf.mxu2  ;;  %v5217_v57 = vadd.f32 %v5199_v14, %v4800_v7 }
 0x389   :  { %7107 = vst [vmem:[%s9571_s10 + $0x20] sm:$0xff] %v7087_v52   ;;  %v5525_v63 = vadd.f32 %v9459_v6, %v5505_v27  ;;  %v5660_v18 = vmul.f32 %v9441_v9, %v5634_v38 }
 0x38b   :  { %v5694_v49 = vadd.f32 %v5678_v1, %v5525_v63  ;;  %v5680_v53 = vadd.f32 %v9453_v51, %v5660_v18 }
 0x38c   :  { %v5462_v32 = vpop.f32.mrf.mxu1 }
 0x38d   :  { %v5486_v55 = vadd.f32 %v5462_v32, %v5213_v26  ;;  %v5710_v23 = vmax.f32 %v5694_v49, 0.0 }
 0x38f   :  { %v5506_v16 = vmul.f32 %v9446_v35, %v5486_v55 }
 0x390   :  { %v5636_v3 = vpop.f32.mrf.mxu2 }
 0x391   :  { %v5526_v36 = vadd.f32 %v9459_v6, %v5506_v16  ;;  %v5661_v50 = vmul.f32 %v9441_v9, %v5636_v3 }
 0x393   :  { %v5695_v10 = vadd.f32 %v5679_v2, %v5526_v36  ;;  %v5681_v46 = vadd.f32 %v9453_v51, %v5661_v50 }
 0x394   :  { %v5465_v34 = vpop.f32.mrf.mxu1 }
 0x395   :  { %v5711_v11 = vmax.f32 %v5695_v10, 0.0  ;;  %v5487_v25 = vadd.f32 %v5465_v34, %v5214_v47 }
 0x397   :  { %v7092_v8 = vpack.c.bf16 %v5711_v11, %v5710_v23  ;;  %v5507_v22 = vmul.f32 %v9446_v35, %v5487_v25 }
 0x398   :  { %v5639_v39 = vpop.f32.mrf.mxu2 }
 0x399   :  { %7108 = vst [vmem:[%s9571_s10 + $0x28] sm:$0xff] %v7092_v8   ;;  %v5527_v42 = vadd.f32 %v9459_v6, %v5507_v22  ;;  %v5662_v28 = vmul.f32 %v9441_v9, %v5639_v39 }
 0x39b   :  { %v5696_v62 = vadd.f32 %v5680_v53, %v5527_v42  ;;  %v5682_v52 = vadd.f32 %v9453_v51, %v5662_v28 }
 0x39c   :  { %v5467_v31 = vpop.f32.mrf.mxu1 }
 0x39d   :  { %v5488_v54 = vadd.f32 %v5467_v31, %v5215_v41  ;;  %v5712_v33 = vmax.f32 %v5696_v62, 0.0 }
 0x39f   :  { %v5508_v45 = vmul.f32 %v9446_v35, %v5488_v54 }
 0x3a0   :  { %v5641_v15 = vpop.f32.mrf.mxu2 }
 0x3a1   :  { %v5528_v30 = vadd.f32 %v9459_v6, %v5508_v45  ;;  %v5663_v13 = vmul.f32 %v9441_v9, %v5641_v15 }
 0x3a3   :  { %v5697_v56 = vadd.f32 %v5681_v46, %v5528_v30  ;;  %v5683_v26 = vadd.f32 %v9453_v51, %v5663_v13 }
 0x3a4   :  { %v5470_v19 = vpop.f32.mrf.mxu1 }
 0x3a5   :  { %v5713_v43 = vmax.f32 %v5697_v56, 0.0  ;;  %v5489_v4 = vadd.f32 %v5470_v19, %v5216_v12 }
 0x3a7   :  { %v7097_v24 = vpack.c.bf16 %v5713_v43, %v5712_v33  ;;  %v5509_v5 = vmul.f32 %v9446_v35, %v5489_v4 }
 0x3a9   :  { %7109 = vst [vmem:[%s9571_s10 + $0x30] sm:$0xff] %v7097_v24   ;;  %v5529_v58 = vadd.f32 %v9459_v6, %v5509_v5 }
 0x3ab   :  { %v5698_v17 = vadd.f32 %v5682_v52, %v5529_v58 }
 0x3ac   :  { %v5472_v44 = vpop.f32.mrf.mxu1 }
 0x3ad   :  { %v5490_v60 = vadd.f32 %v5472_v44, %v5217_v57  ;;  %v5714_v1 = vmax.f32 %v5698_v17, 0.0 }
 0x3af   :  { %v5510_v27 = vmul.f32 %v9446_v35, %v5490_v60 }
 0x3b1   :  { %v5530_v32 = vadd.f32 %v9459_v6, %v5510_v27 }
 0x3b3   :  { %v5699_v38 = vadd.f32 %v5683_v26, %v5530_v32 }
 0x3b5   :  { %v5715_v63 = vmax.f32 %v5699_v38, 0.0 }
 0x3b7   :  { %v7102_v21 = vpack.c.bf16 %v5715_v63, %v5714_v1 }
 0x3b9   :  { %7110 = vst [vmem:[%s9571_s10 + $0x38] sm:$0xff] %v7102_v21  }

</bundles_post_ra>
